<compile_context>
chip_gen: v7x
topology: tpu7x:2x2x1
jax: 0.10.0
libtpu: 0.0.40
codegen_flags: <defaults>
</compile_context>

<pallas_src>
import numpy as np
import jax
import jax.numpy as jnp
from jax.experimental import pallas as pl
from jax.experimental.pallas import tpu as pltpu

FOCAL_LENGTH = 5000.0
IMG_RES = 224.0
NUM_JOINTS = 24
NUM_BETAS = 10
NUM_VERTS = 128                       # synthetic vertex count (real SMPL: 6890)
POSE_FEAT = (NUM_JOINTS - 1) * 9      # 207
FEAT = NUM_BETAS + POSE_FEAT          # 217  = [betas | pose_feature]
FEAT_PAD = 256                        # padded K dim; lane FEAT carries the 1.0
V3 = 3 * NUM_VERTS                    # 384  coordinate-major [x|y|z] lane layout
A12 = 12 * NUM_JOINTS                 # 288  (c*4+r, joint) flattened transforms
LBS_COLS = 12 * NUM_VERTS             # 1536 block-diagonal LBS output width
POST_COLS = V3 + 256                  # 640  [verts-perm(384)|j_cm(128)|j_inter(128)]

SMPL_PARENTS = np.array(
    [-1, 0, 0, 0, 1, 2, 3, 4, 5, 6, 7, 8, 9, 9, 9, 12, 13, 14, 16, 17, 18,
     19, 20, 21], dtype=np.int32)


# ----------------------------------------------------------------------------
# Pallas kernel: shape blend + pose blend + skinning + joint regr. + projection
# ----------------------------------------------------------------------------
def _lbs_kernel(feat_ref, a12_ref, cam_ref,
                wfeat_ref, wlbs_ref, wpost_ref,
                verts_ref, jpack_ref):
    V = NUM_VERTS
    J = NUM_JOINTS
    tb = jpack_ref.shape[0]

    # --- template + shape + pose blendshapes: one (TB, 256) x (256, 3V) matmul
    # (feature vector carries a constant-1 column that selects the v_template
    #  row of the weight, so no separate template add is needed).
    v_posed = jnp.dot(feat_ref[...], wfeat_ref[...],
                      preferred_element_type=jnp.float32)                   # (TB, 3V)

    # --- per-frame vertex transforms via block-diagonal LBS weight ----------
    # T[f, (c*4+r)*V + v] = sum_j A[f, j, c, r] * W_lbs[v, j]
    T = jnp.dot(a12_ref[...], wlbs_ref[...],
                preferred_element_type=jnp.float32)                         # (TB, 12V)

    # --- linear blend skinning (vectorized over TB x V, 128-aligned slices) -
    vx = v_posed[:, 0 * V:1 * V]
    vy = v_posed[:, 1 * V:2 * V]
    vz = v_posed[:, 2 * V:3 * V]
    ox = T[:, 0*V:1*V] * vx + T[:, 1*V:2*V] * vy + T[:, 2*V:3*V] * vz + T[:, 3*V:4*V]
    oy = T[:, 4*V:5*V] * vx + T[:, 5*V:6*V] * vy + T[:, 6*V:7*V] * vz + T[:, 7*V:8*V]
    oz = T[:, 8*V:9*V] * vx + T[:, 9*V:10*V] * vy + T[:, 10*V:11*V] * vz + T[:, 11*V:12*V]
    verts_cm = jnp.concatenate([ox, oy, oz], axis=-1)                       # (TB, 3V)

    # --- fused post matmul: vertex relayout + both joint regressions --------
    # columns: [0,384)   = (c,v)->(v,c) interleaved vertex permutation
    #          [384,512) = joints, coordinate-major (for in-kernel projection)
    #          [512,640) = joints, (j,c) interleaved (for lane-dense output)
    post = jnp.dot(verts_cm, wpost_ref[...],
                   preferred_element_type=jnp.float32)                      # (TB, 640)
    verts_ref[...] = post[:, :V3]                                           # (TB, 3V)
    j_cm = post[:, V3:V3 + 128]
    j_int = post[:, V3 + 128:V3 + 256]          # lanes [72,128) are zero by constr.

    # --- weak-perspective camera -> perspective projection -------------------
    # normalize_joints2d=True in SMPLHead: divide by img_res / 2.
    cam = cam_ref[...]                                                      # (TB, 3)
    s = cam[:, 0:1]
    tx = cam[:, 1:2]
    ty = cam[:, 2:3]
    tz = (2.0 * FOCAL_LENGTH) * pl.reciprocal(IMG_RES * s + 1e-9, approx=True)
    x3 = j_cm[:, 0:J]
    y3 = j_cm[:, J:2 * J]
    z3 = j_cm[:, 2 * J:3 * J]
    inv_z = pl.reciprocal(z3 + tz, approx=True)       # EUP slot, ~free
    norm = FOCAL_LENGTH / (IMG_RES * 0.5)
    x2d = norm * (x3 + tx) * inv_z
    y2d = norm * (y3 + ty) * inv_z

    # --- packed lane-dense joint output: [j3d interleaved(72)|x2d|y2d|pad8] --
    # built in registers, written with a single unmasked 128-lane store.
    tail = jnp.concatenate(
        [jnp.zeros((tb, 3 * J), jnp.float32), x2d, y2d,
         jnp.zeros((tb, 128 - 5 * J), jnp.float32)], axis=-1)               # (TB, 128)
    jpack_ref[...] = j_int + tail


# ----------------------------------------------------------------------------
# pallas_call wrapper
# ----------------------------------------------------------------------------
def _lbs_call(feat, a12, cam, params, tb):
    n_pad = feat.shape[0]
    grid = n_pad // tb
    const = lambda i: (0, 0)
    return pl.pallas_call(
        _lbs_kernel,
        grid=(grid,),
        in_specs=[
            pl.BlockSpec((tb, FEAT_PAD), lambda i: (i, 0)),       # betas|pose_feat|1
            pl.BlockSpec((tb, A12), lambda i: (i, 0)),            # rel. transforms
            pl.BlockSpec((tb, 3), lambda i: (i, 0)),              # cam (s, tx, ty)
            pl.BlockSpec((FEAT_PAD, V3), const),                  # blendshape+template
            pl.BlockSpec((A12, LBS_COLS), const),                 # block-diag LBS W
            pl.BlockSpec((V3, POST_COLS), const),                 # fused post weight
        ],
        out_specs=[
            pl.BlockSpec((tb, V3), lambda i: (i, 0)),             # verts (v,c)-interleaved
            pl.BlockSpec((tb, 128), lambda i: (i, 0)),            # packed joints / 2d
        ],
        out_shape=[
            jax.ShapeDtypeStruct((n_pad, V3), jnp.float32),
            jax.ShapeDtypeStruct((n_pad, 128), jnp.float32),
        ],
        compiler_params=pltpu.CompilerParams(dimension_semantics=("parallel",)),
    )(feat, a12, cam, params['wfeat'], params['wlbs'], params['wpost'])


def _round_up(x, m):
    return ((x + m - 1) // m) * m


def _choose_tb(n, target=128):
    """Frames per grid step: multiple of 8, <= target, grid >= 2 when possible.

    target=128 fills the v5e MXU; use 256 on v6e/v7x if N is large enough.
    Keeping grid >= 2 lets the 'parallel' axis shard across v7x's 2 TensorCores.
    """
    half = -(-n // 2)
    return max(8, min(target, _round_up(half, 8)))


# ----------------------------------------------------------------------------
# JAX glue (tiny / inherently sequential parts of the forward)
# ----------------------------------------------------------------------------
def _batch_rigid_transform(rot_mats, joints, parents):
    """Per-joint relative rigid transforms A (N, 24, 4, 4)."""
    # TODO(synk): 24-step sequential 4x4 kinematic-chain composition kept in
    # JAX glue (tiny, inherently sequential; not a Pallas hot path).
    N, J = joints.shape[:2]
    rel_joints = joints.at[:, 1:].add(-joints[:, parents[1:]])
    top = jnp.concatenate([rot_mats, rel_joints[..., None]], axis=-1)   # (N,J,3,4)
    bottom = jnp.broadcast_to(
        jnp.array([0.0, 0.0, 0.0, 1.0], jnp.float32), (N, J, 1, 4))
    tm = jnp.concatenate([top, bottom], axis=-2)                        # (N,J,4,4)
    chain = [tm[:, 0]]
    for i in range(1, J):
        chain.append(jnp.matmul(chain[int(parents[i])], tm[:, i]))
    transforms = jnp.stack(chain, axis=1)                               # (N,J,4,4)
    joints_hom = jnp.concatenate(
        [joints, jnp.zeros((N, J, 1), jnp.float32)], axis=-1)           # (N,J,4)
    tj = jnp.einsum('njab,njb->nja', transforms, joints_hom)
    rel = transforms.at[:, :, :, 3].add(-tj)
    return rel


def _rotation_matrix_to_angle_axis(R):
    """(M, 3, 3) rotation matrices -> (M, 3) axis-angle (via quaternion)."""
    # TODO(synk): needs arctan2 (no confirmed Mosaic lowering); elementwise
    # over M = N*24 tiny matrices, so kept in plain JAX glue.
    eps = 1e-12
    r00, r01, r02 = R[:, 0, 0], R[:, 0, 1], R[:, 0, 2]
    r10, r11, r12 = R[:, 1, 0], R[:, 1, 1], R[:, 1, 2]
    r20, r21, r22 = R[:, 2, 0], R[:, 2, 1], R[:, 2, 2]
    trace = r00 + r11 + r22

    def ssqrt(x):
        return jnp.sqrt(jnp.maximum(x, eps))

    s0 = ssqrt(trace + 1.0) * 2.0
    q0 = (0.25 * s0, (r21 - r12) / s0, (r02 - r20) / s0, (r10 - r01) / s0)
    s1 = ssqrt(1.0 + r00 - r11 - r22) * 2.0
    q1 = ((r21 - r12) / s1, 0.25 * s1, (r01 + r10) / s1, (r02 + r20) / s1)
    s2 = ssqrt(1.0 - r00 + r11 - r22) * 2.0
    q2 = ((r02 - r20) / s2, (r01 + r10) / s2, 0.25 * s2, (r12 + r21) / s2)
    s3 = ssqrt(1.0 - r00 - r11 + r22) * 2.0
    q3 = ((r10 - r01) / s3, (r02 + r20) / s3, (r12 + r21) / s3, 0.25 * s3)
    c0 = trace > 0.0
    c1 = (r00 > r11) & (r00 > r22)
    c2 = r11 > r22

    def sel(k):
        return jnp.where(c0, q0[k],
                         jnp.where(c1, q1[k], jnp.where(c2, q2[k], q3[k])))

    qw, qx, qy, qz = sel(0), sel(1), sel(2), sel(3)
    sin_sq = qx * qx + qy * qy + qz * qz
    sin_t = ssqrt(sin_sq)
    two_theta = 2.0 * jnp.where(qw < 0.0,
                                jnp.arctan2(-sin_t, -qw),
                                jnp.arctan2(sin_t, qw))
    k = jnp.where(sin_sq > eps, two_theta / sin_t, 2.0 * jnp.ones_like(sin_t))
    return jnp.stack([qx * k, qy * k, qz * k], axis=-1)


def _rodrigues(aa):
    """(..., 3) axis-angle -> (..., 3, 3) rotation matrices (test inputs only)."""
    angle = jnp.sqrt(jnp.sum(aa * aa, axis=-1, keepdims=True) + 1e-12)
    axis = aa / angle
    x, y, z = axis[..., 0], axis[..., 1], axis[..., 2]
    a = angle[..., 0]
    c, s = jnp.cos(a), jnp.sin(a)
    C = 1.0 - c
    R = jnp.stack([
        c + x * x * C, x * y * C - z * s, x * z * C + y * s,
        y * x * C + z * s, c + y * y * C, y * z * C - x * s,
        z * x * C - y * s, z * y * C + x * s, c + z * z * C,
    ], axis=-1)
    return R.reshape(aa.shape[:-1] + (3, 3))


# ----------------------------------------------------------------------------
# Synthetic SMPL parameters + kernel-layout precompute (host-side, once)
# ----------------------------------------------------------------------------
def init_params(key):
    V, J, B, P = NUM_VERTS, NUM_JOINTS, NUM_BETAS, POSE_FEAT
    ks = jax.random.split(key, 5)
    vt_cm = 0.1 * jax.random.normal(ks[0], (3, V), jnp.float32)       # (3, V)
    sd_cm = 0.01 * jax.random.normal(ks[1], (B, 3, V), jnp.float32)   # (10, 3, V)
    pd_cm = 0.001 * jax.random.normal(ks[2], (P, 3, V), jnp.float32)  # (207, 3, V)
    jreg = jax.random.uniform(ks[3], (J, V), jnp.float32)
    jreg = jreg / jnp.sum(jreg, axis=1, keepdims=True)
    w = jax.random.uniform(ks[4], (V, J), jnp.float32)
    w = w / jnp.sum(w, axis=1, keepdims=True)

    Jr = np.asarray(jreg, np.float32)        # (24, V)
    W = np.asarray(w, np.float32)            # (V, 24)
    sd = np.asarray(sd_cm, np.float32)
    pd = np.asarray(pd_cm, np.float32)
    vt = np.asarray(vt_cm, np.float32)

    # combined blendshape weight:
    # rows = [betas(10) | pose_feature(207) | template-ones(1) | pad]
    wfeat = np.zeros((FEAT_PAD, V3), np.float32)
    wfeat[:B] = sd.reshape(B, V3)
    wfeat[B:B + P] = pd.reshape(P, V3)
    wfeat[FEAT] = vt.reshape(V3)                 # selected by the constant-1 lane

    # block-diagonal LBS weight: wlbs[(c*4+r)*24 + j, (c*4+r)*V + v] = W[v, j]
    wlbs = np.zeros((A12, LBS_COLS), np.float32)
    for cr in range(12):
        wlbs[cr * J:(cr + 1) * J, cr * V:(cr + 1) * V] = W.T

    # joint regression weights (block-diagonal over coordinates), padded to 128
    wj_cm = np.zeros((V3, 128), np.float32)      # output lanes [x(24)|y(24)|z(24)|0]
    wj_inter = np.zeros((V3, 128), np.float32)   # output lanes j*3+c (interleaved)
    for c in range(3):
        wj_cm[c * V:(c + 1) * V, c * J:(c + 1) * J] = Jr.T
        wj_inter[c * V:(c + 1) * V, c:3 * J:3] = Jr.T

    # permutation: (c, v) coordinate-major -> (v, c) vertex-major interleaved
    pvert = np.zeros((V3, V3), np.float32)
    for c in range(3):
        pvert[c * V + np.arange(V), 3 * np.arange(V) + c] = 1.0

    # single fused post-LBS weight (one MXU matmul in the kernel)
    wpost = np.concatenate([pvert, wj_cm, wj_inter], axis=1)         # (3V, 640)

    # rest-pose joints as an affine function of betas (tiny, used in JAX glue)
    j_template = np.einsum('jv,cv->jc', Jr, vt).reshape(1, 3 * J)     # layout j*3+c
    j_dirs = np.einsum('jv,bcv->bjc', Jr, sd).reshape(B, 3 * J)

    return {
        'wfeat': jnp.asarray(wfeat),
        'wlbs': jnp.asarray(wlbs),
        'wpost': jnp.asarray(wpost),
        'j_template': jnp.asarray(j_template.astype(np.float32)),
        'j_dirs': jnp.asarray(j_dirs.astype(np.float32)),
    }


# ----------------------------------------------------------------------------
# VPRegressor.forward equivalent (J_regressor=None path)
# ----------------------------------------------------------------------------
def vp_regressor_forward(params, patt_output, batch_size=1):
    pred_pose = patt_output['pred_pose'].astype(jnp.float32)    # (N, 24, 3, 3)
    pred_shape = patt_output['pred_shape'].astype(jnp.float32)  # (N, 10)
    pred_cam = patt_output['pred_cam'].astype(jnp.float32)      # (N, 3)
    N = pred_pose.shape[0]
    J = NUM_JOINTS

    # --- rest-pose joints: tiny affine of betas (JAX glue) -------------------
    joints = (params['j_template'] +
              pred_shape @ params['j_dirs']).reshape(N, J, 3)

    # --- kinematic chain -> per-joint relative transforms (JAX glue) ---------
    A = _batch_rigid_transform(pred_pose, joints, SMPL_PARENTS)      # (N,24,4,4)
    a12 = jnp.transpose(A[:, :, :3, :], (0, 2, 3, 1)).reshape(N, A12)  # (N, 288)

    ident = jnp.eye(3, dtype=jnp.float32)
    pose_feature = (pred_pose[:, 1:] - ident).reshape(N, POSE_FEAT)
    feat = jnp.concatenate(
        [pred_shape, pose_feature,
         jnp.ones((N, 1), jnp.float32),                              # template selector
         jnp.zeros((N, FEAT_PAD - FEAT - 1), jnp.float32)], axis=1)  # (N, 256)

    # --- frame-batched fused LBS kernel (Pallas) ------------------------------
    tb = _choose_tb(N)
    n_pad = _round_up(N, tb)
    pad = n_pad - N
    cam_in = pred_cam
    if pad:
        feat = jnp.pad(feat, ((0, pad), (0, 0)))
        a12 = jnp.pad(a12, ((0, pad), (0, 0)))
        cam_in = jnp.concatenate(
            [pred_cam,
             jnp.tile(jnp.array([[1.0, 0.0, 0.0]], jnp.float32), (pad, 1))],
            axis=0)

    verts_flat, jpack = _lbs_call(feat, a12, cam_in, params, tb)

    # lane-packed outputs -> final layouts with pure reshapes / tiny stacks.
    verts = verts_flat[:N].reshape(N, NUM_VERTS, 3)                  # no transpose
    j3d = jpack[:N, :3 * J].reshape(N, J, 3)                         # no transpose
    j2d = jnp.stack([jpack[:N, 3 * J:4 * J], jpack[:N, 4 * J:5 * J]], axis=-1)

    # --- rotmat -> axis-angle, theta, reshapes --------------------------------
    pose = _rotation_matrix_to_angle_axis(
        pred_pose.reshape(-1, 3, 3)).reshape(N, 72)
    seqlen = N // batch_size
    theta = jnp.concatenate([pred_cam, pose, pred_shape], axis=1)    # (N, 85)

    out = {
        'theta': theta.reshape(batch_size, seqlen, -1),
        'verts': verts.reshape(batch_size, seqlen, -1, 3),
        'kp_2d': j2d.reshape(batch_size, seqlen, -1, 2),
        'kp_3d': j3d.reshape(batch_size, seqlen, -1, 3),
        'rotmat': pred_pose.reshape(batch_size, seqlen, -1, 3, 3),
    }
    if 'pred_avg' in patt_output and 'pred_phase' in patt_output:
        out.update({'pred_avg': patt_output['pred_avg'],
                    'pred_phase': patt_output['pred_phase']})
    return [out]


if __name__ == "__main__":
    batch_size, seqlen = 2, 8
    N = batch_size * seqlen

    key = jax.random.PRNGKey(0)
    k_pose, k_shape, k_cam, k_params = jax.random.split(key, 4)

    # pred_pose as valid rotation matrices (built from random axis-angles).
    aa_in = 0.3 * jax.random.normal(k_pose, (N, NUM_JOINTS, 3), jnp.float32)
    pred_pose = _rodrigues(aa_in)                                 # (N, 24, 3, 3)
    pred_shape = 0.5 * jax.random.normal(k_shape, (N, NUM_BETAS), jnp.float32)
    cam_s = 0.8 + 0.4 * jax.random.uniform(k_cam, (N, 1), jnp.float32)
    cam_t = 0.1 * jax.random.normal(jax.random.PRNGKey(1), (N, 2), jnp.float32)
    pred_cam = jnp.concatenate([cam_s, cam_t], axis=1)            # (N, 3)

    patt_output = {'pred_pose': pred_pose,
                   'pred_shape': pred_shape,
                   'pred_cam': pred_cam}
    params = init_params(k_params)

    out = vp_regressor_forward(params, patt_output, batch_size=batch_size)
    jax.block_until_ready(out)

    o = out[0]
    assert o['theta'].shape == (batch_size, seqlen, 85)
    assert o['verts'].shape == (batch_size, seqlen, NUM_VERTS, 3)
    assert o['kp_2d'].shape == (batch_size, seqlen, NUM_JOINTS, 2)
    assert o['kp_3d'].shape == (batch_size, seqlen, NUM_JOINTS, 3)
    assert o['rotmat'].shape == (batch_size, seqlen, NUM_JOINTS, 3, 3)
    assert all(bool(jnp.all(jnp.isfinite(o[k]))) for k in
               ('theta', 'verts', 'kp_2d', 'kp_3d', 'rotmat'))
    print("KERNEL_OK")
</pallas_src>

<mosaic_0001>
module attributes {stable_mosaic.version = 11 : i64} {
  func.func @_lbs_kernel(%arg0: i32, %arg1: memref<8x256xf32, #tpu.memory_space<vmem>>, %arg2: memref<8x288xf32, #tpu.memory_space<vmem>>, %arg3: memref<8x3xf32, #tpu.memory_space<vmem>>, %arg4: memref<256x384xf32, #tpu.memory_space<vmem>>, %arg5: memref<288x1536xf32, #tpu.memory_space<vmem>>, %arg6: memref<384x640xf32, #tpu.memory_space<vmem>>, %arg7: memref<8x384xf32, #tpu.memory_space<vmem>>, %arg8: memref<8x128xf32, #tpu.memory_space<vmem>>) attributes {dimension_semantics = [#tpu.dimension_semantics<parallel>], iteration_bounds = array<i64: 2>, scalar_prefetch = 0 : i64, scratch_operands = 0 : i64, tpu.core_type = #tpu.core_type<tc>, window_params = [{transform_indices = @transform_0, window_bounds = array<i64: 8, 256>}, {transform_indices = @transform_1, window_bounds = array<i64: 8, 288>}, {transform_indices = @transform_2, window_bounds = array<i64: 8, 3>}, {pipeline_mode = #tpu.pipeline_mode<synchronous>, transform_indices = @transform_3, window_bounds = array<i64: 256, 384>}, {pipeline_mode = #tpu.pipeline_mode<synchronous>, transform_indices = @transform_4, window_bounds = array<i64: 288, 1536>}, {pipeline_mode = #tpu.pipeline_mode<synchronous>, transform_indices = @transform_5, window_bounds = array<i64: 384, 640>}, {transform_indices = @transform_6, window_bounds = array<i64: 8, 384>}, {transform_indices = @transform_7, window_bounds = array<i64: 8, 128>}]} {
    %c0 = arith.constant 0 : index
    %c0_0 = arith.constant 0 : index
    %0 = vector.load %arg1[%c0, %c0_0] : memref<8x256xf32, #tpu.memory_space<vmem>>, vector<8x256xf32>
    %c0_1 = arith.constant 0 : index
    %c0_2 = arith.constant 0 : index
    %1 = vector.load %arg4[%c0_1, %c0_2] : memref<256x384xf32, #tpu.memory_space<vmem>>, vector<256x384xf32>
    %cst = arith.constant dense<0.000000e+00> : vector<8x384xf32>
    %2 = tpu.matmul %0, %1, %cst {dimension_numbers = #tpu.dot_dimension_numbers<[1], [0], [0], [1], [0, 0, 1, 1], [], []>} : vector<8x256xf32>, vector<256x384xf32>, vector<8x384xf32> -> vector<8x384xf32>
    %c0_3 = arith.constant 0 : index
    %c0_4 = arith.constant 0 : index
    %3 = vector.load %arg2[%c0_3, %c0_4] : memref<8x288xf32, #tpu.memory_space<vmem>>, vector<8x288xf32>
    %c0_5 = arith.constant 0 : index
    %c0_6 = arith.constant 0 : index
    %4 = vector.load %arg5[%c0_5, %c0_6] : memref<288x1536xf32, #tpu.memory_space<vmem>>, vector<288x1536xf32>
    %cst_7 = arith.constant dense<0.000000e+00> : vector<8x1536xf32>
    %5 = tpu.matmul %3, %4, %cst_7 {dimension_numbers = #tpu.dot_dimension_numbers<[1], [0], [0], [1], [0, 0, 1, 1], [], []>} : vector<8x288xf32>, vector<288x1536xf32>, vector<8x1536xf32> -> vector<8x1536xf32>
    %6 = vector.extract_strided_slice %2 {offsets = [0, 0], sizes = [8, 128], strides = [1, 1]} : vector<8x384xf32> to vector<8x128xf32>
    %7 = vector.extract_strided_slice %2 {offsets = [0, 128], sizes = [8, 128], strides = [1, 1]} : vector<8x384xf32> to vector<8x128xf32>
    %8 = vector.extract_strided_slice %2 {offsets = [0, 256], sizes = [8, 128], strides = [1, 1]} : vector<8x384xf32> to vector<8x128xf32>
    %9 = vector.extract_strided_slice %5 {offsets = [0, 0], sizes = [8, 128], strides = [1, 1]} : vector<8x1536xf32> to vector<8x128xf32>
    %10 = arith.mulf %9, %6 : vector<8x128xf32>
    %11 = vector.extract_strided_slice %5 {offsets = [0, 128], sizes = [8, 128], strides = [1, 1]} : vector<8x1536xf32> to vector<8x128xf32>
    %12 = arith.mulf %11, %7 : vector<8x128xf32>
    %13 = arith.addf %10, %12 : vector<8x128xf32>
    %14 = vector.extract_strided_slice %5 {offsets = [0, 256], sizes = [8, 128], strides = [1, 1]} : vector<8x1536xf32> to vector<8x128xf32>
    %15 = arith.mulf %14, %8 : vector<8x128xf32>
    %16 = arith.addf %13, %15 : vector<8x128xf32>
    %17 = vector.extract_strided_slice %5 {offsets = [0, 384], sizes = [8, 128], strides = [1, 1]} : vector<8x1536xf32> to vector<8x128xf32>
    %18 = arith.addf %16, %17 : vector<8x128xf32>
    %19 = vector.extract_strided_slice %5 {offsets = [0, 512], sizes = [8, 128], strides = [1, 1]} : vector<8x1536xf32> to vector<8x128xf32>
    %20 = arith.mulf %19, %6 : vector<8x128xf32>
    %21 = vector.extract_strided_slice %5 {offsets = [0, 640], sizes = [8, 128], strides = [1, 1]} : vector<8x1536xf32> to vector<8x128xf32>
    %22 = arith.mulf %21, %7 : vector<8x128xf32>
    %23 = arith.addf %20, %22 : vector<8x128xf32>
    %24 = vector.extract_strided_slice %5 {offsets = [0, 768], sizes = [8, 128], strides = [1, 1]} : vector<8x1536xf32> to vector<8x128xf32>
    %25 = arith.mulf %24, %8 : vector<8x128xf32>
    %26 = arith.addf %23, %25 : vector<8x128xf32>
    %27 = vector.extract_strided_slice %5 {offsets = [0, 896], sizes = [8, 128], strides = [1, 1]} : vector<8x1536xf32> to vector<8x128xf32>
    %28 = arith.addf %26, %27 : vector<8x128xf32>
    %29 = vector.extract_strided_slice %5 {offsets = [0, 1024], sizes = [8, 128], strides = [1, 1]} : vector<8x1536xf32> to vector<8x128xf32>
    %30 = arith.mulf %29, %6 : vector<8x128xf32>
    %31 = vector.extract_strided_slice %5 {offsets = [0, 1152], sizes = [8, 128], strides = [1, 1]} : vector<8x1536xf32> to vector<8x128xf32>
    %32 = arith.mulf %31, %7 : vector<8x128xf32>
    %33 = arith.addf %30, %32 : vector<8x128xf32>
    %34 = vector.extract_strided_slice %5 {offsets = [0, 1280], sizes = [8, 128], strides = [1, 1]} : vector<8x1536xf32> to vector<8x128xf32>
    %35 = arith.mulf %34, %8 : vector<8x128xf32>
    %36 = arith.addf %33, %35 : vector<8x128xf32>
    %37 = vector.extract_strided_slice %5 {offsets = [0, 1408], sizes = [8, 128], strides = [1, 1]} : vector<8x1536xf32> to vector<8x128xf32>
    %38 = arith.addf %36, %37 : vector<8x128xf32>
    %39 = tpu.concatenate %18, %28, %38 in 1 : vector<8x128xf32>, vector<8x128xf32>, vector<8x128xf32> -> vector<8x384xf32>
    %c0_8 = arith.constant 0 : index
    %c0_9 = arith.constant 0 : index
    %40 = vector.load %arg6[%c0_8, %c0_9] : memref<384x640xf32, #tpu.memory_space<vmem>>, vector<384x640xf32>
    %cst_10 = arith.constant dense<0.000000e+00> : vector<8x640xf32>
    %41 = tpu.matmul %39, %40, %cst_10 {dimension_numbers = #tpu.dot_dimension_numbers<[1], [0], [0], [1], [0, 0, 1, 1], [], []>} : vector<8x384xf32>, vector<384x640xf32>, vector<8x640xf32> -> vector<8x640xf32>
    %42 = vector.extract_strided_slice %41 {offsets = [0, 0], sizes = [8, 384], strides = [1, 1]} : vector<8x640xf32> to vector<8x384xf32>
    %c0_11 = arith.constant 0 : index
    %c0_12 = arith.constant 0 : index
    %43 = vector.load %arg7[%c0_11, %c0_12] : memref<8x384xf32, #tpu.memory_space<vmem>>, vector<8x384xf32>
    tpu.vector_store %arg7[%c0_11, %c0_12], %42 {strides = array<i32>} : memref<8x384xf32, #tpu.memory_space<vmem>>, vector<8x384xf32>,
    %44 = vector.extract_strided_slice %41 {offsets = [0, 384], sizes = [8, 128], strides = [1, 1]} : vector<8x640xf32> to vector<8x128xf32>
    %45 = vector.extract_strided_slice %41 {offsets = [0, 512], sizes = [8, 128], strides = [1, 1]} : vector<8x640xf32> to vector<8x128xf32>
    %c0_13 = arith.constant 0 : index
    %c0_14 = arith.constant 0 : index
    %46 = vector.load %arg3[%c0_13, %c0_14] : memref<8x3xf32, #tpu.memory_space<vmem>>, vector<8x3xf32>
    %47 = vector.extract_strided_slice %46 {offsets = [0, 0], sizes = [8, 1], strides = [1, 1]} : vector<8x3xf32> to vector<8x1xf32>
    %48 = vector.extract_strided_slice %46 {offsets = [0, 1], sizes = [8, 1], strides = [1, 1]} : vector<8x3xf32> to vector<8x1xf32>
    %49 = vector.extract_strided_slice %46 {offsets = [0, 2], sizes = [8, 1], strides = [1, 1]} : vector<8x3xf32> to vector<8x1xf32>
    %cst_15 = arith.constant 2.240000e+02 : f32
    %50 = vector.broadcast %cst_15 : f32 to vector<8x1xf32>
    %51 = arith.mulf %50, %47 : vector<8x1xf32>
    %cst_16 = arith.constant 9.99999971E-10 : f32
    %52 = vector.broadcast %cst_16 : f32 to vector<8x1xf32>
    %53 = arith.addf %51, %52 : vector<8x1xf32>
    %54 = tpu.reciprocal %53 {approx = true} : vector<8x1xf32> -> vector<8x1xf32>
    %cst_17 = arith.constant 1.000000e+04 : f32
    %55 = vector.broadcast %cst_17 : f32 to vector<8x1xf32>
    %56 = arith.mulf %55, %54 : vector<8x1xf32>
    %57 = vector.extract_strided_slice %44 {offsets = [0, 0], sizes = [8, 24], strides = [1, 1]} : vector<8x128xf32> to vector<8x24xf32>
    %58 = vector.extract_strided_slice %44 {offsets = [0, 24], sizes = [8, 24], strides = [1, 1]} : vector<8x128xf32> to vector<8x24xf32>
    %59 = vector.extract_strided_slice %44 {offsets = [0, 48], sizes = [8, 24], strides = [1, 1]} : vector<8x128xf32> to vector<8x24xf32>
    %60 = vector.broadcast %56 : vector<8x1xf32> to vector<8x24xf32>
    %61 = arith.addf %59, %60 : vector<8x24xf32>
    %62 = tpu.reciprocal %61 {approx = true} : vector<8x24xf32> -> vector<8x24xf32>
    %63 = vector.broadcast %48 : vector<8x1xf32> to vector<8x24xf32>
    %64 = arith.addf %57, %63 : vector<8x24xf32>
    %cst_18 = arith.constant 44.6428566 : f32
    %65 = vector.broadcast %cst_18 : f32 to vector<8x24xf32>
    %66 = arith.mulf %65, %64 : vector<8x24xf32>
    %67 = arith.mulf %66, %62 : vector<8x24xf32>
    %68 = vector.broadcast %49 : vector<8x1xf32> to vector<8x24xf32>
    %69 = arith.addf %58, %68 : vector<8x24xf32>
    %cst_19 = arith.constant 44.6428566 : f32
    %70 = vector.broadcast %cst_19 : f32 to vector<8x24xf32>
    %71 = arith.mulf %70, %69 : vector<8x24xf32>
    %72 = arith.mulf %71, %62 : vector<8x24xf32>
    %cst_20 = arith.constant 0.000000e+00 : f32
    %73 = vector.broadcast %cst_20 : f32 to vector<8x72xf32>
    %cst_21 = arith.constant 0.000000e+00 : f32
    %74 = vector.broadcast %cst_21 : f32 to vector<8x8xf32>
    %75 = tpu.concatenate %73, %67, %72, %74 in 1 : vector<8x72xf32>, vector<8x24xf32>, vector<8x24xf32>, vector<8x8xf32> -> vector<8x128xf32>
    %76 = arith.addf %45, %75 : vector<8x128xf32>
    %c0_22 = arith.constant 0 : index
    %c0_23 = arith.constant 0 : index
    %77 = vector.load %arg8[%c0_22, %c0_23] : memref<8x128xf32, #tpu.memory_space<vmem>>, vector<8x128xf32>
    tpu.vector_store %arg8[%c0_22, %c0_23], %76 {strides = array<i32>} : memref<8x128xf32, #tpu.memory_space<vmem>>, vector<8x128xf32>,
    return
  }
  func.func @transform_0(%arg0: i32) -> (i32, i32) {
    %c0_i32 = arith.constant 0 : i32
    %c0_i32_0 = arith.constant 0 : i32
    return %arg0, %c0_i32 : i32, i32
  }
  func.func @transform_1(%arg0: i32) -> (i32, i32) {
    %c0_i32 = arith.constant 0 : i32
    %c0_i32_0 = arith.constant 0 : i32
    return %arg0, %c0_i32 : i32, i32
  }
  func.func @transform_2(%arg0: i32) -> (i32, i32) {
    %c0_i32 = arith.constant 0 : i32
    %c0_i32_0 = arith.constant 0 : i32
    return %arg0, %c0_i32 : i32, i32
  }
  func.func @transform_3(%arg0: i32) -> (i32, i32) {
    %c0_i32 = arith.constant 0 : i32
    %c0_i32_0 = arith.constant 0 : i32
    %c0_i32_1 = arith.constant 0 : i32
    return %c0_i32, %c0_i32_0 : i32, i32
  }
  func.func @transform_4(%arg0: i32) -> (i32, i32) {
    %c0_i32 = arith.constant 0 : i32
    %c0_i32_0 = arith.constant 0 : i32
    %c0_i32_1 = arith.constant 0 : i32
    return %c0_i32, %c0_i32_0 : i32, i32
  }
  func.func @transform_5(%arg0: i32) -> (i32, i32) {
    %c0_i32 = arith.constant 0 : i32
    %c0_i32_0 = arith.constant 0 : i32
    %c0_i32_1 = arith.constant 0 : i32
    return %c0_i32, %c0_i32_0 : i32, i32
  }
  func.func @transform_6(%arg0: i32) -> (i32, i32) {
    %c0_i32 = arith.constant 0 : i32
    %c0_i32_0 = arith.constant 0 : i32
    return %arg0, %c0_i32 : i32, i32
  }
  func.func @transform_7(%arg0: i32) -> (i32, i32) {
    %c0_i32 = arith.constant 0 : i32
    %c0_i32_0 = arith.constant 0 : i32
    return %arg0, %c0_i32 : i32, i32
  }
}

</mosaic_0001>

<bundles_post_ra>
// kernel: tpu_custom_call.1
= control target key start
LH: loop header
LB: loop body
LE: loop exit
PB: predicated region body
PF: predicated region fallthrough
CT: control target
= control target key end

     0   :  { %s4669_s0 = inlined_call_operand.hbm [shape: f32[16,256], index: 0, kind: input, shape index: {}]   ;;  %s4670_s1 = inlined_call_operand.hbm [shape: f32[16,288], index: 1, kind: input, shape index: {}]   ;;  %s4671_s2 = inlined_call_operand.vmem [shape: f32[16,3], index: 2, kind: input, shape index: {}]   ;;  %s4672_s3 = inlined_call_operand.hbm [shape: f32[256,384], index: 3, kind: input, shape index: {}]   ;;  %s4673_s4 = inlined_call_operand.hbm [shape: f32[288,1536], index: 4, kind: input, shape index: {}]   ;;  %s4674_s5 = inlined_call_operand.hbm [shape: f32[384,640], index: 5, kind: input, shape index: {}]   ;;  %s4675_s6 = inlined_call_operand.hbm [shape: f32[16,384], index: 6, kind: output, shape index: {0}]   ;;  %s4676_s7 = inlined_call_operand.hbm [shape: f32[16,128], index: 7, kind: output, shape index: {1}]  }
   0x1   :  { %4681 = sst [smem:[#allocation20_spill]] %s4669_s0 }
   0x2   :  { %4682 = sst [smem:[#allocation21_spill]] %s4672_s3 }
   0x3   :  { %4683 = sst [smem:[#allocation22_spill]] %s4673_s4 }
   0x4   :  { %13 = vsyncpa [#allocation3], 0 }
   0x5   :  { %15 = vsyncpa [#allocation3 + $0x1], 0 }
   0x6   :  { %16 = vsyncpa [#allocation6], 0 }
   0x7   :  { %18 = vsyncpa [#allocation6 + $0x1], 0 }
   0x8   :  { %19 = vsyncpa [#allocation9], 0 }
   0x9   :  { %20 = vsyncpa [#allocation4], 0 }
   0xa   :  { %22 = vsyncpa [#allocation4 + $0x1], 0 }
   0xb   :  { %23 = vsyncpa [#allocation13], 0 }
   0xc   :  { %25 = vsyncpa [#allocation13 + $0x1], 0  ;;  %s4245_s24 = smov 0   ;;  %s4247_s25 = smov 0  }
   0xd   :  { %s4249_s26 = smov 0   ;;  %s4251_s27 = smov 0  }
   0xe LB: > { %s4266_s28 = sadd.s32 4294967295, %s4181_s27   ;;  %s2867_s29 = sadd.s32 4294967294, %s4181_s27   ;;  %s4181_s27 = sphi %s4251_s27, %s4708_s27   ;;  %s4177_s26 = sphi %s4249_s26, %s4707_s26   ;;  %s4173_s25 = sphi %s4247_s25, %s4706_s25   ;;  %s4169_s24 = sphi %s4245_s24, %s4705_s24  }
   0xf   : > { %p51_p0 = scmp.ne.s32.totalorder %s4173_s25, %s4169_s24  ;;  %p4677_p1 = scmp.eq.s32.totalorder %s4266_s28, 0 }
  0x10   : > { %p196_p3 = scmp.eq.s32.totalorder %s2867_s29, 1  ;;  %p2868_p5 = scmp.ge.s32.totalorder %s4181_s27, 1 }
  0x11   : > { %p4275_p4 = por %p4677_p1, %p51_p0  ;;  %p229_p7 = scmp.lt.s32.totalorder %s4181_s27, 3 }
  0x12   : > { %p4280_p6 = por %p196_p3, %p51_p0  ;;  %s4183_s10 = smov [#allocation7]  }
  0x13   : > { %s4684_s30 = scalar_select %p4275_p4, 1, 0 }
  0x14   : > { %s4685_s8 = scalar_select %p4280_p6, 1, 0 }
  0x15   : > { %p4285_p8 = pnand %p2868_p5, %p229_p7  ;;  %s241_s11 = sshll.u32 %s4183_s10, 4  ;;  %s4289_s11 = int_to_ptr.vmem [resolvable:$true] %s241_s11 }
  0x16   : > { %s4184_s13 = smov [#allocation8]   ;;  %s4688_s3 = sld [smem:[#allocation21_spill]] }
  0x17   : > { %s4686_s9 = scalar_select %p4285_p8, 1, 0 }
  0x18   : > { %p3834_p9 = pneg %p4285_p8  ;;  %s254_s14 = sshll.u32 %s4184_s13, 4  ;;  %s4300_s14 = int_to_ptr.vmem [resolvable:$true] %s254_s14 }
  0x1a   : > { %p4296_p11 = pnand %p3834_p9, %p4677_p1 }
  0x1c   : > { %s3927_s17 = scalar_lea.hbm %s4688_s3, 12288  ;;  %p4310_p13 = pneg %p4296_p11 }
  0x1d   : > { %p3928_p12 = scmp.ne.s32.totalorder %s4688_s3, %s3927_s17  ;;  %p3934_p5 = scmp.lt.u32.totalorder %s3927_s17, %s4688_s3 }
  0x1f   : > { %p3930_p0 = pnand %p4310_p13, %p3928_p12 }
  0x21   : > { %p3931_p3 = pneg %p3930_p0 }
  0x23   : > { %p3936_p7 = pnand %p3934_p5, %p3931_p3 }
  0x25   : > { %3939 = shalt.err (!%p3936_p7)
}
  0x26   : > { %s3940_s23 = scalar_lea.vmem %s4289_s11, 12288  ;;  %p3948_p2 = scmp.lt.s32.totalorder %s4289_s11, %s4289_s11 }
  0x27   : > { %p3941_p9 = scmp.ne.s32.totalorder %s4289_s11, %s3940_s23  ;;  %p3949_p6 = scmp.lt.s32.totalorder %s3940_s23, %s3940_s23 }
  0x29   : > { %p3943_p10 = pnand %p3941_p9, %p4310_p13  ;;  %p3950_p12 = por %p3949_p6, %p3948_p2 }
  0x2b   : > { %p3944_p1 = pneg %p3943_p10 }
  0x2d   : > { %p3951_p0 = pnand %p3950_p12, %p3944_p1 }
  0x2f   : > { %3954 = shalt.err (!%p3951_p0)
}
  0x30   : > { %s4185_s29 = smov 384   ;;  %s4186_s10 = smov 24  }
  0x31   : > { %3837 = dma.hbm_to_vmem [thread:$0]  (!%p4296_p11), %s4688_s3, 12288, %s4289_s11, [#allocation6], %s4185_s29, %s4185_s29, %s4186_s10  }
  0x32   : > { %s4690_s4 = sld [smem:[#allocation22_spill]] }
  0x38   : > { %s3955_s18 = scalar_lea.hbm %s4690_s4, 55296 }
  0x39   : > { %p3956_p2 = scmp.ne.s32.totalorder %s4690_s4, %s3955_s18  ;;  %p3962_p10 = scmp.lt.u32.totalorder %s3955_s18, %s4690_s4 }
  0x3b   : > { %p3958_p1 = pnand %p3956_p2, %p4310_p13 }
  0x3d   : > { %p3959_p6 = pneg %p3958_p1 }
  0x3f   : > { %p3964_p3 = pnand %p3962_p10, %p3959_p6 }
  0x41   : > { %3967 = shalt.err (!%p3964_p3)
}
  0x42   : > { %s3968_s11 = scalar_lea.vmem %s4300_s14, 55296  ;;  %p3976_p12 = scmp.lt.s32.totalorder %s4300_s14, %s4300_s14 }
  0x43   : > { %p3969_p5 = scmp.ne.s32.totalorder %s4300_s14, %s3968_s11  ;;  %p3977_p0 = scmp.lt.s32.totalorder %s3968_s11, %s3968_s11 }
  0x45   : > { %p3971_p7 = pnand %p3969_p5, %p4310_p13  ;;  %p3978_p2 = por %p3977_p0, %p3976_p12 }
  0x47   : > { %p3972_p9 = pneg %p3971_p7 }
  0x49   : > { %p3979_p1 = pnand %p3978_p2, %p3972_p9 }
  0x4b   : > { %3982 = shalt.err (!%p3979_p1)
}
  0x4c   : > { %s4187_s29 = smov 1536   ;;  %s4188_s10 = smov 96  }
  0x4d   : > { %3840 = dma.hbm_to_vmem [thread:$0]  (!%p4296_p11), %s4690_s4, 55296, %s4300_s14, [#allocation9], %s4187_s29, %s4187_s29, %s4188_s10  }
  0x4e   : > { %s4189_s16 = smov [#allocation10]   ;;  %s3983_s21 = scalar_lea.hbm %s4674_s5, 30720 }
  0x4f   : > { %s267_s17 = sshll.u32 %s4189_s16, 4  ;;  %p3984_p6 = scmp.ne.s32.totalorder %s4674_s5, %s3983_s21  ;;  %s268_s17 = int_to_ptr.vmem [resolvable:$true] %s267_s17 }
  0x50   : > { %p3990_p5 = scmp.lt.u32.totalorder %s3983_s21, %s4674_s5 }
  0x51   : > { %p3986_p10 = pnand %p3984_p6, %p4310_p13 }
  0x53   : > { %p3987_p3 = pneg %p3986_p10 }
  0x55   : > { %p3992_p7 = pnand %p3990_p5, %p3987_p3 }
  0x57   : > { %3995 = shalt.err (!%p3992_p7)
}
  0x58   : > { %s3996_s14 = scalar_lea.vmem %s268_s17, 30720  ;;  %p4004_p2 = scmp.lt.s32.totalorder %s268_s17, %s268_s17 }
  0x59   : > { %p3997_p9 = scmp.ne.s32.totalorder %s268_s17, %s3996_s14  ;;  %p4005_p1 = scmp.lt.s32.totalorder %s3996_s14, %s3996_s14 }
  0x5b   : > { %p3999_p12 = pnand %p3997_p9, %p4310_p13  ;;  %p4006_p4 = por %p4005_p1, %p4004_p2 }
  0x5d   : > { %p4000_p0 = pneg %p3999_p12 }
  0x5f   : > { %p4007_p8 = pnand %p4006_p4, %p4000_p0 }
  0x61   : > { %4010 = shalt.err (!%p4007_p8)
}
  0x62   : > { %s4190_s29 = smov 640   ;;  %s4191_s3 = smov 40  }
  0x63   : > { %3843 = dma.hbm_to_vmem [thread:$0]  (!%p4296_p11), %s4674_s5, 30720, %s268_s17, [#allocation9], %s4190_s29, %s4190_s29, %s4191_s3  }
  0x64   : > { %s4373_s13 = sadd.s32 1, %s4181_s27   ;;  %s38_s16 = sadd.s32 1, %s4177_s26 }
  0x65   : > { %s35_s15 = ssub.s32 %s4181_s27, %s4373_s13  ;;  %p45_p8 = scmp.ne.s32.totalorder %s4177_s26, %s4173_s25 }
  0x66   : > { %p36_p4 = scmp.eq.s32.totalorder %s35_s15, 0  ;;  %p46_p13 = scmp.eq.s32.totalorder %s4181_s27, 0 }
  0x67   : > { %p3861_p6 = scmp.lt.s32.totalorder %s4181_s27, 2  ;;  %p4691_p3 = scmp.eq.s32.totalorder %s4266_s28, 1 }
  0x68   : > { %s4383_s18 = scalar_select %p36_p4, %s4177_s26, %s38_s16  }
  0x69   : > { %p47_p10 = por %p46_p13, %p45_p8  ;;  %p4387_p5 = por %p4691_p3, %p45_p8 }
  0x6a   : > { %s4392_s19 = sand.u32 1, %s4177_s26   ;;  %s2895_s17 = sshll.u32 %s4181_s27, 8 }
  0x6b   : > { %s4692_s12 = scalar_select %p4387_p5, 1, 0 }
  0x6c   : > { %s2873_s21 = sshll.u32 %s4392_s19, 4  ;;  %s4693_s0 = sld [smem:[#allocation20_spill]] }
  0x6d   : > { %s285_s14 = scalar_lea.vmem [#allocation2], %s2873_s21  ;;  %p4401_p11 = pnand %p3861_p6, %p47_p10 }
  0x6e   : > { %s293_s29 = sshll.u32 %s285_s14, 4  ;;  %s282_s10 = scalar_lea.sflag [#allocation3], %s4392_s19  ;;  %s4405_s29 = int_to_ptr.vmem [resolvable:$true] %s293_s29 }
  0x6f   : > { %p4013_p9 = pneg %p4401_p11 }
  0x72   : > { %s4399_s11 = scalar_lea.hbm %s4693_s0, %s2895_s17  ;;  %s4016_s21 = scalar_lea.hbm %s4693_s0, 512 }
  0x73   : > { %s4011_s15 = scalar_lea.hbm %s4399_s11, 256  ;;  %p4017_p2 = scmp.lt.u32.totalorder %s4399_s11, %s4693_s0 }
  0x74   : > { %p4012_p7 = scmp.ne.s32.totalorder %s4399_s11, %s4011_s15  ;;  %p4018_p1 = scmp.lt.u32.totalorder %s4016_s21, %s4011_s15 }
  0x75   : > { %p4020_p8 = scmp.lt.u32.totalorder %s4011_s15, %s4399_s11 }
  0x76   : > { %p4014_p12 = pnand %p4013_p9, %p4012_p7  ;;  %p4019_p4 = por %p4018_p1, %p4017_p2 }
  0x78   : > { %p4015_p0 = pneg %p4014_p12  ;;  %p4021_p13 = por %p4020_p8, %p4019_p4 }
  0x7a   : > { %p4022_p6 = pnand %p4021_p13, %p4015_p0 }
  0x7c   : > { %4025 = shalt.err (!%p4022_p6)
}
  0x7d   : > { %s4026_s14 = scalar_lea.vmem %s4405_s29, 256  ;;  %s4192_s16 = smov [#allocation2]  }
  0x7e   : > { %p4027_p10 = scmp.ne.s32.totalorder %s4405_s29, %s4026_s14  ;;  %s4031_s17 = sshll.u32 %s4192_s16, 4  ;;  %s4032_s17 = int_to_ptr.vmem [resolvable:$false] %s4031_s17 }
  0x7f   : > { %s4033_s22 = scalar_lea.vmem %s4032_s17, 512  ;;  %p4034_p12 = scmp.lt.s32.totalorder %s4405_s29, %s4032_s17 }
  0x80   : > { %p4029_p3 = pnand %p4027_p10, %p4013_p9  ;;  %p4035_p2 = scmp.lt.s32.totalorder %s4033_s22, %s4026_s14 }
  0x82   : > { %p4030_p7 = pneg %p4029_p3  ;;  %p4036_p1 = por %p4035_p2, %p4034_p12 }
  0x84   : > { %p4037_p4 = pnand %p4036_p1, %p4030_p7 }
  0x86   : > { %4040 = shalt.err (!%p4037_p4)
}
  0x87   : > { %3847 = dma.hbm_to_vmem [thread:$0]  (!%p4401_p11), %s4399_s11, 256, %s4405_s29, %s282_s10  }
  0x88   : > { %s3810_s15 = smul.u32 24, %s4392_s19  ;;  %s4695_s22 = sand.u32 1, %s4181_s27  }
  0x89   : > { %s3811_s21 = smul.u32 384, %s4181_s27  ;;  %s301_s0 = scalar_lea.sflag [#allocation6], %s4695_s22 }
  0x8a   : > { %s304_s14 = scalar_lea.vmem [#allocation5], %s3810_s15  ;;  %s4046_s29 = scalar_lea.hbm %s4670_s1, 768 }
  0x8b   : > { %s4439_s20 = scalar_lea.hbm %s4670_s1, %s3811_s21  ;;  %s312_s17 = sshll.u32 %s304_s14, 4  ;;  %s313_s17 = int_to_ptr.vmem [resolvable:$true] %s312_s17 }
  0x8c   : > { %s4041_s4 = scalar_lea.hbm %s4439_s20, 384  ;;  %p4047_p6 = scmp.lt.u32.totalorder %s4439_s20, %s4670_s1 }
  0x8d   : > { %p4042_p0 = scmp.ne.s32.totalorder %s4439_s20, %s4041_s4  ;;  %p4048_p10 = scmp.lt.u32.totalorder %s4046_s29, %s4041_s4 }
  0x8e   : > { %p4050_p7 = scmp.lt.u32.totalorder %s4041_s4, %s4439_s20 }
  0x8f   : > { %p4044_p8 = pnand %p4042_p0, %p4013_p9  ;;  %p4049_p3 = por %p4048_p10, %p4047_p6 }
  0x91   : > { %p4045_p13 = pneg %p4044_p8  ;;  %p4051_p12 = por %p4050_p7, %p4049_p3 }
  0x93   : > { %p4052_p2 = pnand %p4051_p12, %p4045_p13 }
  0x95   : > { %4055 = shalt.err (!%p4052_p2)
}
  0x96   : > { %s4056_s15 = scalar_lea.vmem %s313_s17, 384  ;;  %s4193_s23 = smov [#allocation5]  }
  0x97   : > { %p4057_p1 = scmp.ne.s32.totalorder %s313_s17, %s4056_s15  ;;  %s4061_s16 = sshll.u32 %s4193_s23, 4  ;;  %s4062_s16 = int_to_ptr.vmem [resolvable:$false] %s4061_s16 }
  0x98   : > { %s4063_s14 = scalar_lea.vmem %s4062_s16, 768  ;;  %p4064_p8 = scmp.lt.s32.totalorder %s313_s17, %s4062_s16 }
  0x99   : > { %p4059_p4 = pnand %p4057_p1, %p4013_p9  ;;  %p4065_p5 = scmp.lt.s32.totalorder %s4063_s14, %s4056_s15 }
  0x9b   : > { %p4060_p0 = pneg %p4059_p4  ;;  %p4066_p6 = por %p4065_p5, %p4064_p8 }
  0x9d   : > { %p4067_p10 = pnand %p4066_p6, %p4060_p0 }
  0x9f   : > { %4070 = shalt.err (!%p4067_p10)
}
  0xa0   : > { %3850 = dma.hbm_to_vmem [thread:$0]  (!%p4401_p11), %s4439_s20, 384, %s313_s17, %s301_s0  }
  0xa1   : > { %p4696_p13 = scmp.ne.s32.totalorder %s4686_s9, 0 }
  0xa2   : > { %s4465_s4 = sand.u32 (!%p4696_p13), 1, %s4173_s25   ;;  %p4697_p5 = scmp.ne.s32.totalorder (!%p4696_p13), %s4684_s30, 0 }
  0xa3   : > { %328 = sbr.rel (%p4696_p13) target bundleno = 1152 (0x480), region = 44  ;;  %s2878_s22 = sshll.u32 (!%p4696_p13), %s4465_s4, 4 }
  0xa4   : > { %s331_s19 = scalar_lea.sflag (!%p4696_p13), [#allocation3], %s4465_s4  ;;  %s4469_s11 = scalar_lea.vmem (!%p4696_p13), [#allocation2], %s2878_s22 }
  0xaa   : > { %4144 = dma.done.wait (%p4697_p5), %s331_s19, 256  }
  0xab   : > { %4146 = vsyncadd (%p4697_p5), %s331_s19, 4294967040  ;;  %s339_s0 = sand.u32 1, %s4266_s28   ;;  %s3812_s9 = smul.u32 24, %s4465_s4 }
  0xac   : > { %s340_s3 = scalar_lea.sflag [#allocation6], %s339_s0 }
  0xad   : > { %s4479_s20 = scalar_lea.vmem [#allocation5], %s3812_s9 }
  0xae   : > { %4148 = dma.done.wait (%p4697_p5), %s340_s3, 384  }
  0xaf   : > { %4150 = vsyncadd (%p4697_p5), %s340_s3, 4294966912  ;;  %p4698_p11 = scmp.eq.s32.totalorder %s4266_s28, 0 }
  0xb1   : > { %4152 = dma.done.wait (%p4698_p11), [#allocation6], 12288   ;;  %p4699_p9 = pmov %p4698_p11 }
  0xb3   : > { %4154 = vsyncadd (%p4699_p9), [#allocation6], 4294955008  ;;  %p4700_p3 = pmov %p4699_p9 }
  0xb5   : > { %4156 = dma.done.wait (%p4700_p3), [#allocation9], 86016   ;;  %p4701_p7 = pmov %p4700_p3 }
  0xb6   : > { %v407_v0 = vld [vmem:[#allocation7 + $0x8] sm:$0xff]  ;;  %v410_v1 = vld [vmem:[#allocation7 + $0x20] sm:$0xff]  ;;  %v456_v2 = vld [vmem:[#allocation7 + $0x190] sm:$0xff]  ;;  %vm1078_vm0 = vcmask 261120   ;;  %p400_p12 = scmp.lt.s32.totalorder %s4266_s28, 1  ;;  %vm4199_vm1 = vmmov 0  }
  0xb7   : > { %4158 = vsyncadd (%p4701_p7), [#allocation9], 4294881280  ;;  %v3018_v3 = vpack.c.bf16 %v410_v1, %v407_v0  ;;  %v459_v4 = vld [vmem:[#allocation7 + $0x1a8] sm:$0xff]  ;;  %v406_v5 = vld [vmem:[#allocation7] sm:$0xff]  ;;  %s392_s15 = scalar_lea.vmem [#allocation11], %s3812_s9  ;;  %s4200_s23 = smov 80  }
  0xb8   : > { %v409_v6 = vld [vmem:[#allocation7 + $0x18] sm:$0xff]  ;;  %v3082_v7 = vpack.c.bf16 %v459_v4, %v456_v2  ;;  %v408_v9 = vld [vmem:[#allocation7 + $0x10] sm:$0xff]  ;;  %v411_v10 = vld [vmem:[#allocation7 + $0x28] sm:$0xff]  ;;  %s401_s30 = scalar_select %p400_p12, %s4266_s28, 1 }
  0xb9   : > { %v3020_v8 = vpack.c.bf16 %v409_v6, %v406_v5  ;;  %v413_v11 = vld [vmem:[#allocation7 + $0x38] sm:$0xff]  ;;  %3019 = vmatprep.subr.bf16.mxu0 %v3018_v3  ;;  %v3084_v12 = vpack.c.bf16 %v411_v10, %v408_v9  ;;  %v416_v13 = vld [vmem:[#allocation7 + $0x50] sm:$0xff]  ;;  %v462_v14 = vld [vmem:[#allocation7 + $0x1c0] sm:$0xff]  ;;  %s4201_s16 = smov 104   ;;  %s2689_s14 = sshll.u32 %s392_s15, 4  ;;  %s4590_s14 = int_to_ptr.vmem [resolvable:$true] %s2689_s14 }
  0xba   : > { %v465_v15 = vld [vmem:[#allocation7 + $0x1d8] sm:$0xff]  ;;  %3083 = vmatprep.subr.bf16.mxu1 %v3082_v7  ;;  %v3022_v16 = vpack.c.bf16 %v416_v13, %v413_v11  ;;  %v412_v18 = vld [vmem:[#allocation7 + $0x30] sm:$0xff]  ;;  %v415_v19 = vld [vmem:[#allocation7 + $0x48] sm:$0xff]  ;;  %s2883_s17 = sshll.u32 %s401_s30, 3  ;;  %s3813_s22 = smul.u32 384, %s4266_s28 }
  0xbb   : > { %3021 = vmatpush1.bf16.msra.mxu0 %v3020_v8  ;;  %v3086_v17 = vpack.c.bf16 %v465_v15, %v462_v14  ;;  %v414_v20 = vld [vmem:[#allocation7 + $0x40] sm:$0xff]  ;;  %3085 = vmatpush3.bf16.msra.mxu1 %v3084_v12  ;;  %v3024_v21 = vpack.c.bf16 %v415_v19, %v412_v18  ;;  %v417_v22 = vld [vmem:[#allocation7 + $0x58] sm:$0xff]  ;;  %v419_v23 = vld [vmem:[#allocation7 + $0x68] sm:$0xff]  ;;  %s403_s21 = scalar_lea.vmem %s4671_s2, %s2883_s17  ;;  %s2670_s9 = scalar_lea.sflag [#allocation4], %s4465_s4 }
  0xbc   : > { %v422_v24 = vld [vmem:[#allocation7 + $0x80] sm:$0xff]  ;;  %3023 = vmatprep.subr.bf16.mxu0 %v3022_v16  ;;  %v3088_v25 = vpack.c.bf16 %v417_v22, %v414_v20  ;;  %v468_v27 = vld [vmem:[#allocation7 + $0x1f0] sm:$0xff]  ;;  %v471_v28 = vld [vmem:[#allocation7 + $0x208] sm:$0xff]  ;;  %s4596_s0 = scalar_lea.hbm %s4675_s6, %s3813_s22  ;;  %s4071_s3 = scalar_lea.vmem %s4590_s14, 384 }
  0xbd   : > { %3087 = vmatprep.subr.bf16.mxu1 %v3086_v17  ;;  %v3026_v26 = vpack.c.bf16 %v422_v24, %v419_v23  ;;  %v418_v29 = vld [vmem:[#allocation7 + $0x60] sm:$0xff]  ;;  %v3090_v30 = vpack.c.bf16 %v471_v28, %v468_v27  ;;  %v421_v31 = vld [vmem:[#allocation7 + $0x78] sm:$0xff]  ;;  %v420_v32 = vld [vmem:[#allocation7 + $0x70] sm:$0xff]  ;;  %p4072_p2 = scmp.ne.s32.totalorder %s4590_s14, %s4071_s3  ;;  %p4702_p1 = scmp.ne.s32.totalorder %s4692_s12, 0 }
  0xbe   : > { %v423_v33 = vld [vmem:[#allocation7 + $0x88] sm:$0xff]  ;;  %v3028_v34 = vpack.c.bf16 %v421_v31, %v418_v29  ;;  %v425_v35 = vld [vmem:[#allocation7 + $0x98] sm:$0xff]  ;;  %v428_v36 = vld [vmem:[#allocation7 + $0xb0] sm:$0xff] }
  0xbf   : > { %3025 = vmatpush1.bf16.msra.mxu0 %v3024_v21  ;;  %v474_v37 = vld [vmem:[#allocation7 + $0x220] sm:$0xff]  ;;  %3089 = vmatpush3.bf16.msra.mxu1 %v3088_v25  ;;  %v3092_v38 = vpack.c.bf16 %v423_v33, %v420_v32  ;;  %v3030_v39 = vpack.c.bf16 %v428_v36, %v425_v35  ;;  %v477_v40 = vld [vmem:[#allocation7 + $0x238] sm:$0xff]  ;;  %v424_v41 = vld [vmem:[#allocation7 + $0x90] sm:$0xff]  ;;  %p4073_p4 = pnand %p4072_p2, %p4702_p1 }
  0xc0   : > { %3027 = vmatprep.subr.bf16.mxu0 %v3026_v26  ;;  %v427_v42 = vld [vmem:[#allocation7 + $0xa8] sm:$0xff]  ;;  %3091 = vmatprep.subr.bf16.mxu1 %v3090_v30  ;;  %v3094_v43 = vpack.c.bf16 %v477_v40, %v474_v37  ;;  %v426_v44 = vld [vmem:[#allocation7 + $0xa0] sm:$0xff]  ;;  %v429_v45 = vld [vmem:[#allocation7 + $0xb8] sm:$0xff] }
  0xc1   : > { %v431_v46 = vld [vmem:[#allocation7 + $0xc8] sm:$0xff]  ;;  %v434_v47 = vld [vmem:[#allocation7 + $0xe0] sm:$0xff]  ;;  %v480_v48 = vld [vmem:[#allocation7 + $0x250] sm:$0xff]  ;;  %v3032_v50 = vpack.c.bf16 %v427_v42, %v424_v41  ;;  %v3096_v51 = vpack.c.bf16 %v429_v45, %v426_v44  ;;  %p4074_p0 = pneg %p4073_p4 }
  0xc2   : > { %v483_v49 = vld [vmem:[#allocation7 + $0x268] sm:$0xff]  ;;  %v3034_v52 = vpack.c.bf16 %v434_v47, %v431_v46  ;;  %v430_v53 = vld [vmem:[#allocation7 + $0xc0] sm:$0xff]  ;;  %v433_v54 = vld [vmem:[#allocation7 + $0xd8] sm:$0xff] }
  0xc3   : > { %3029 = vmatpush1.bf16.msra.mxu0 %v3028_v34  ;;  %3093 = vmatpush3.bf16.msra.mxu1 %v3092_v38  ;;  %v432_v55 = vld [vmem:[#allocation7 + $0xd0] sm:$0xff]  ;;  %v3098_v56 = vpack.c.bf16 %v483_v49, %v480_v48  ;;  %v435_v57 = vld [vmem:[#allocation7 + $0xe8] sm:$0xff]  ;;  %v437_v58 = vld [vmem:[#allocation7 + $0xf8] sm:$0xff]  ;;  %v3036_v62 = vpack.c.bf16 %v433_v54, %v430_v53 }
  0xc4   : > { %3031 = vmatprep.subr.bf16.mxu0 %v3030_v39  ;;  %3095 = vmatprep.subr.bf16.mxu1 %v3094_v43  ;;  %v440_v59 = vld [vmem:[#allocation7 + $0x110] sm:$0xff]  ;;  %v486_v60 = vld [vmem:[#allocation7 + $0x280] sm:$0xff]  ;;  %v489_v61 = vld [vmem:[#allocation7 + $0x298] sm:$0xff]  ;;  %v3100_v63 = vpack.c.bf16 %v435_v57, %v432_v55 }
  0xc5   : > { %v3038_v0 = vpack.c.bf16 %v440_v59, %v437_v58  ;;  %v436_v1 = vld [vmem:[#allocation7 + $0xf0] sm:$0xff]  ;;  %v439_v2 = vld [vmem:[#allocation7 + $0x108] sm:$0xff]  ;;  %v438_v3 = vld [vmem:[#allocation7 + $0x100] sm:$0xff]  ;;  %v3102_v4 = vpack.c.bf16 %v489_v61, %v486_v60 }
  0xc6   : > { %v441_v5 = vld [vmem:[#allocation7 + $0x118] sm:$0xff]  ;;  %v443_v6 = vld [vmem:[#allocation7 + $0x128] sm:$0xff]  ;;  %v446_v7 = vld [vmem:[#allocation7 + $0x140] sm:$0xff]  ;;  %v3040_v10 = vpack.c.bf16 %v439_v2, %v436_v1 }
  0xc7   : > { %3033 = vmatpush1.bf16.msra.mxu0 %v3032_v50  ;;  %3097 = vmatpush3.bf16.msra.mxu1 %v3096_v51  ;;  %v492_v8 = vld [vmem:[#allocation7 + $0x2b0] sm:$0xff]  ;;  %v495_v9 = vld [vmem:[#allocation7 + $0x2c8] sm:$0xff]  ;;  %v442_v11 = vld [vmem:[#allocation7 + $0x120] sm:$0xff]  ;;  %v3104_v12 = vpack.c.bf16 %v441_v5, %v438_v3  ;;  %v3042_v13 = vpack.c.bf16 %v446_v7, %v443_v6 }
  0xc8   : > { %3035 = vmatprep.subr.bf16.mxu0 %v3034_v52  ;;  %3099 = vmatprep.subr.bf16.mxu1 %v3098_v56  ;;  %v445_v14 = vld [vmem:[#allocation7 + $0x138] sm:$0xff]  ;;  %v444_v15 = vld [vmem:[#allocation7 + $0x130] sm:$0xff]  ;;  %v3106_v17 = vpack.c.bf16 %v495_v9, %v492_v8  ;;  %v447_v18 = vld [vmem:[#allocation7 + $0x148] sm:$0xff] }
  0xc9   : > { %v405_v16 = vld [vmem:[%s4469_s11 + $0x8] sm:$0xff]  ;;  %v452_v20 = vld [vmem:[#allocation7 + $0x170] sm:$0xff]  ;;  %v498_v21 = vld [vmem:[#allocation7 + $0x2e0] sm:$0xff]  ;;  %v3044_v23 = vpack.c.bf16 %v445_v14, %v442_v11  ;;  %v3108_v24 = vpack.c.bf16 %v447_v18, %v444_v15 }
  0xca   : > { %v449_v19 = vld [vmem:[#allocation7 + $0x158] sm:$0xff]  ;;  %637 = vmatprep.mubr.f32.mxu1 %v405_v16  ;;  %566 = vmatprep.mubr.f32.mxu0 %v405_v16  ;;  %v448_v26 = vld [vmem:[#allocation7 + $0x150] sm:$0xff]  ;;  %v451_v27 = vld [vmem:[#allocation7 + $0x168] sm:$0xff] }
  0xcb   : > { %3037 = vmatpush1.bf16.msra.mxu0 %v3036_v62  ;;  %3101 = vmatpush3.bf16.msra.mxu1 %v3100_v63  ;;  %v501_v22 = vld [vmem:[#allocation7 + $0x2f8] sm:$0xff]  ;;  %v3046_v25 = vpack.c.bf16 %v452_v20, %v449_v19  ;;  %v450_v28 = vld [vmem:[#allocation7 + $0x160] sm:$0xff]  ;;  %v455_v31 = vld [vmem:[#allocation7 + $0x188] sm:$0xff]  ;;  %v3048_v35 = vpack.c.bf16 %v451_v27, %v448_v26 }
  0xcc   : > { %3039 = vmatprep.subr.bf16.mxu0 %v3038_v0  ;;  %3103 = vmatprep.subr.bf16.mxu1 %v3102_v4  ;;  %v3110_v29 = vpack.c.bf16 %v501_v22, %v498_v21  ;;  %v453_v30 = vld [vmem:[#allocation7 + $0x178] sm:$0xff]  ;;  %v458_v32 = vld [vmem:[#allocation7 + $0x1a0] sm:$0xff]  ;;  %v647_v33 = vld [vmem:[#allocation8 + $0x8] sm:$0xff] }
  0xcd   : > { %v659_v34 = vld [vmem:[#allocation8 + $0x68] sm:$0xff]  ;;  %v3112_v36 = vpack.c.bf16 %v453_v30, %v450_v28  ;;  %v3050_v37 = vpack.c.bf16 %v458_v32, %v455_v31  ;;  %v454_v38 = vld [vmem:[#allocation7 + $0x180] sm:$0xff]  ;;  %v457_v39 = vld [vmem:[#allocation7 + $0x198] sm:$0xff] }
  0xce   : > { %v646_v40 = vld [vmem:[#allocation8] sm:$0xff]  ;;  %v3114_v41 = vpack.c.bf16 %v659_v34, %v647_v33  ;;  %v461_v43 = vld [vmem:[#allocation7 + $0x1b8] sm:$0xff]  ;;  %v464_v44 = vld [vmem:[#allocation7 + $0x1d0] sm:$0xff]  ;;  %v3052_v48 = vpack.c.bf16 %v457_v39, %v454_v38 }
  0xcf   : > { %3041 = vmatpush1.bf16.msra.mxu0 %v3040_v10  ;;  %3105 = vmatpush3.bf16.msra.mxu1 %v3104_v12  ;;  %v658_v42 = vld [vmem:[#allocation8 + $0x60] sm:$0xff]  ;;  %v671_v45 = vld [vmem:[#allocation8 + $0xc8] sm:$0xff]  ;;  %v3054_v50 = vpack.c.bf16 %v464_v44, %v461_v43  ;;  %v460_v51 = vld [vmem:[#allocation7 + $0x1b0] sm:$0xff] }
  0xd0   : > { %3043 = vmatprep.subr.bf16.mxu0 %v3042_v13  ;;  %3107 = vmatprep.subr.bf16.mxu1 %v3106_v17  ;;  %v683_v46 = vld [vmem:[#allocation8 + $0x128] sm:$0xff]  ;;  %v4495_v47 = vld [vmem:[%s4469_s11] sm:$0xff]  ;;  %v3116_v49 = vpack.c.bf16 %v658_v42, %v646_v40  ;;  %v469_v0 = vld [vmem:[#allocation7 + $0x1f8] sm:$0xff] }
  0xd1   : > { %v463_v52 = vld [vmem:[#allocation7 + $0x1c8] sm:$0xff]  ;;  %v670_v53 = vld [vmem:[#allocation8 + $0xc0] sm:$0xff]  ;;  %v3118_v54 = vpack.c.bf16 %v683_v46, %v671_v45  ;;  %v473_v4 = vld [vmem:[#allocation7 + $0x218] sm:$0xff] }
  0xd2   : > { %v682_v55 = vld [vmem:[#allocation8 + $0x120] sm:$0xff]  ;;  %v467_v56 = vld [vmem:[#allocation7 + $0x1e8] sm:$0xff]  ;;  %v3056_v60 = vpack.c.bf16 %v463_v52, %v460_v51  ;;  %v476_v5 = vld [vmem:[#allocation7 + $0x230] sm:$0xff] }
  0xd3   : > { %3045 = vmatpush1.bf16.msra.mxu0 %v3044_v23  ;;  %3109 = vmatpush3.bf16.msra.mxu1 %v3108_v24  ;;  %v470_v57 = vld [vmem:[#allocation7 + $0x200] sm:$0xff]  ;;  %v695_v58 = vld [vmem:[#allocation8 + $0x188] sm:$0xff]  ;;  %v3120_v61 = vpack.c.bf16 %v682_v55, %v670_v53  ;;  %v3062_v10 = vpack.c.bf16 %v476_v5, %v473_v4  ;;  %v472_v11 = vld [vmem:[#allocation7 + $0x210] sm:$0xff] }
  0xd4   : > { %3047 = vmatprep.subr.bf16.mxu0 %v3046_v25  ;;  %3111 = vmatprep.subr.bf16.mxu1 %v3110_v29  ;;  %v707_v59 = vld [vmem:[#allocation8 + $0x1e8] sm:$0xff]  ;;  %v3058_v62 = vpack.c.bf16 %v470_v57, %v467_v56  ;;  %v466_v63 = vld [vmem:[#allocation7 + $0x1e0] sm:$0xff]  ;;  %v481_v24 = vld [vmem:[#allocation7 + $0x258] sm:$0xff] }
  0xd5   : > { %v694_v1 = vld [vmem:[#allocation8 + $0x180] sm:$0xff]  ;;  %v3122_v2 = vpack.c.bf16 %v707_v59, %v695_v58  ;;  %v719_v6 = vld [vmem:[#allocation8 + $0x248] sm:$0xff]  ;;  %v3060_v8 = vpack.c.bf16 %v469_v0, %v466_v63  ;;  %v485_v28 = vld [vmem:[#allocation7 + $0x278] sm:$0xff] }
  0xd6   : > { %v706_v3 = vld [vmem:[#allocation8 + $0x1e0] sm:$0xff]  ;;  %v731_v7 = vld [vmem:[#allocation8 + $0x2a8] sm:$0xff]  ;;  %v488_v29 = vld [vmem:[#allocation7 + $0x290] sm:$0xff] }
  0xd7   : > { %3049 = vmatpush1.bf16.msra.mxu0 %v3048_v35  ;;  %3113 = vmatpush3.bf16.msra.mxu1 %v3112_v36  ;;  %v3124_v9 = vpack.c.bf16 %v706_v3, %v694_v1  ;;  %v475_v12 = vld [vmem:[#allocation7 + $0x228] sm:$0xff]  ;;  %v718_v13 = vld [vmem:[#allocation8 + $0x240] sm:$0xff]  ;;  %v3126_v14 = vpack.c.bf16 %v731_v7, %v719_v6  ;;  %v3070_v34 = vpack.c.bf16 %v488_v29, %v485_v28  ;;  %v484_v35 = vld [vmem:[#allocation7 + $0x270] sm:$0xff] }
  0xd8   : > { %3051 = vmatprep.subr.bf16.mxu0 %v3050_v37  ;;  %3115 = vmatprep.subr.bf16.mxu1 %v3114_v41  ;;  %v730_v15 = vld [vmem:[#allocation8 + $0x2a0] sm:$0xff]  ;;  %v479_v16 = vld [vmem:[#allocation7 + $0x248] sm:$0xff]  ;;  %v3064_v20 = vpack.c.bf16 %v475_v12, %v472_v11  ;;  %v497_v53 = vld [vmem:[#allocation7 + $0x2d8] sm:$0xff] }
  0xd9   : > { %v482_v17 = vld [vmem:[#allocation7 + $0x260] sm:$0xff]  ;;  %v743_v18 = vld [vmem:[#allocation8 + $0x308] sm:$0xff]  ;;  %v3128_v21 = vpack.c.bf16 %v730_v15, %v718_v13  ;;  %v649_v1 = vld [vmem:[#allocation8 + $0x18] sm:$0xff] }
  0xda   : > { %638 = vmatmul.mubr.f32.vlgmr.msra.gmra.mrb[0].mxu1 %v4495_v47  ;;  %v755_v19 = vld [vmem:[#allocation8 + $0x368] sm:$0xff]  ;;  %v3066_v22 = vpack.c.bf16 %v482_v17, %v479_v16  ;;  %v478_v23 = vld [vmem:[#allocation7 + $0x240] sm:$0xff]  ;;  %v673_v13 = vld [vmem:[#allocation8 + $0xd8] sm:$0xff] }
  0xdb   : > { %3053 = vmatpush1.bf16.msra.mxu0 %v3052_v48  ;;  %3117 = vmatpush1.bf16.msra.mxu1 %v3116_v49  ;;  %v742_v25 = vld [vmem:[#allocation8 + $0x300] sm:$0xff]  ;;  %v3130_v26 = vpack.c.bf16 %v755_v19, %v743_v18  ;;  %v767_v30 = vld [vmem:[#allocation8 + $0x3c8] sm:$0xff]  ;;  %v3068_v32 = vpack.c.bf16 %v481_v24, %v478_v23  ;;  %v493_v49 = vld [vmem:[#allocation7 + $0x2b8] sm:$0xff] }
  0xdc   : > { %3055 = vmatprep.subr.bf16.mxu0 %v3054_v50  ;;  %3119 = vmatprep.subr.bf16.mxu1 %v3118_v54  ;;  %v754_v27 = vld [vmem:[#allocation8 + $0x360] sm:$0xff]  ;;  %v779_v31 = vld [vmem:[#allocation8 + $0x428] sm:$0xff]  ;;  %v500_v54 = vld [vmem:[#allocation7 + $0x2f0] sm:$0xff] }
  0xdd   : > { %v3132_v33 = vpack.c.bf16 %v754_v27, %v742_v25  ;;  %v487_v36 = vld [vmem:[#allocation7 + $0x288] sm:$0xff]  ;;  %v766_v37 = vld [vmem:[#allocation8 + $0x3c0] sm:$0xff]  ;;  %v3134_v38 = vpack.c.bf16 %v779_v31, %v767_v30  ;;  %v3078_v59 = vpack.c.bf16 %v500_v54, %v497_v53  ;;  %v4499_v18 = vld [vmem:[%s4479_s20 + $0x8] sm:$0xff] }
  0xde   : > { %v778_v39 = vld [vmem:[#allocation8 + $0x420] sm:$0xff]  ;;  %v491_v40 = vld [vmem:[#allocation7 + $0x2a8] sm:$0xff]  ;;  %v3072_v44 = vpack.c.bf16 %v487_v36, %v484_v35  ;;  %v684_v23 = vld [vmem:[#allocation8 + $0x130] sm:$0xff]  ;;  %1146 = vmatprep.mubr.f32.mxu1 %v4499_v18 }
  0xdf   : > { %3057 = vmatpush1.bf16.msra.mxu0 %v3056_v60  ;;  %3121 = vmatpush1.bf16.msra.mxu1 %v3120_v61  ;;  %v494_v41 = vld [vmem:[#allocation7 + $0x2c0] sm:$0xff]  ;;  %v791_v42 = vld [vmem:[#allocation8 + $0x488] sm:$0xff]  ;;  %v3136_v45 = vpack.c.bf16 %v778_v39, %v766_v37  ;;  %v496_v60 = vld [vmem:[#allocation7 + $0x2d0] sm:$0xff] }
  0xe0   : > { %3059 = vmatprep.subr.bf16.mxu0 %v3058_v62  ;;  %3123 = vmatprep.subr.bf16.mxu1 %v3122_v2  ;;  %v803_v43 = vld [vmem:[#allocation8 + $0x4e8] sm:$0xff]  ;;  %v3074_v46 = vpack.c.bf16 %v494_v41, %v491_v40  ;;  %v490_v48 = vld [vmem:[#allocation7 + $0x2a0] sm:$0xff]  ;;  %v661_v2 = vld [vmem:[#allocation8 + $0x78] sm:$0xff] }
  0xe1   : > { %v790_v50 = vld [vmem:[#allocation8 + $0x480] sm:$0xff]  ;;  %v3138_v51 = vpack.c.bf16 %v803_v43, %v791_v42  ;;  %v815_v55 = vld [vmem:[#allocation8 + $0x548] sm:$0xff]  ;;  %v3076_v57 = vpack.c.bf16 %v493_v49, %v490_v48  ;;  %v3186_v7 = vpack.c.bf16 %v661_v2, %v649_v1  ;;  %v709_v27 = vld [vmem:[#allocation8 + $0x1f8] sm:$0xff] }
  0xe2   : > { %v802_v52 = vld [vmem:[#allocation8 + $0x4e0] sm:$0xff]  ;;  %v827_v56 = vld [vmem:[#allocation8 + $0x5a8] sm:$0xff]  ;;  %v708_v35 = vld [vmem:[#allocation8 + $0x1f0] sm:$0xff] }
  0xe3   : > { %3061 = vmatpush1.bf16.msra.mxu0 %v3060_v8  ;;  %3125 = vmatpush1.bf16.msra.mxu1 %v3124_v9  ;;  %v3140_v58 = vpack.c.bf16 %v802_v52, %v790_v50  ;;  %v499_v61 = vld [vmem:[#allocation7 + $0x2e8] sm:$0xff]  ;;  %v814_v62 = vld [vmem:[#allocation8 + $0x540] sm:$0xff]  ;;  %v3142_v63 = vpack.c.bf16 %v827_v56, %v815_v55  ;;  %v648_v9 = vld [vmem:[#allocation8 + $0x10] sm:$0xff] }
  0xe4   : > { %3063 = vmatprep.subr.bf16.mxu0 %v3062_v10  ;;  %3127 = vmatprep.subr.bf16.mxu1 %v3126_v14  ;;  %v826_v0 = vld [vmem:[#allocation8 + $0x5a0] sm:$0xff]  ;;  %v839_v3 = vld [vmem:[#allocation8 + $0x608] sm:$0xff]  ;;  %v3080_v5 = vpack.c.bf16 %v499_v61, %v496_v60  ;;  %v660_v10 = vld [vmem:[#allocation8 + $0x70] sm:$0xff] }
  0xe5   : > { %v851_v4 = vld [vmem:[#allocation8 + $0x668] sm:$0xff]  ;;  %v3144_v6 = vpack.c.bf16 %v826_v0, %v814_v62  ;;  %v838_v8 = vld [vmem:[#allocation8 + $0x600] sm:$0xff]  ;;  %v685_v14 = vld [vmem:[#allocation8 + $0x138] sm:$0xff]  ;;  %v3188_v17 = vpack.c.bf16 %v660_v10, %v648_v9 }
  0xe6   : > { %v3146_v11 = vpack.c.bf16 %v851_v4, %v839_v3  ;;  %v850_v12 = vld [vmem:[#allocation8 + $0x660] sm:$0xff]  ;;  %v863_v15 = vld [vmem:[#allocation8 + $0x6c8] sm:$0xff]  ;;  %v733_v39 = vld [vmem:[#allocation8 + $0x2b8] sm:$0xff] }
  0xe7   : > { %3065 = vmatpush1.bf16.msra.mxu0 %v3064_v20  ;;  %3129 = vmatpush1.bf16.msra.mxu1 %v3128_v21  ;;  %v875_v16 = vld [vmem:[#allocation8 + $0x728] sm:$0xff]  ;;  %v3148_v19 = vpack.c.bf16 %v850_v12, %v838_v8  ;;  %v3190_v20 = vpack.c.bf16 %v685_v14, %v673_v13  ;;  %v862_v21 = vld [vmem:[#allocation8 + $0x6c0] sm:$0xff]  ;;  %v745_v50 = vld [vmem:[#allocation8 + $0x318] sm:$0xff] }
  0xe8   : > { %3067 = vmatprep.subr.bf16.mxu0 %v3066_v22  ;;  %3131 = vmatprep.subr.bf16.mxu1 %v3130_v26  ;;  %v672_v22 = vld [vmem:[#allocation8 + $0xd0] sm:$0xff]  ;;  %v3150_v24 = vpack.c.bf16 %v875_v16, %v863_v15  ;;  %v874_v25 = vld [vmem:[#allocation8 + $0x720] sm:$0xff]  ;;  %v697_v26 = vld [vmem:[#allocation8 + $0x198] sm:$0xff] }
  0xe9   : > { %v887_v28 = vld [vmem:[#allocation8 + $0x788] sm:$0xff]  ;;  %v3192_v30 = vpack.c.bf16 %v684_v23, %v672_v22  ;;  %v3152_v31 = vpack.c.bf16 %v874_v25, %v862_v21  ;;  %v898_v37 = vld [vmem:[#allocation8 + $0x7e0] sm:$0xff]  ;;  %v769_v62 = vld [vmem:[#allocation8 + $0x3d8] sm:$0xff] }
  0xea   : > { %v899_v29 = vld [vmem:[#allocation8 + $0x7e8] sm:$0xff]  ;;  %v922_v49 = vld [vmem:[#allocation8 + $0x8a0] sm:$0xff]  ;;  %v793_v10 = vld [vmem:[#allocation8 + $0x498] sm:$0xff] }
  0xeb   : > { %3069 = vmatpush1.bf16.msra.mxu0 %v3068_v32  ;;  %3133 = vmatpush1.bf16.msra.mxu1 %v3132_v33  ;;  %v3194_v32 = vpack.c.bf16 %v709_v27, %v697_v26  ;;  %v886_v33 = vld [vmem:[#allocation8 + $0x780] sm:$0xff]  ;;  %v3154_v36 = vpack.c.bf16 %v899_v29, %v887_v28  ;;  %v911_v40 = vld [vmem:[#allocation8 + $0x848] sm:$0xff]  ;;  %v817_v23 = vld [vmem:[#allocation8 + $0x558] sm:$0xff] }
  0xec   : > { %3071 = vmatprep.subr.bf16.mxu0 %v3070_v34  ;;  %3135 = vmatprep.subr.bf16.mxu1 %v3134_v38  ;;  %v696_v34 = vld [vmem:[#allocation8 + $0x190] sm:$0xff]  ;;  %v721_v38 = vld [vmem:[#allocation8 + $0x258] sm:$0xff]  ;;  %v3156_v42 = vpack.c.bf16 %v898_v37, %v886_v33  ;;  %v935_v52 = vld [vmem:[#allocation8 + $0x908] sm:$0xff] }
  0xed   : > { %v3196_v41 = vpack.c.bf16 %v708_v35, %v696_v34  ;;  %v3198_v43 = vpack.c.bf16 %v733_v39, %v721_v38  ;;  %v947_v53 = vld [vmem:[#allocation8 + $0x968] sm:$0xff]  ;;  %v946_v61 = vld [vmem:[#allocation8 + $0x960] sm:$0xff]  ;;  %v841_v35 = vld [vmem:[#allocation8 + $0x618] sm:$0xff] }
  0xee   : > { %v3162_v60 = vpack.c.bf16 %v947_v53, %v935_v52  ;;  %v959_v0 = vld [vmem:[#allocation8 + $0x9c8] sm:$0xff]  ;;  %v970_v9 = vld [vmem:[#allocation8 + $0xa20] sm:$0xff] }
  0xef   : > { %3073 = vmatpush1.bf16.msra.mxu0 %v3072_v44  ;;  %3137 = vmatpush1.bf16.msra.mxu1 %v3136_v45  ;;  %v910_v44 = vld [vmem:[#allocation8 + $0x840] sm:$0xff]  ;;  %v720_v45 = vld [vmem:[#allocation8 + $0x250] sm:$0xff]  ;;  %v971_v1 = vld [vmem:[#allocation8 + $0xa28] sm:$0xff] }
  0xf0   : > { %3075 = vmatprep.subr.bf16.mxu0 %v3074_v46  ;;  %3139 = vmatprep.subr.bf16.mxu1 %v3138_v51  ;;  %v732_v46 = vld [vmem:[#allocation8 + $0x2b0] sm:$0xff]  ;;  %v757_v51 = vld [vmem:[#allocation8 + $0x378] sm:$0xff]  ;;  %v3160_v55 = vpack.c.bf16 %v922_v49, %v910_v44  ;;  %v3166_v8 = vpack.c.bf16 %v971_v1, %v959_v0  ;;  %v983_v12 = vld [vmem:[#allocation8 + $0xa88] sm:$0xff] }
  0xf1   : > { %v3200_v54 = vpack.c.bf16 %v732_v46, %v720_v45  ;;  %v3202_v56 = vpack.c.bf16 %v757_v51, %v745_v50  ;;  %v995_v13 = vld [vmem:[#allocation8 + $0xae8] sm:$0xff]  ;;  %v994_v22 = vld [vmem:[#allocation8 + $0xae0] sm:$0xff]  ;;  %v865_v46 = vld [vmem:[#allocation8 + $0x6d8] sm:$0xff] }
  0xf2   : > { %v3170_v21 = vpack.c.bf16 %v995_v13, %v983_v12  ;;  %v1007_v25 = vld [vmem:[#allocation8 + $0xb48] sm:$0xff]  ;;  %v1018_v34 = vld [vmem:[#allocation8 + $0xba0] sm:$0xff]  ;;  %v1069_v12 = vld [vmem:[#allocation8 + $0xd38] sm:$0xff] }
  0xf3   : > { %3077 = vmatpush1.bf16.msra.mxu0 %v3076_v57  ;;  %3141 = vmatpush1.bf16.msra.mxu1 %v3140_v58  ;;  %v934_v57 = vld [vmem:[#allocation8 + $0x900] sm:$0xff]  ;;  %v744_v58 = vld [vmem:[#allocation8 + $0x310] sm:$0xff]  ;;  %v1019_v26 = vld [vmem:[#allocation8 + $0xba8] sm:$0xff] }
  0xf4   : > { %3079 = vmatprep.subr.bf16.mxu0 %v3078_v59  ;;  %3143 = vmatprep.subr.bf16.mxu1 %v3142_v63  ;;  %v756_v59 = vld [vmem:[#allocation8 + $0x370] sm:$0xff]  ;;  %v781_v63 = vld [vmem:[#allocation8 + $0x438] sm:$0xff]  ;;  %v3164_v3 = vpack.c.bf16 %v946_v61, %v934_v57  ;;  %v3174_v33 = vpack.c.bf16 %v1019_v26, %v1007_v25  ;;  %v1031_v37 = vld [vmem:[#allocation8 + $0xc08] sm:$0xff] }
  0xf5   : > { %v3204_v2 = vpack.c.bf16 %v756_v59, %v744_v58  ;;  %v3206_v4 = vpack.c.bf16 %v781_v63, %v769_v62  ;;  %v1043_v38 = vld [vmem:[#allocation8 + $0xc68] sm:$0xff]  ;;  %v1042_v45 = vld [vmem:[#allocation8 + $0xc60] sm:$0xff]  ;;  %v876_v57 = vld [vmem:[#allocation8 + $0x730] sm:$0xff] }
  0xf6   : > { %v3178_v44 = vpack.c.bf16 %v1043_v38, %v1031_v37  ;;  %v1055_v49 = vld [vmem:[#allocation8 + $0xcc8] sm:$0xff]  ;;  %v1066_v59 = vld [vmem:[#allocation8 + $0xd20] sm:$0xff]  ;;  %v901_v61 = vld [vmem:[#allocation8 + $0x7f8] sm:$0xff] }
  0xf7   : > { %3081 = vmatpush1.bf16.msra.mxu0 %v3080_v5  ;;  %3145 = vmatpush1.bf16.msra.mxu1 %v3144_v6  ;;  %v958_v5 = vld [vmem:[#allocation8 + $0x9c0] sm:$0xff]  ;;  %v768_v6 = vld [vmem:[#allocation8 + $0x3d0] sm:$0xff]  ;;  %v1067_v50 = vld [vmem:[#allocation8 + $0xd28] sm:$0xff] }
  0xf8   : > { %3187 = vmatprep.subr.bf16.mxu0 %v3186_v7  ;;  %3147 = vmatprep.subr.bf16.mxu1 %v3146_v11  ;;  %v780_v7 = vld [vmem:[#allocation8 + $0x430] sm:$0xff]  ;;  %v805_v11 = vld [vmem:[#allocation8 + $0x4f8] sm:$0xff]  ;;  %v3168_v15 = vpack.c.bf16 %v970_v9, %v958_v5  ;;  %v3182_v58 = vpack.c.bf16 %v1067_v50, %v1055_v49  ;;  %v651_v25 = vld [vmem:[#allocation8 + $0x28] sm:$0xff] }
  0xf9   : > { %v3208_v14 = vpack.c.bf16 %v780_v7, %v768_v6  ;;  %v3210_v16 = vpack.c.bf16 %v805_v11, %v793_v10  ;;  %v4505_v51 = vld [vmem:[%s4479_s20] sm:$0xff]  ;;  %v1033_v62 = vld [vmem:[#allocation8 + $0xc18] sm:$0xff]  ;;  %v4194_v6 = vmov 0.0  }
  0xfa   : > { %567 = vmatmul.mubr.f32.vlgmr.msra.gmra.mrb[0].mxu0 %v4495_v47  ;;  %v923_v47 = vld [vmem:[#allocation8 + $0x8a8] sm:$0xff]  ;;  %v1045_v63 = vld [vmem:[#allocation8 + $0xc78] sm:$0xff]  ;;  %v1032_v5 = vld [vmem:[#allocation8 + $0xc10] sm:$0xff] }
  0xfb   : > { %3189 = vmatpush1.bf16.msra.mxu0 %v3188_v17  ;;  %1288 = vmatprep.mubr.f32.mxu0 %v4499_v18  ;;  %v3158_v48 = vpack.c.bf16 %v923_v47, %v911_v40  ;;  %v982_v17 = vld [vmem:[#allocation8 + $0xa80] sm:$0xff]  ;;  %v3250_v7 = vpack.c.bf16 %v1045_v63, %v1033_v62  ;;  %v913_v9 = vld [vmem:[#allocation8 + $0x858] sm:$0xff]  ;;  %v663_v26 = vld [vmem:[#allocation8 + $0x88] sm:$0xff] }
  0xfc   : > { %3149 = vmatpush1.bf16.msra.mxu1 %v3148_v19  ;;  %3191 = vmatprep.subr.bf16.mxu0 %v3190_v20  ;;  %v792_v19 = vld [vmem:[#allocation8 + $0x490] sm:$0xff]  ;;  %v3172_v28 = vpack.c.bf16 %v994_v22, %v982_v17  ;;  %v925_v10 = vld [vmem:[#allocation8 + $0x8b8] sm:$0xff]  ;;  %v675_v37 = vld [vmem:[#allocation8 + $0xe8] sm:$0xff] }
  0xfd   : > { %3151 = vmatprep.subr.bf16.mxu1 %v3150_v24  ;;  %v804_v20 = vld [vmem:[#allocation8 + $0x4f0] sm:$0xff]  ;;  %v829_v24 = vld [vmem:[#allocation8 + $0x5b8] sm:$0xff]  ;;  %v687_v38 = vld [vmem:[#allocation8 + $0x148] sm:$0xff] }
  0xfe   : > { %v3212_v27 = vpack.c.bf16 %v804_v20, %v792_v19  ;;  %v3214_v29 = vpack.c.bf16 %v829_v24, %v817_v23  ;;  %v1057_v11 = vld [vmem:[#allocation8 + $0xcd8] sm:$0xff]  ;;  %v912_v17 = vld [vmem:[#allocation8 + $0x850] sm:$0xff]  ;;  %v699_v49 = vld [vmem:[#allocation8 + $0x1a8] sm:$0xff] }
  0xff   : > { %3193 = vmatpush1.bf16.msra.mxu0 %v3192_v30  ;;  %v1006_v30 = vld [vmem:[#allocation8 + $0xb40] sm:$0xff]  ;;  %v924_v19 = vld [vmem:[#allocation8 + $0x8b0] sm:$0xff]  ;;  %v937_v23 = vld [vmem:[#allocation8 + $0x918] sm:$0xff] }
 0x100   : > { %3153 = vmatpush1.bf16.msra.mxu1 %v3152_v31  ;;  %3195 = vmatprep.subr.bf16.mxu0 %v3194_v32  ;;  %v816_v31 = vld [vmem:[#allocation8 + $0x550] sm:$0xff]  ;;  %v3176_v40 = vpack.c.bf16 %v1018_v34, %v1006_v30  ;;  %v4510_v13 = vld [vmem:[%s4479_s20 + $0x10] sm:$0xff]  ;;  %v711_v50 = vld [vmem:[#allocation8 + $0x208] sm:$0xff] }
 0x101   : > { %3155 = vmatprep.subr.bf16.mxu1 %v3154_v36  ;;  %v828_v32 = vld [vmem:[#allocation8 + $0x5b0] sm:$0xff]  ;;  %v853_v36 = vld [vmem:[#allocation8 + $0x678] sm:$0xff]  ;;  %v662_v34 = vld [vmem:[#allocation8 + $0x80] sm:$0xff] }
 0x102   : > { %v3216_v39 = vpack.c.bf16 %v828_v32, %v816_v31  ;;  %v3218_v47 = vpack.c.bf16 %v853_v36, %v841_v35  ;;  %v1056_v20 = vld [vmem:[#allocation8 + $0xcd0] sm:$0xff]  ;;  %v949_v24 = vld [vmem:[#allocation8 + $0x978] sm:$0xff]  ;;  %v650_v32 = vld [vmem:[#allocation8 + $0x20] sm:$0xff] }
 0x103   : > { %3197 = vmatpush1.bf16.msra.mxu0 %v3196_v41  ;;  %v1030_v41 = vld [vmem:[#allocation8 + $0xc00] sm:$0xff]  ;;  %v1068_v22 = vld [vmem:[#allocation8 + $0xd30] sm:$0xff]  ;;  %v961_v35 = vld [vmem:[#allocation8 + $0x9d8] sm:$0xff] }
 0x104   : > { %3157 = vmatpush1.bf16.msra.mxu1 %v3156_v42  ;;  %3199 = vmatprep.subr.bf16.mxu0 %v3198_v43  ;;  %v840_v42 = vld [vmem:[#allocation8 + $0x610] sm:$0xff]  ;;  %v3180_v53 = vpack.c.bf16 %v1042_v45, %v1030_v41  ;;  %v973_v36 = vld [vmem:[#allocation8 + $0xa38] sm:$0xff]  ;;  %v686_v45 = vld [vmem:[#allocation8 + $0x140] sm:$0xff] }
 0x105   : > { %3159 = vmatprep.subr.bf16.mxu1 %v3158_v48  ;;  %v852_v43 = vld [vmem:[#allocation8 + $0x670] sm:$0xff]  ;;  %v877_v48 = vld [vmem:[#allocation8 + $0x738] sm:$0xff]  ;;  %v723_v62 = vld [vmem:[#allocation8 + $0x268] sm:$0xff] }
 0x106   : > { %v3220_v52 = vpack.c.bf16 %v852_v43, %v840_v42  ;;  %v936_v30 = vld [vmem:[#allocation8 + $0x910] sm:$0xff]  ;;  %v674_v43 = vld [vmem:[#allocation8 + $0xe0] sm:$0xff]  ;;  %v735_v63 = vld [vmem:[#allocation8 + $0x2c8] sm:$0xff] }
 0x107   : > { %3201 = vmatpush1.bf16.msra.mxu0 %v3200_v54  ;;  %v3222_v54 = vpack.c.bf16 %v877_v48, %v865_v46  ;;  %v948_v31 = vld [vmem:[#allocation8 + $0x970] sm:$0xff]  ;;  %v985_v46 = vld [vmem:[#allocation8 + $0xa98] sm:$0xff] }
 0x108   : > { %3161 = vmatpush1.bf16.msra.mxu1 %v3160_v55  ;;  %3203 = vmatprep.subr.bf16.mxu0 %v3202_v56  ;;  %v1054_v55 = vld [vmem:[#allocation8 + $0xcc0] sm:$0xff]  ;;  %v864_v56 = vld [vmem:[#allocation8 + $0x6d0] sm:$0xff]  ;;  %v997_v48 = vld [vmem:[#allocation8 + $0xaf8] sm:$0xff] }
 0x109   : > { %3163 = vmatprep.subr.bf16.mxu1 %v3162_v60  ;;  %v889_v60 = vld [vmem:[#allocation8 + $0x798] sm:$0xff]  ;;  %v3224_v0 = vpack.c.bf16 %v876_v57, %v864_v56  ;;  %v3184_v1 = vpack.c.bf16 %v1066_v59, %v1054_v55  ;;  %v960_v41 = vld [vmem:[#allocation8 + $0x9d0] sm:$0xff]  ;;  %v698_v57 = vld [vmem:[#allocation8 + $0x1a0] sm:$0xff] }
 0x10a   : > { %v972_v42 = vld [vmem:[#allocation8 + $0xa30] sm:$0xff]  ;;  %v710_v59 = vld [vmem:[#allocation8 + $0x200] sm:$0xff] }
 0x10b   : > { %3205 = vmatpush1.bf16.msra.mxu0 %v3204_v2  ;;  %v3226_v2 = vpack.c.bf16 %v901_v61, %v889_v60  ;;  %v984_v55 = vld [vmem:[#allocation8 + $0xa90] sm:$0xff]  ;;  %v1009_v60 = vld [vmem:[#allocation8 + $0xb58] sm:$0xff] }
 0x10c   : > { %3165 = vmatpush1.bf16.msra.mxu1 %v3164_v3  ;;  %3207 = vmatprep.subr.bf16.mxu0 %v3206_v4  ;;  %v888_v3 = vld [vmem:[#allocation8 + $0x790] sm:$0xff]  ;;  %v1021_v61 = vld [vmem:[#allocation8 + $0xbb8] sm:$0xff] }
 0x10d   : > { %3167 = vmatprep.subr.bf16.mxu1 %v3166_v8  ;;  %v900_v4 = vld [vmem:[#allocation8 + $0x7f0] sm:$0xff] }
 0x10e   : > { %v1044_v8 = vld [vmem:[#allocation8 + $0xc70] sm:$0xff] }
 0x10f   : > { %3209 = vmatpush1.bf16.msra.mxu0 %v3208_v14  ;;  %v3228_v14 = vpack.c.bf16 %v900_v4, %v888_v3  ;;  %v996_v56 = vld [vmem:[#allocation8 + $0xaf0] sm:$0xff] }
 0x110   : > { %3169 = vmatpush1.bf16.msra.mxu1 %v3168_v15  ;;  %3211 = vmatprep.subr.bf16.mxu0 %v3210_v16  ;;  %v3252_v15 = vpack.c.bf16 %v1044_v8, %v1032_v5  ;;  %v3230_v16 = vpack.c.bf16 %v925_v10, %v913_v9  ;;  %v1008_v3 = vld [vmem:[#allocation8 + $0xb50] sm:$0xff]  ;;  %v722_v5 = vld [vmem:[#allocation8 + $0x260] sm:$0xff]  ;;  %v653_v9 = vld [vmem:[#allocation8 + $0x38] sm:$0xff] }
 0x111   : > { %3171 = vmatprep.subr.bf16.mxu1 %v3170_v21  ;;  %v3254_v21 = vpack.c.bf16 %v1069_v12, %v1057_v11  ;;  %v1020_v4 = vld [vmem:[#allocation8 + $0xbb0] sm:$0xff]  ;;  %v734_v8 = vld [vmem:[#allocation8 + $0x2c0] sm:$0xff]  ;;  %v665_v10 = vld [vmem:[#allocation8 + $0x98] sm:$0xff] }
 0x112   : > { %v747_v11 = vld [vmem:[#allocation8 + $0x328] sm:$0xff] }
 0x113   : > { %3213 = vmatpush1.bf16.msra.mxu0 %v3212_v27  ;;  %v3232_v27 = vpack.c.bf16 %v924_v19, %v912_v17  ;;  %v759_v12 = vld [vmem:[#allocation8 + $0x388] sm:$0xff]  ;;  %v746_v17 = vld [vmem:[#allocation8 + $0x320] sm:$0xff]  ;;  %v652_v19 = vld [vmem:[#allocation8 + $0x30] sm:$0xff] }
 0x114   : > { %3173 = vmatpush1.bf16.msra.mxu1 %v3172_v28  ;;  %3215 = vmatprep.subr.bf16.mxu0 %v3214_v29  ;;  %v3256_v28 = vpack.c.bf16 %v1068_v22, %v1056_v20  ;;  %v3234_v29 = vpack.c.bf16 %v949_v24, %v937_v23  ;;  %v664_v20 = vld [vmem:[#allocation8 + $0x90] sm:$0xff]  ;;  %v758_v22 = vld [vmem:[#allocation8 + $0x380] sm:$0xff]  ;;  %v677_v23 = vld [vmem:[#allocation8 + $0xf8] sm:$0xff] }
 0x115   : > { %3175 = vmatprep.subr.bf16.mxu1 %v3174_v33  ;;  %v3258_v33 = vpack.c.bf16 %v663_v26, %v651_v25  ;;  %v689_v24 = vld [vmem:[#allocation8 + $0x158] sm:$0xff]  ;;  %v771_v25 = vld [vmem:[#allocation8 + $0x3e8] sm:$0xff] }
 0x116   : > { %v783_v26 = vld [vmem:[#allocation8 + $0x448] sm:$0xff] }
 0x117   : > { %3217 = vmatpush1.bf16.msra.mxu0 %v3216_v39  ;;  %v3236_v39 = vpack.c.bf16 %v948_v31, %v936_v30  ;;  %v770_v30 = vld [vmem:[#allocation8 + $0x3e0] sm:$0xff]  ;;  %v676_v31 = vld [vmem:[#allocation8 + $0xf0] sm:$0xff] }
 0x118   : > { %3177 = vmatpush1.bf16.msra.mxu1 %v3176_v40  ;;  %3219 = vmatprep.subr.bf16.mxu0 %v3218_v47  ;;  %v3260_v40 = vpack.c.bf16 %v662_v34, %v650_v32  ;;  %v3238_v47 = vpack.c.bf16 %v973_v36, %v961_v35  ;;  %v688_v32 = vld [vmem:[#allocation8 + $0x150] sm:$0xff]  ;;  %v782_v34 = vld [vmem:[#allocation8 + $0x440] sm:$0xff]  ;;  %v701_v35 = vld [vmem:[#allocation8 + $0x1b8] sm:$0xff] }
 0x119   : > { %3179 = vmatprep.subr.bf16.mxu1 %v3178_v44  ;;  %v3262_v44 = vpack.c.bf16 %v687_v38, %v675_v37  ;;  %v713_v36 = vld [vmem:[#allocation8 + $0x218] sm:$0xff]  ;;  %v795_v37 = vld [vmem:[#allocation8 + $0x4a8] sm:$0xff] }
 0x11a   : > { %v807_v38 = vld [vmem:[#allocation8 + $0x508] sm:$0xff] }
 0x11b   : > { %1147 = vmatmul.mubr.f32.vlgmr.msra.gmra.mrb[2].mxu1 %v4505_v51  ;;  %3221 = vmatpush1.bf16.msra.mxu0 %v3220_v52  ;;  %v3240_v52 = vpack.c.bf16 %v972_v42, %v960_v41  ;;  %v794_v41 = vld [vmem:[#allocation8 + $0x4a0] sm:$0xff]  ;;  %v700_v42 = vld [vmem:[#allocation8 + $0x1b0] sm:$0xff] }
 0x11c   : > { %3181 = vmatpush1.bf16.msra.mxu1 %v3180_v53  ;;  %3223 = vmatprep.subr.bf16.mxu0 %v3222_v54  ;;  %v3264_v53 = vpack.c.bf16 %v686_v45, %v674_v43  ;;  %v3242_v54 = vpack.c.bf16 %v997_v48, %v985_v46  ;;  %v712_v43 = vld [vmem:[#allocation8 + $0x210] sm:$0xff]  ;;  %v806_v45 = vld [vmem:[#allocation8 + $0x500] sm:$0xff]  ;;  %v725_v46 = vld [vmem:[#allocation8 + $0x278] sm:$0xff] }
 0x11d   : > { %3183 = vmatprep.subr.bf16.mxu1 %v3182_v58  ;;  %1217 = vmatprep.mubr.f32.mxu1 %v4194_v6  ;;  %v3266_v58 = vpack.c.bf16 %v711_v50, %v699_v49  ;;  %v737_v48 = vld [vmem:[#allocation8 + $0x2d8] sm:$0xff]  ;;  %v819_v49 = vld [vmem:[#allocation8 + $0x568] sm:$0xff] }
 0x11e   : > { %v831_v50 = vld [vmem:[#allocation8 + $0x5c8] sm:$0xff] }
 0x11f   : > { %3225 = vmatpush1.bf16.msra.mxu0 %v3224_v0  ;;  %v3244_v0 = vpack.c.bf16 %v996_v56, %v984_v55  ;;  %v724_v55 = vld [vmem:[#allocation8 + $0x270] sm:$0xff] }
 0x120   : > { %3185 = vmatpush1.bf16.msra.mxu1 %v3184_v1  ;;  %3227 = vmatprep.subr.bf16.mxu0 %v3226_v2  ;;  %v3268_v1 = vpack.c.bf16 %v710_v59, %v698_v57  ;;  %v3246_v2 = vpack.c.bf16 %v1021_v61, %v1009_v60  ;;  %v736_v56 = vld [vmem:[#allocation8 + $0x2d0] sm:$0xff]  ;;  %v3286_v57 = vpack.c.bf16 %v831_v50, %v819_v49  ;;  %v749_v59 = vld [vmem:[#allocation8 + $0x338] sm:$0xff]  ;;  %v843_v61 = vld [vmem:[#allocation8 + $0x628] sm:$0xff] }
 0x121   : > { %3251 = vmatprep.subr.bf16.mxu1 %v3250_v7  ;;  %v3270_v7 = vpack.c.bf16 %v735_v63, %v723_v62  ;;  %v761_v60 = vld [vmem:[#allocation8 + $0x398] sm:$0xff]  ;;  %v855_v62 = vld [vmem:[#allocation8 + $0x688] sm:$0xff]  ;;  %v3344_v63 = vpack.c.bf16 %v736_v56, %v724_v55  ;;  %v856_v55 = vld [vmem:[#allocation8 + $0x690] sm:$0xff] }
 0x122   : > { %v951_v49 = vld [vmem:[#allocation8 + $0x988] sm:$0xff] }
 0x123   : > { %2884 = vmatmul.mubr.msk.f32.vlgmr.msra.gmra.mrb[2].mxu1 %vm1078_vm0, %v4510_v13  ;;  %3229 = vmatpush1.bf16.msra.mxu0 %v3228_v14  ;;  %v3248_v14 = vpack.c.bf16 %v1020_v4, %v1008_v3  ;;  %v748_v3 = vld [vmem:[#allocation8 + $0x330] sm:$0xff] }
 0x124   : > { %3253 = vmatpush1.bf16.msra.mxu1 %v3252_v15  ;;  %3231 = vmatprep.subr.bf16.mxu0 %v3230_v16  ;;  %v3272_v15 = vpack.c.bf16 %v734_v8, %v722_v5  ;;  %v3330_v16 = vpack.c.bf16 %v665_v10, %v653_v9  ;;  %v760_v4 = vld [vmem:[#allocation8 + $0x390] sm:$0xff]  ;;  %v3290_v5 = vpack.c.bf16 %v855_v62, %v843_v61  ;;  %v773_v8 = vld [vmem:[#allocation8 + $0x3f8] sm:$0xff]  ;;  %v867_v10 = vld [vmem:[#allocation8 + $0x6e8] sm:$0xff] }
 0x125   : > { %3255 = vmatprep.subr.bf16.mxu1 %v3254_v21  ;;  %1359 = vmatprep.mubr.f32.mxu1 %v4194_v6  ;;  %v3274_v21 = vpack.c.bf16 %v759_v12, %v747_v11  ;;  %v785_v9 = vld [vmem:[#allocation8 + $0x458] sm:$0xff]  ;;  %v879_v11 = vld [vmem:[#allocation8 + $0x748] sm:$0xff]  ;;  %v3348_v12 = vpack.c.bf16 %v760_v4, %v748_v3  ;;  %v880_v3 = vld [vmem:[#allocation8 + $0x750] sm:$0xff] }
 0x126   : > { %v975_v61 = vld [vmem:[#allocation8 + $0xa48] sm:$0xff] }
 0x127   : > { %3233 = vmatpush1.bf16.msra.mxu0 %v3232_v27  ;;  %v3332_v27 = vpack.c.bf16 %v664_v20, %v652_v19  ;;  %v784_v19 = vld [vmem:[#allocation8 + $0x450] sm:$0xff]  ;;  %v3294_v20 = vpack.c.bf16 %v879_v11, %v867_v10  ;;  %v999_v10 = vld [vmem:[#allocation8 + $0xb08] sm:$0xff] }
 0x128   : > { %3257 = vmatpush1.bf16.msra.mxu1 %v3256_v28  ;;  %3235 = vmatprep.subr.bf16.mxu0 %v3234_v29  ;;  %v3276_v28 = vpack.c.bf16 %v758_v22, %v746_v17  ;;  %v3334_v29 = vpack.c.bf16 %v689_v24, %v677_v23  ;;  %v772_v17 = vld [vmem:[#allocation8 + $0x3f0] sm:$0xff]  ;;  %v797_v22 = vld [vmem:[#allocation8 + $0x4b8] sm:$0xff]  ;;  %v891_v24 = vld [vmem:[#allocation8 + $0x7a8] sm:$0xff] }
 0x129   : > { %3259 = vmatprep.subr.bf16.mxu1 %v3258_v33  ;;  %v3278_v33 = vpack.c.bf16 %v783_v26, %v771_v25  ;;  %v809_v23 = vld [vmem:[#allocation8 + $0x518] sm:$0xff]  ;;  %v903_v25 = vld [vmem:[#allocation8 + $0x808] sm:$0xff]  ;;  %v3352_v26 = vpack.c.bf16 %v784_v19, %v772_v17  ;;  %v904_v17 = vld [vmem:[#allocation8 + $0x810] sm:$0xff] }
 0x12b   : > { %2885 = vmatmul.mubr.msk.f32.vlgmr.msra.gmra.mrb[4].mxu1 %vm1078_vm0, %v4510_v13  ;;  %3237 = vmatpush1.bf16.msra.mxu0 %v3236_v39  ;;  %v3336_v39 = vpack.c.bf16 %v688_v32, %v676_v31  ;;  %v808_v31 = vld [vmem:[#allocation8 + $0x510] sm:$0xff]  ;;  %v3298_v32 = vpack.c.bf16 %v903_v25, %v891_v24  ;;  %v1023_v24 = vld [vmem:[#allocation8 + $0xbc8] sm:$0xff] }
 0x12c   : > { %3261 = vmatpush1.bf16.msra.mxu1 %v3260_v40  ;;  %3239 = vmatprep.subr.bf16.mxu0 %v3238_v47  ;;  %v3280_v40 = vpack.c.bf16 %v782_v34, %v770_v30  ;;  %v3338_v47 = vpack.c.bf16 %v713_v36, %v701_v35  ;;  %v796_v30 = vld [vmem:[#allocation8 + $0x4b0] sm:$0xff]  ;;  %v821_v34 = vld [vmem:[#allocation8 + $0x578] sm:$0xff]  ;;  %v915_v36 = vld [vmem:[#allocation8 + $0x868] sm:$0xff] }
 0x12d   : > { %3263 = vmatprep.subr.bf16.mxu1 %v3262_v44  ;;  %1430 = vmatprep.mubr.f32.mxu1 %v4499_v18  ;;  %v3282_v44 = vpack.c.bf16 %v807_v38, %v795_v37  ;;  %v833_v35 = vld [vmem:[#allocation8 + $0x5d8] sm:$0xff]  ;;  %v927_v37 = vld [vmem:[#allocation8 + $0x8c8] sm:$0xff]  ;;  %v3356_v38 = vpack.c.bf16 %v808_v31, %v796_v30  ;;  %v928_v30 = vld [vmem:[#allocation8 + $0x8d0] sm:$0xff] }
 0x12f   : > { %3241 = vmatpush1.bf16.msra.mxu0 %v3240_v52  ;;  %v3340_v52 = vpack.c.bf16 %v712_v43, %v700_v42  ;;  %v832_v42 = vld [vmem:[#allocation8 + $0x5d0] sm:$0xff]  ;;  %v3302_v43 = vpack.c.bf16 %v927_v37, %v915_v36  ;;  %v1047_v36 = vld [vmem:[#allocation8 + $0xc88] sm:$0xff] }
 0x130   : > { %3265 = vmatpush1.bf16.msra.mxu1 %v3264_v53  ;;  %3243 = vmatprep.subr.bf16.mxu0 %v3242_v54  ;;  %v3284_v53 = vpack.c.bf16 %v806_v45, %v794_v41  ;;  %v818_v54 = vld [vmem:[#allocation8 + $0x560] sm:$0xff]  ;;  %v820_v41 = vld [vmem:[#allocation8 + $0x570] sm:$0xff]  ;;  %v845_v45 = vld [vmem:[#allocation8 + $0x638] sm:$0xff] }
 0x131   : > { %3267 = vmatprep.subr.bf16.mxu1 %v3266_v58  ;;  %v830_v58 = vld [vmem:[#allocation8 + $0x5c0] sm:$0xff]  ;;  %v3360_v50 = vpack.c.bf16 %v832_v42, %v820_v41  ;;  %v952_v41 = vld [vmem:[#allocation8 + $0x990] sm:$0xff] }
 0x133   : > { %3245 = vmatpush1.bf16.msra.mxu0 %v3244_v0  ;;  %v3288_v0 = vpack.c.bf16 %v830_v58, %v818_v54  ;;  %v844_v54 = vld [vmem:[#allocation8 + $0x630] sm:$0xff]  ;;  %v869_v58 = vld [vmem:[#allocation8 + $0x6f8] sm:$0xff] }
 0x134   : > { %3269 = vmatpush1.bf16.msra.mxu1 %v3268_v1  ;;  %3247 = vmatprep.subr.bf16.mxu0 %v3246_v2  ;;  %v3346_v1 = vpack.c.bf16 %v761_v60, %v749_v59  ;;  %v842_v2 = vld [vmem:[#allocation8 + $0x620] sm:$0xff]  ;;  %v881_v59 = vld [vmem:[#allocation8 + $0x758] sm:$0xff]  ;;  %v963_v60 = vld [vmem:[#allocation8 + $0x9e8] sm:$0xff]  ;;  %v3364_v62 = vpack.c.bf16 %v856_v55, %v844_v54 }
 0x135   : > { %3271 = vmatprep.subr.bf16.mxu1 %v3270_v7  ;;  %v854_v7 = vld [vmem:[#allocation8 + $0x680] sm:$0xff]  ;;  %v3310_v4 = vpack.c.bf16 %v975_v61, %v963_v60  ;;  %v976_v54 = vld [vmem:[#allocation8 + $0xa50] sm:$0xff]  ;;  %v1049_v60 = vld [vmem:[#allocation8 + $0xc98] sm:$0xff] }
 0x137   : > { %3249 = vmatpush1.bf16.msra.mxu0 %v3248_v14  ;;  %v3292_v14 = vpack.c.bf16 %v854_v7, %v842_v2  ;;  %v868_v2 = vld [vmem:[#allocation8 + $0x6f0] sm:$0xff]  ;;  %v893_v7 = vld [vmem:[#allocation8 + $0x7b8] sm:$0xff] }
 0x138   : > { %3273 = vmatpush1.bf16.msra.mxu1 %v3272_v15  ;;  %3331 = vmatprep.subr.bf16.mxu0 %v3330_v16  ;;  %v3350_v15 = vpack.c.bf16 %v785_v9, %v773_v8  ;;  %v866_v16 = vld [vmem:[#allocation8 + $0x6e0] sm:$0xff]  ;;  %v905_v8 = vld [vmem:[#allocation8 + $0x818] sm:$0xff]  ;;  %v987_v9 = vld [vmem:[#allocation8 + $0xaa8] sm:$0xff]  ;;  %v3368_v11 = vpack.c.bf16 %v880_v3, %v868_v2 }
 0x139   : > { %3275 = vmatprep.subr.bf16.mxu1 %v3274_v21  ;;  %v878_v21 = vld [vmem:[#allocation8 + $0x740] sm:$0xff]  ;;  %v3314_v19 = vpack.c.bf16 %v999_v10, %v987_v9  ;;  %v1036_v2 = vld [vmem:[#allocation8 + $0xc30] sm:$0xff]  ;;  %v1073_v9 = vld [vmem:[#allocation8 + $0xd58] sm:$0xff] }
 0x13a   : > { %1289 = vmatmul.mubr.f32.vlgmr.msra.gmra.mrb[2].mxu0 %v4505_v51 }
 0x13b   : > { %3333 = vmatpush1.bf16.msra.mxu0 %v3332_v27  ;;  %1572 = vmatprep.mubr.f32.mxu0 %v4499_v18  ;;  %v3342_v18 = vpack.c.bf16 %v737_v48, %v725_v46  ;;  %v3296_v27 = vpack.c.bf16 %v878_v21, %v866_v16  ;;  %v857_v46 = vld [vmem:[#allocation8 + $0x698] sm:$0xff]  ;;  %v939_v48 = vld [vmem:[#allocation8 + $0x928] sm:$0xff]  ;;  %v892_v16 = vld [vmem:[#allocation8 + $0x7b0] sm:$0xff] }
 0x13c   : > { %3277 = vmatpush1.bf16.msra.mxu1 %v3276_v28  ;;  %3335 = vmatprep.subr.bf16.mxu0 %v3334_v29  ;;  %v3354_v28 = vpack.c.bf16 %v809_v23, %v797_v22  ;;  %v890_v29 = vld [vmem:[#allocation8 + $0x7a0] sm:$0xff]  ;;  %v3306_v56 = vpack.c.bf16 %v951_v49, %v939_v48  ;;  %v917_v21 = vld [vmem:[#allocation8 + $0x878] sm:$0xff]  ;;  %v1011_v23 = vld [vmem:[#allocation8 + $0xb68] sm:$0xff]  ;;  %v3372_v25 = vpack.c.bf16 %v904_v17, %v892_v16 }
 0x13d   : > { %3279 = vmatprep.subr.bf16.mxu1 %v3278_v33  ;;  %v902_v33 = vld [vmem:[#allocation8 + $0x800] sm:$0xff]  ;;  %v929_v22 = vld [vmem:[#allocation8 + $0x8d8] sm:$0xff]  ;;  %v3318_v31 = vpack.c.bf16 %v1023_v24, %v1011_v23  ;;  %v1071_v48 = vld [vmem:[#allocation8 + $0xd48] sm:$0xff] }
 0x13e   : > { %v1060_v16 = vld [vmem:[#allocation8 + $0xcf0] sm:$0xff]  ;;  %v667_v23 = vld [vmem:[#allocation8 + $0xa8] sm:$0xff] }
 0x13f   : > { %3337 = vmatpush1.bf16.msra.mxu0 %v3336_v39  ;;  %v3300_v39 = vpack.c.bf16 %v902_v33, %v890_v29  ;;  %v916_v29 = vld [vmem:[#allocation8 + $0x870] sm:$0xff]  ;;  %v941_v33 = vld [vmem:[#allocation8 + $0x938] sm:$0xff] }
 0x140   : > { %3281 = vmatpush1.bf16.msra.mxu1 %v3280_v40  ;;  %3339 = vmatprep.subr.bf16.mxu0 %v3338_v47  ;;  %v3358_v40 = vpack.c.bf16 %v833_v35, %v821_v34  ;;  %v914_v47 = vld [vmem:[#allocation8 + $0x860] sm:$0xff]  ;;  %v953_v34 = vld [vmem:[#allocation8 + $0x998] sm:$0xff]  ;;  %v1035_v35 = vld [vmem:[#allocation8 + $0xc28] sm:$0xff]  ;;  %v3376_v37 = vpack.c.bf16 %v928_v30, %v916_v29 }
 0x141   : > { %3283 = vmatprep.subr.bf16.mxu1 %v3282_v44  ;;  %v926_v44 = vld [vmem:[#allocation8 + $0x8c0] sm:$0xff]  ;;  %v3322_v42 = vpack.c.bf16 %v1047_v36, %v1035_v35  ;;  %v668_v29 = vld [vmem:[#allocation8 + $0xb0] sm:$0xff]  ;;  %v691_v35 = vld [vmem:[#allocation8 + $0x168] sm:$0xff] }
 0x143   : > { %3341 = vmatpush1.bf16.msra.mxu0 %v3340_v52  ;;  %v3304_v52 = vpack.c.bf16 %v926_v44, %v914_v47  ;;  %v940_v47 = vld [vmem:[#allocation8 + $0x930] sm:$0xff]  ;;  %v965_v44 = vld [vmem:[#allocation8 + $0x9f8] sm:$0xff] }
 0x144   : > { %3285 = vmatpush1.bf16.msra.mxu1 %v3284_v53  ;;  %3343 = vmatprep.subr.bf16.mxu0 %v3342_v18  ;;  %v3362_v53 = vpack.c.bf16 %v857_v46, %v845_v45  ;;  %v938_v18 = vld [vmem:[#allocation8 + $0x920] sm:$0xff]  ;;  %v977_v45 = vld [vmem:[#allocation8 + $0xa58] sm:$0xff]  ;;  %v1059_v46 = vld [vmem:[#allocation8 + $0xce8] sm:$0xff]  ;;  %v3380_v49 = vpack.c.bf16 %v952_v41, %v940_v47 }
 0x145   : > { %3287 = vmatprep.subr.bf16.mxu1 %v3286_v57  ;;  %v950_v57 = vld [vmem:[#allocation8 + $0x980] sm:$0xff]  ;;  %v3326_v55 = vpack.c.bf16 %v1071_v48, %v1059_v46  ;;  %v692_v47 = vld [vmem:[#allocation8 + $0x170] sm:$0xff]  ;;  %v715_v46 = vld [vmem:[#allocation8 + $0x228] sm:$0xff] }
 0x147   : > { %3345 = vmatpush1.bf16.msra.mxu0 %v3344_v63  ;;  %v3308_v63 = vpack.c.bf16 %v950_v57, %v938_v18  ;;  %v964_v18 = vld [vmem:[#allocation8 + $0x9f0] sm:$0xff]  ;;  %v989_v57 = vld [vmem:[#allocation8 + $0xab8] sm:$0xff] }
 0x148   : > { %3289 = vmatpush1.bf16.msra.mxu1 %v3288_v0  ;;  %3347 = vmatprep.subr.bf16.mxu0 %v3346_v1  ;;  %v3366_v0 = vpack.c.bf16 %v881_v59, %v869_v58  ;;  %v962_v1 = vld [vmem:[#allocation8 + $0x9e0] sm:$0xff]  ;;  %v1001_v58 = vld [vmem:[#allocation8 + $0xb18] sm:$0xff]  ;;  %v3384_v61 = vpack.c.bf16 %v976_v54, %v964_v18  ;;  %v716_v18 = vld [vmem:[#allocation8 + $0x230] sm:$0xff] }
 0x149   : > { %3291 = vmatprep.subr.bf16.mxu1 %v3290_v5  ;;  %v974_v5 = vld [vmem:[#allocation8 + $0xa40] sm:$0xff]  ;;  %v1037_v59 = vld [vmem:[#allocation8 + $0xc38] sm:$0xff] }
 0x14a   : > { %v3394_v3 = vpack.c.bf16 %v1049_v60, %v1037_v59  ;;  %v739_v59 = vld [vmem:[#allocation8 + $0x2e8] sm:$0xff] }
 0x14b   : > { %3349 = vmatpush1.bf16.msra.mxu0 %v3348_v12  ;;  %v3312_v12 = vpack.c.bf16 %v974_v5, %v962_v1  ;;  %v1000_v1 = vld [vmem:[#allocation8 + $0xb10] sm:$0xff]  ;;  %v1013_v5 = vld [vmem:[#allocation8 + $0xb78] sm:$0xff] }
 0x14c   : > { %3293 = vmatpush1.bf16.msra.mxu1 %v3292_v14  ;;  %3351 = vmatprep.subr.bf16.mxu0 %v3350_v15  ;;  %v3370_v14 = vpack.c.bf16 %v905_v8, %v893_v7  ;;  %v986_v15 = vld [vmem:[#allocation8 + $0xaa0] sm:$0xff]  ;;  %v1025_v7 = vld [vmem:[#allocation8 + $0xbd8] sm:$0xff] }
 0x14d   : > { %3295 = vmatprep.subr.bf16.mxu1 %v3294_v20  ;;  %v998_v20 = vld [vmem:[#allocation8 + $0xb00] sm:$0xff]  ;;  %v1061_v8 = vld [vmem:[#allocation8 + $0xcf8] sm:$0xff] }
 0x14e   : > { %v3398_v17 = vpack.c.bf16 %v1073_v9, %v1061_v8 }
 0x14f   : > { %3353 = vmatpush1.bf16.msra.mxu0 %v3352_v26  ;;  %v3316_v26 = vpack.c.bf16 %v998_v20, %v986_v15  ;;  %v1024_v15 = vld [vmem:[#allocation8 + $0xbd0] sm:$0xff]  ;;  %v657_v20 = vld [vmem:[#allocation8 + $0x58] sm:$0xff] }
 0x150   : > { %3297 = vmatpush1.bf16.msra.mxu1 %v3296_v27  ;;  %3355 = vmatprep.subr.bf16.mxu0 %v3354_v28  ;;  %v3374_v27 = vpack.c.bf16 %v929_v22, %v917_v21  ;;  %v1010_v28 = vld [vmem:[#allocation8 + $0xb60] sm:$0xff]  ;;  %v669_v21 = vld [vmem:[#allocation8 + $0xb8] sm:$0xff]  ;;  %v655_v22 = vld [vmem:[#allocation8 + $0x48] sm:$0xff] }
 0x151   : > { %3299 = vmatprep.subr.bf16.mxu1 %v3298_v32  ;;  %v1022_v32 = vld [vmem:[#allocation8 + $0xbc0] sm:$0xff]  ;;  %v3402_v30 = vpack.c.bf16 %v667_v23, %v655_v22 }
 0x153   : > { %3357 = vmatpush1.bf16.msra.mxu0 %v3356_v38  ;;  %v3320_v38 = vpack.c.bf16 %v1022_v32, %v1010_v28  ;;  %v656_v28 = vld [vmem:[#allocation8 + $0x50] sm:$0xff]  ;;  %v681_v32 = vld [vmem:[#allocation8 + $0x118] sm:$0xff] }
 0x154   : > { %3301 = vmatpush1.bf16.msra.mxu1 %v3300_v39  ;;  %3359 = vmatprep.subr.bf16.mxu0 %v3358_v40  ;;  %v3378_v39 = vpack.c.bf16 %v953_v34, %v941_v33  ;;  %v1034_v40 = vld [vmem:[#allocation8 + $0xc20] sm:$0xff]  ;;  %v693_v33 = vld [vmem:[#allocation8 + $0x178] sm:$0xff]  ;;  %v679_v34 = vld [vmem:[#allocation8 + $0x108] sm:$0xff]  ;;  %v3476_v36 = vpack.c.bf16 %v668_v29, %v656_v28 }
 0x155   : > { %3303 = vmatprep.subr.bf16.mxu1 %v3302_v43  ;;  %v1046_v43 = vld [vmem:[#allocation8 + $0xc80] sm:$0xff]  ;;  %v3406_v41 = vpack.c.bf16 %v691_v35, %v679_v34 }
 0x156   : > { %v786_v29 = vld [vmem:[#allocation8 + $0x460] sm:$0xff] }
 0x157   : > { %3361 = vmatpush1.bf16.msra.mxu0 %v3360_v50  ;;  %v3324_v50 = vpack.c.bf16 %v1046_v43, %v1034_v40  ;;  %v680_v40 = vld [vmem:[#allocation8 + $0x110] sm:$0xff]  ;;  %v705_v43 = vld [vmem:[#allocation8 + $0x1d8] sm:$0xff] }
 0x158   : > { %3305 = vmatpush1.bf16.msra.mxu1 %v3304_v52  ;;  %3363 = vmatprep.subr.bf16.mxu0 %v3362_v53  ;;  %v3382_v52 = vpack.c.bf16 %v977_v45, %v965_v44  ;;  %v1058_v53 = vld [vmem:[#allocation8 + $0xce0] sm:$0xff]  ;;  %v717_v44 = vld [vmem:[#allocation8 + $0x238] sm:$0xff]  ;;  %v703_v45 = vld [vmem:[#allocation8 + $0x1c8] sm:$0xff]  ;;  %v3480_v48 = vpack.c.bf16 %v692_v47, %v680_v40 }
 0x159   : > { %3307 = vmatprep.subr.bf16.mxu1 %v3306_v56  ;;  %v1070_v56 = vld [vmem:[#allocation8 + $0xd40] sm:$0xff]  ;;  %v3410_v54 = vpack.c.bf16 %v715_v46, %v703_v45 }
 0x15a   : > { %v810_v47 = vld [vmem:[#allocation8 + $0x520] sm:$0xff] }
 0x15b   : > { %3365 = vmatpush1.bf16.msra.mxu0 %v3364_v62  ;;  %v3328_v62 = vpack.c.bf16 %v1070_v56, %v1058_v53  ;;  %v704_v53 = vld [vmem:[#allocation8 + $0x1d0] sm:$0xff]  ;;  %v729_v56 = vld [vmem:[#allocation8 + $0x298] sm:$0xff] }
 0x15c   : > { %3309 = vmatpush1.bf16.msra.mxu1 %v3308_v63  ;;  %3367 = vmatprep.subr.bf16.mxu0 %v3366_v0  ;;  %v3386_v63 = vpack.c.bf16 %v1001_v58, %v989_v57  ;;  %v988_v0 = vld [vmem:[#allocation8 + $0xab0] sm:$0xff]  ;;  %v727_v58 = vld [vmem:[#allocation8 + $0x288] sm:$0xff] }
 0x15d   : > { %3311 = vmatprep.subr.bf16.mxu1 %v3310_v4  ;;  %v1048_v4 = vld [vmem:[#allocation8 + $0xc90] sm:$0xff]  ;;  %v3388_v10 = vpack.c.bf16 %v1000_v1, %v988_v0  ;;  %v3414_v1 = vpack.c.bf16 %v739_v59, %v727_v58 }
 0x15e   : > { %v3924_v57 = vld [vmem:[%s4479_s20 + $0x8] sm:$0xff] }
 0x15f   : > { %3369 = vmatpush1.bf16.msra.mxu0 %v3368_v11  ;;  %v3396_v11 = vpack.c.bf16 %v1048_v4, %v1036_v2  ;;  %v740_v0 = vld [vmem:[#allocation8 + $0x2f0] sm:$0xff]  ;;  %v738_v2 = vld [vmem:[#allocation8 + $0x2e0] sm:$0xff]  ;;  %v765_v4 = vld [vmem:[#allocation8 + $0x3b8] sm:$0xff] }
 0x160   : > { %3313 = vmatpush1.bf16.msra.mxu1 %v3312_v12  ;;  %3371 = vmatprep.subr.bf16.mxu0 %v3370_v14  ;;  %v3390_v12 = vpack.c.bf16 %v1025_v7, %v1013_v5  ;;  %v1012_v14 = vld [vmem:[#allocation8 + $0xb70] sm:$0xff]  ;;  %v751_v5 = vld [vmem:[#allocation8 + $0x348] sm:$0xff] }
 0x161   : > { %3315 = vmatprep.subr.bf16.mxu1 %v3314_v19  ;;  %v1072_v19 = vld [vmem:[#allocation8 + $0xd50] sm:$0xff]  ;;  %v3392_v24 = vpack.c.bf16 %v1024_v15, %v1012_v14  ;;  %v763_v7 = vld [vmem:[#allocation8 + $0x3a8] sm:$0xff] }
 0x162   : > { %v764_v14 = vld [vmem:[#allocation8 + $0x3b0] sm:$0xff]  ;;  %v3418_v15 = vpack.c.bf16 %v763_v7, %v751_v5 }
 0x163   : > { %3373 = vmatpush1.bf16.msra.mxu0 %v3372_v25  ;;  %v3400_v25 = vpack.c.bf16 %v1072_v19, %v1060_v16  ;;  %v762_v16 = vld [vmem:[#allocation8 + $0x3a0] sm:$0xff]  ;;  %v789_v19 = vld [vmem:[#allocation8 + $0x478] sm:$0xff] }
 0x164   : > { %3317 = vmatpush1.bf16.msra.mxu1 %v3316_v26  ;;  %3375 = vmatprep.subr.bf16.mxu0 %v3374_v27  ;;  %v3474_v26 = vpack.c.bf16 %v669_v21, %v657_v20  ;;  %v654_v27 = vld [vmem:[#allocation8 + $0x40] sm:$0xff]  ;;  %v775_v20 = vld [vmem:[#allocation8 + $0x408] sm:$0xff] }
 0x165   : > { %3319 = vmatprep.subr.bf16.mxu1 %v3318_v31  ;;  %v666_v31 = vld [vmem:[#allocation8 + $0xa0] sm:$0xff]  ;;  %v787_v21 = vld [vmem:[#allocation8 + $0x468] sm:$0xff] }
 0x166   : > { %v3422_v28 = vpack.c.bf16 %v787_v21, %v775_v20 }
 0x167   : > { %3377 = vmatpush1.bf16.msra.mxu0 %v3376_v37  ;;  %v3404_v37 = vpack.c.bf16 %v666_v31, %v654_v27  ;;  %v788_v27 = vld [vmem:[#allocation8 + $0x470] sm:$0xff]  ;;  %v813_v31 = vld [vmem:[#allocation8 + $0x538] sm:$0xff] }
 0x168   : > { %3321 = vmatpush1.bf16.msra.mxu1 %v3320_v38  ;;  %3379 = vmatprep.subr.bf16.mxu0 %v3378_v39  ;;  %v3478_v38 = vpack.c.bf16 %v693_v33, %v681_v32  ;;  %v678_v39 = vld [vmem:[#allocation8 + $0x100] sm:$0xff]  ;;  %v799_v32 = vld [vmem:[#allocation8 + $0x4c8] sm:$0xff] }
 0x169   : > { %3323 = vmatprep.subr.bf16.mxu1 %v3322_v42  ;;  %v690_v42 = vld [vmem:[#allocation8 + $0x160] sm:$0xff]  ;;  %v811_v33 = vld [vmem:[#allocation8 + $0x528] sm:$0xff] }
 0x16a   : > { %v3426_v40 = vpack.c.bf16 %v811_v33, %v799_v32 }
 0x16b   : > { %1431 = vmatmul.mubr.f32.vlgmr.msra.gmra.mrb[6].mxu1 %v4505_v51  ;;  %3381 = vmatpush1.bf16.msra.mxu0 %v3380_v49  ;;  %v3408_v49 = vpack.c.bf16 %v690_v42, %v678_v39  ;;  %v812_v39 = vld [vmem:[#allocation8 + $0x530] sm:$0xff]  ;;  %v837_v42 = vld [vmem:[#allocation8 + $0x5f8] sm:$0xff] }
 0x16c   : > { %3325 = vmatpush1.bf16.msra.mxu1 %v3324_v50  ;;  %3383 = vmatprep.subr.bf16.mxu0 %v3382_v52  ;;  %v3482_v50 = vpack.c.bf16 %v717_v44, %v705_v43  ;;  %v702_v52 = vld [vmem:[#allocation8 + $0x1c0] sm:$0xff]  ;;  %v823_v43 = vld [vmem:[#allocation8 + $0x588] sm:$0xff] }
 0x16d   : > { %3327 = vmatprep.subr.bf16.mxu1 %v3326_v55  ;;  %1501 = vmatprep.mubr.f32.mxu1 %v4194_v6  ;;  %v714_v55 = vld [vmem:[#allocation8 + $0x220] sm:$0xff]  ;;  %v835_v44 = vld [vmem:[#allocation8 + $0x5e8] sm:$0xff] }
 0x16e   : > { %v3412_v60 = vpack.c.bf16 %v714_v55, %v702_v52  ;;  %v836_v52 = vld [vmem:[#allocation8 + $0x5f0] sm:$0xff]  ;;  %v861_v55 = vld [vmem:[#allocation8 + $0x6b8] sm:$0xff] }
 0x16f   : > { %3385 = vmatpush1.bf16.msra.mxu0 %v3384_v61 }
 0x170   : > { %3329 = vmatpush1.bf16.msra.mxu1 %v3328_v62  ;;  %3387 = vmatprep.subr.bf16.mxu0 %v3386_v63  ;;  %v726_v62 = vld [vmem:[#allocation8 + $0x280] sm:$0xff]  ;;  %v728_v63 = vld [vmem:[#allocation8 + $0x290] sm:$0xff] }
 0x171   : > { %3395 = vmatprep.subr.bf16.mxu1 %v3394_v3  ;;  %v753_v3 = vld [vmem:[#allocation8 + $0x358] sm:$0xff]  ;;  %v3488_v8 = vpack.c.bf16 %v740_v0, %v728_v63  ;;  %v3416_v9 = vpack.c.bf16 %v738_v2, %v726_v62  ;;  %v858_v63 = vld [vmem:[#allocation8 + $0x6a0] sm:$0xff]  ;;  %v871_v2 = vld [vmem:[#allocation8 + $0x708] sm:$0xff] }
 0x172   : > { %v873_v0 = vld [vmem:[#allocation8 + $0x718] sm:$0xff] }
 0x173   : > { %2886 = vmatmul.mubr.msk.f32.vlgmr.msra.gmra.mrb[6].mxu1 %vm1078_vm0, %v4510_v13  ;;  %3389 = vmatpush1.bf16.msra.mxu0 %v3388_v10  ;;  %v3490_v10 = vpack.c.bf16 %v765_v4, %v753_v3  ;;  %v883_v3 = vld [vmem:[#allocation8 + $0x768] sm:$0xff] }
 0x174   : > { %3397 = vmatpush1.bf16.msra.mxu1 %v3396_v11  ;;  %3391 = vmatprep.subr.bf16.mxu0 %v3390_v12  ;;  %v750_v11 = vld [vmem:[#allocation8 + $0x340] sm:$0xff]  ;;  %v752_v12 = vld [vmem:[#allocation8 + $0x350] sm:$0xff] }
 0x175   : > { %3399 = vmatprep.subr.bf16.mxu1 %v3398_v17  ;;  %1643 = vmatprep.mubr.f32.mxu1 %v4194_v6  ;;  %v777_v17 = vld [vmem:[#allocation8 + $0x418] sm:$0xff]  ;;  %v3492_v22 = vpack.c.bf16 %v764_v14, %v752_v12  ;;  %v3420_v23 = vpack.c.bf16 %v762_v16, %v750_v11  ;;  %v3438_v11 = vpack.c.bf16 %v883_v3, %v871_v2  ;;  %v882_v12 = vld [vmem:[#allocation8 + $0x760] sm:$0xff]  ;;  %v895_v16 = vld [vmem:[#allocation8 + $0x7c8] sm:$0xff] }
 0x176   : > { %v897_v14 = vld [vmem:[#allocation8 + $0x7d8] sm:$0xff] }
 0x177   : > { %3393 = vmatpush1.bf16.msra.mxu0 %v3392_v24  ;;  %v3494_v24 = vpack.c.bf16 %v789_v19, %v777_v17  ;;  %v907_v17 = vld [vmem:[#allocation8 + $0x828] sm:$0xff] }
 0x178   : > { %3401 = vmatpush1.bf16.msra.mxu1 %v3400_v25  ;;  %3475 = vmatprep.subr.bf16.mxu0 %v3474_v26  ;;  %v774_v25 = vld [vmem:[#allocation8 + $0x400] sm:$0xff]  ;;  %v776_v26 = vld [vmem:[#allocation8 + $0x410] sm:$0xff] }
 0x179   : > { %3403 = vmatprep.subr.bf16.mxu1 %v3402_v30  ;;  %v801_v30 = vld [vmem:[#allocation8 + $0x4d8] sm:$0xff]  ;;  %v3496_v34 = vpack.c.bf16 %v788_v27, %v776_v26  ;;  %v3424_v35 = vpack.c.bf16 %v786_v29, %v774_v25  ;;  %v3442_v25 = vpack.c.bf16 %v907_v17, %v895_v16  ;;  %v906_v26 = vld [vmem:[#allocation8 + $0x820] sm:$0xff]  ;;  %v919_v29 = vld [vmem:[#allocation8 + $0x888] sm:$0xff] }
 0x17a   : > { %1573 = vmatmul.mubr.f32.vlgmr.msra.gmra.mrb[4].mxu0 %v4505_v51  ;;  %v741_v51 = vld [vmem:[#allocation8 + $0x2f8] sm:$0xff] }
 0x17b   : > { %2887 = vmatmul.mubr.msk.f32.vlgmr.msra.gmra.mrb[8].mxu1 %vm1078_vm0, %v4510_v13  ;;  %3477 = vmatpush1.bf16.msra.mxu0 %v3476_v36  ;;  %v3484_v13 = vpack.c.bf16 %v716_v18, %v704_v53  ;;  %v3486_v61 = vpack.c.bf16 %v741_v51, %v729_v56  ;;  %v3498_v36 = vpack.c.bf16 %v813_v31, %v801_v30  ;;  %v834_v18 = vld [vmem:[#allocation8 + $0x5e0] sm:$0xff]  ;;  %v847_v56 = vld [vmem:[#allocation8 + $0x648] sm:$0xff]  ;;  %v921_v27 = vld [vmem:[#allocation8 + $0x898] sm:$0xff] }
 0x17c   : > { %3405 = vmatpush1.bf16.msra.mxu1 %v3404_v37  ;;  %3479 = vmatprep.subr.bf16.mxu0 %v3478_v38  ;;  %v798_v37 = vld [vmem:[#allocation8 + $0x4c0] sm:$0xff]  ;;  %v800_v38 = vld [vmem:[#allocation8 + $0x4d0] sm:$0xff]  ;;  %v3430_v53 = vpack.c.bf16 %v835_v44, %v823_v43  ;;  %v859_v51 = vld [vmem:[#allocation8 + $0x6a8] sm:$0xff] }
 0x17d   : > { %3407 = vmatprep.subr.bf16.mxu1 %v3406_v41  ;;  %1714 = vmatprep.mubr.f32.mxu1 %v3924_v57  ;;  %v825_v41 = vld [vmem:[#allocation8 + $0x598] sm:$0xff]  ;;  %v3500_v45 = vpack.c.bf16 %v812_v39, %v800_v38  ;;  %v3428_v46 = vpack.c.bf16 %v810_v47, %v798_v37  ;;  %v3434_v62 = vpack.c.bf16 %v859_v51, %v847_v56  ;;  %v931_v30 = vld [vmem:[#allocation8 + $0x8e8] sm:$0xff]  ;;  %v930_v38 = vld [vmem:[#allocation8 + $0x8e0] sm:$0xff] }
 0x17e   : > { %1856 = vmatprep.mubr.f32.mxu0 %v3924_v57  ;;  %v3446_v37 = vpack.c.bf16 %v931_v30, %v919_v29  ;;  %v945_v39 = vld [vmem:[#allocation8 + $0x958] sm:$0xff]  ;;  %v943_v47 = vld [vmem:[#allocation8 + $0x948] sm:$0xff] }
 0x17f   : > { %3481 = vmatpush1.bf16.msra.mxu0 %v3480_v48  ;;  %v3502_v48 = vpack.c.bf16 %v837_v42, %v825_v41  ;;  %v955_v41 = vld [vmem:[#allocation8 + $0x9a8] sm:$0xff] }
 0x180   : > { %3409 = vmatpush1.bf16.msra.mxu1 %v3408_v49  ;;  %3483 = vmatprep.subr.bf16.mxu0 %v3482_v50  ;;  %v822_v49 = vld [vmem:[#allocation8 + $0x580] sm:$0xff]  ;;  %v824_v50 = vld [vmem:[#allocation8 + $0x590] sm:$0xff]  ;;  %v1039_v29 = vld [vmem:[#allocation8 + $0xc48] sm:$0xff] }
 0x181   : > { %3411 = vmatprep.subr.bf16.mxu1 %v3410_v54  ;;  %v849_v54 = vld [vmem:[#allocation8 + $0x658] sm:$0xff]  ;;  %v3504_v57 = vpack.c.bf16 %v836_v52, %v824_v50  ;;  %v3432_v58 = vpack.c.bf16 %v834_v18, %v822_v49  ;;  %v3450_v49 = vpack.c.bf16 %v955_v41, %v943_v47  ;;  %v954_v50 = vld [vmem:[#allocation8 + $0x9a0] sm:$0xff]  ;;  %v967_v18 = vld [vmem:[#allocation8 + $0xa08] sm:$0xff] }
 0x182   : > { %v3506_v59 = vpack.c.bf16 %v861_v55, %v849_v54  ;;  %v969_v52 = vld [vmem:[#allocation8 + $0xa18] sm:$0xff]  ;;  %v979_v54 = vld [vmem:[#allocation8 + $0xa68] sm:$0xff] }
 0x183   : > { %3485 = vmatpush1.bf16.msra.mxu0 %v3484_v13  ;;  %v846_v13 = vld [vmem:[#allocation8 + $0x640] sm:$0xff]  ;;  %v1051_v30 = vld [vmem:[#allocation8 + $0xca8] sm:$0xff] }
 0x184   : > { %3413 = vmatpush1.bf16.msra.mxu1 %v3412_v60  ;;  %3487 = vmatprep.subr.bf16.mxu0 %v3486_v61  ;;  %v848_v60 = vld [vmem:[#allocation8 + $0x650] sm:$0xff]  ;;  %v3436_v5 = vpack.c.bf16 %v858_v63, %v846_v13  ;;  %v3454_v13 = vpack.c.bf16 %v979_v54, %v967_v18  ;;  %v991_v63 = vld [vmem:[#allocation8 + $0xac8] sm:$0xff] }
 0x185   : > { %3415 = vmatprep.subr.bf16.mxu1 %v3414_v1  ;;  %v860_v61 = vld [vmem:[#allocation8 + $0x6b0] sm:$0xff]  ;;  %v885_v1 = vld [vmem:[#allocation8 + $0x778] sm:$0xff]  ;;  %v1063_v47 = vld [vmem:[#allocation8 + $0xd08] sm:$0xff] }
 0x186   : > { %v3508_v4 = vpack.c.bf16 %v860_v61, %v848_v60  ;;  %v3510_v7 = vpack.c.bf16 %v885_v1, %v873_v0  ;;  %v978_v60 = vld [vmem:[#allocation8 + $0xa60] sm:$0xff]  ;;  %v993_v61 = vld [vmem:[#allocation8 + $0xad8] sm:$0xff]  ;;  %v1003_v0 = vld [vmem:[#allocation8 + $0xb28] sm:$0xff] }
 0x187   : > { %3489 = vmatpush1.bf16.msra.mxu0 %v3488_v8  ;;  %v870_v8 = vld [vmem:[#allocation8 + $0x700] sm:$0xff]  ;;  %v1075_v41 = vld [vmem:[#allocation8 + $0xd68] sm:$0xff] }
 0x188   : > { %3417 = vmatpush1.bf16.msra.mxu1 %v3416_v9  ;;  %3491 = vmatprep.subr.bf16.mxu0 %v3490_v10  ;;  %v872_v9 = vld [vmem:[#allocation8 + $0x710] sm:$0xff]  ;;  %v3440_v20 = vpack.c.bf16 %v882_v12, %v870_v8  ;;  %v3458_v8 = vpack.c.bf16 %v1003_v0, %v991_v63  ;;  %v1953_v54 = vld [vmem:[#allocation10 + $0x8] sm:$0xff]  ;;  %v1963_v0 = vld [vmem:[#allocation10 + $0x58] sm:$0xff] }
 0x189   : > { %3419 = vmatprep.subr.bf16.mxu1 %v3418_v15  ;;  %v884_v10 = vld [vmem:[#allocation8 + $0x770] sm:$0xff]  ;;  %v909_v15 = vld [vmem:[#allocation8 + $0x838] sm:$0xff] }
 0x18a   : > { %v3512_v19 = vpack.c.bf16 %v884_v10, %v872_v9  ;;  %v3514_v21 = vpack.c.bf16 %v909_v15, %v897_v14  ;;  %v1002_v9 = vld [vmem:[#allocation8 + $0xb20] sm:$0xff]  ;;  %v1017_v10 = vld [vmem:[#allocation8 + $0xb98] sm:$0xff]  ;;  %v1015_v14 = vld [vmem:[#allocation8 + $0xb88] sm:$0xff] }
 0x18b   : > { %3493 = vmatpush1.bf16.msra.mxu0 %v3492_v22  ;;  %v894_v22 = vld [vmem:[#allocation8 + $0x7c0] sm:$0xff]  ;;  %v1027_v15 = vld [vmem:[#allocation8 + $0xbe8] sm:$0xff]  ;;  %v1970_v63 = vld [vmem:[#allocation10 + $0x90] sm:$0xff] }
 0x18c   : > { %3421 = vmatpush1.bf16.msra.mxu1 %v3420_v23  ;;  %3495 = vmatprep.subr.bf16.mxu0 %v3494_v24  ;;  %v896_v23 = vld [vmem:[#allocation8 + $0x7d0] sm:$0xff]  ;;  %v3444_v32 = vpack.c.bf16 %v906_v26, %v894_v22  ;;  %v1014_v22 = vld [vmem:[#allocation8 + $0xb80] sm:$0xff] }
 0x18d   : > { %3423 = vmatprep.subr.bf16.mxu1 %v3422_v28  ;;  %v908_v24 = vld [vmem:[#allocation8 + $0x830] sm:$0xff]  ;;  %v933_v28 = vld [vmem:[#allocation8 + $0x8f8] sm:$0xff]  ;;  %v1026_v26 = vld [vmem:[#allocation8 + $0xbe0] sm:$0xff] }
 0x18e   : > { %v3516_v31 = vpack.c.bf16 %v908_v24, %v896_v23  ;;  %v3518_v33 = vpack.c.bf16 %v933_v28, %v921_v27  ;;  %v1016_v23 = vld [vmem:[#allocation8 + $0xb90] sm:$0xff]  ;;  %v1041_v27 = vld [vmem:[#allocation8 + $0xc58] sm:$0xff] }
 0x18f   : > { %3497 = vmatpush1.bf16.msra.mxu0 %v3496_v34  ;;  %v918_v34 = vld [vmem:[#allocation8 + $0x880] sm:$0xff]  ;;  %v1028_v24 = vld [vmem:[#allocation8 + $0xbf0] sm:$0xff]  ;;  %v1053_v28 = vld [vmem:[#allocation8 + $0xcb8] sm:$0xff] }
 0x190   : > { %3425 = vmatpush1.bf16.msra.mxu1 %v3424_v35  ;;  %3499 = vmatprep.subr.bf16.mxu0 %v3498_v36  ;;  %v920_v35 = vld [vmem:[#allocation8 + $0x890] sm:$0xff]  ;;  %v3448_v43 = vpack.c.bf16 %v930_v38, %v918_v34  ;;  %v1038_v34 = vld [vmem:[#allocation8 + $0xc40] sm:$0xff] }
 0x191   : > { %3427 = vmatprep.subr.bf16.mxu1 %v3426_v40  ;;  %v932_v36 = vld [vmem:[#allocation8 + $0x8f0] sm:$0xff]  ;;  %v957_v40 = vld [vmem:[#allocation8 + $0x9b8] sm:$0xff]  ;;  %v1050_v38 = vld [vmem:[#allocation8 + $0xca0] sm:$0xff] }
 0x192   : > { %v3520_v42 = vpack.c.bf16 %v932_v36, %v920_v35  ;;  %v3522_v44 = vpack.c.bf16 %v957_v40, %v945_v39  ;;  %v1040_v35 = vld [vmem:[#allocation8 + $0xc50] sm:$0xff]  ;;  %v1065_v39 = vld [vmem:[#allocation8 + $0xd18] sm:$0xff] }
 0x193   : > { %3501 = vmatpush1.bf16.msra.mxu0 %v3500_v45  ;;  %v942_v45 = vld [vmem:[#allocation8 + $0x940] sm:$0xff]  ;;  %v1052_v36 = vld [vmem:[#allocation8 + $0xcb0] sm:$0xff]  ;;  %v1077_v40 = vld [vmem:[#allocation8 + $0xd78] sm:$0xff] }
 0x194   : > { %3429 = vmatpush1.bf16.msra.mxu1 %v3428_v46  ;;  %3503 = vmatprep.subr.bf16.mxu0 %v3502_v48  ;;  %v944_v46 = vld [vmem:[#allocation8 + $0x950] sm:$0xff]  ;;  %v3452_v56 = vpack.c.bf16 %v954_v50, %v942_v45  ;;  %v1062_v45 = vld [vmem:[#allocation8 + $0xd00] sm:$0xff] }
 0x195   : > { %3431 = vmatprep.subr.bf16.mxu1 %v3430_v53  ;;  %v956_v48 = vld [vmem:[#allocation8 + $0x9b0] sm:$0xff]  ;;  %v981_v53 = vld [vmem:[#allocation8 + $0xa78] sm:$0xff]  ;;  %v1074_v50 = vld [vmem:[#allocation8 + $0xd60] sm:$0xff] }
 0x196   : > { %v3524_v55 = vpack.c.bf16 %v956_v48, %v944_v46  ;;  %v3526_v51 = vpack.c.bf16 %v981_v53, %v969_v52  ;;  %v1064_v46 = vld [vmem:[#allocation8 + $0xd10] sm:$0xff]  ;;  %v1955_v52 = vld [vmem:[#allocation10 + $0x18] sm:$0xff]  ;;  %v1960_v53 = vld [vmem:[#allocation10 + $0x40] sm:$0xff] }
 0x197   : > { %3505 = vmatpush1.bf16.msra.mxu0 %v3504_v57  ;;  %v966_v57 = vld [vmem:[#allocation8 + $0xa00] sm:$0xff]  ;;  %v1076_v48 = vld [vmem:[#allocation8 + $0xd70] sm:$0xff] }
 0x198   : > { %3433 = vmatpush1.bf16.msra.mxu1 %v3432_v58  ;;  %3507 = vmatprep.subr.bf16.mxu0 %v3506_v59  ;;  %v968_v58 = vld [vmem:[#allocation8 + $0xa10] sm:$0xff]  ;;  %v3456_v2 = vpack.c.bf16 %v978_v60, %v966_v57  ;;  %v3642_v57 = vpack.c.bf16 %v1960_v53, %v1955_v52  ;;  %v1997_v52 = vld [vmem:[#allocation10 + $0x168] sm:$0xff] }
 0x199   : > { %3435 = vmatprep.subr.bf16.mxu1 %v3434_v62  ;;  %v980_v59 = vld [vmem:[#allocation8 + $0xa70] sm:$0xff]  ;;  %v1005_v62 = vld [vmem:[#allocation8 + $0xb38] sm:$0xff]  ;;  %v2005_v53 = vld [vmem:[#allocation10 + $0x1a8] sm:$0xff] }
 0x19a   : > { %v3528_v1 = vpack.c.bf16 %v980_v59, %v968_v58  ;;  %v3530_v3 = vpack.c.bf16 %v1005_v62, %v993_v61  ;;  %v3925_v18 = vld [vmem:[%s4479_s20] sm:$0xff]  ;;  %v1952_v58 = vld [vmem:[#allocation10] sm:$0xff] }
 0x19b   : > { %3509 = vmatpush1.bf16.msra.mxu0 %v3508_v4  ;;  %v990_v4 = vld [vmem:[#allocation8 + $0xac0] sm:$0xff]  ;;  %v1954_v59 = vld [vmem:[#allocation10 + $0x10] sm:$0xff]  ;;  %v1957_v61 = vld [vmem:[#allocation10 + $0x28] sm:$0xff] }
 0x19c   : > { %3437 = vmatpush1.bf16.msra.mxu1 %v3436_v5  ;;  %3511 = vmatprep.subr.bf16.mxu0 %v3510_v7  ;;  %v992_v5 = vld [vmem:[#allocation8 + $0xad0] sm:$0xff]  ;;  %v1965_v62 = vld [vmem:[#allocation10 + $0x68] sm:$0xff] }
 0x19d   : > { %3439 = vmatprep.subr.bf16.mxu1 %v3438_v11  ;;  %v1004_v7 = vld [vmem:[#allocation8 + $0xb30] sm:$0xff]  ;;  %v1029_v11 = vld [vmem:[#allocation8 + $0xbf8] sm:$0xff] }
 0x19e   : > { %v3532_v17 = vpack.c.bf16 %v1004_v7, %v992_v5  ;;  %v1962_v5 = vld [vmem:[#allocation10 + $0x50] sm:$0xff]  ;;  %v1964_v7 = vld [vmem:[#allocation10 + $0x60] sm:$0xff] }
 0x19f   : > { %3513 = vmatpush1.bf16.msra.mxu0 %v3512_v19 }
 0x1a0   : > { %3441 = vmatpush1.bf16.msra.mxu1 %v3440_v20  ;;  %3515 = vmatprep.subr.bf16.mxu0 %v3514_v21  ;;  %v3460_v20 = vpack.c.bf16 %v1002_v9, %v990_v4  ;;  %v3534_v21 = vpack.c.bf16 %v1029_v11, %v1017_v10  ;;  %v3646_v4 = vpack.c.bf16 %v1970_v63, %v1965_v62  ;;  %v1967_v10 = vld [vmem:[#allocation10 + $0x78] sm:$0xff] }
 0x1a1   : > { %3443 = vmatprep.subr.bf16.mxu1 %v3442_v25  ;;  %v3462_v25 = vpack.c.bf16 %v1027_v15, %v1015_v14  ;;  %v1975_v11 = vld [vmem:[#allocation10 + $0xb8] sm:$0xff]  ;;  %v1973_v15 = vld [vmem:[#allocation10 + $0xa8] sm:$0xff] }
 0x1a2   : > { %v3926_v14 = vld [vmem:[%s4479_s20 + $0x10] sm:$0xff]  ;;  %s4202_s20 = smov [#allocation11]  }
 0x1a3   : > { %3517 = vmatpush1.bf16.msra.mxu0 %v3516_v31  ;;  %v3536_v31 = vpack.c.bf16 %v1028_v24, %v1016_v23  ;;  %v1974_v23 = vld [vmem:[#allocation10 + $0xb0] sm:$0xff]  ;;  %v1979_v24 = vld [vmem:[#allocation10 + $0xd8] sm:$0xff]  ;;  %s4075_s30 = sshll.u32 %s4202_s20, 4  ;;  %s4076_s30 = int_to_ptr.vmem [resolvable:$false] %s4075_s30 }
 0x1a4   : > { %3445 = vmatpush1.bf16.msra.mxu1 %v3444_v32  ;;  %3519 = vmatprep.subr.bf16.mxu0 %v3518_v33  ;;  %v3464_v32 = vpack.c.bf16 %v1026_v26, %v1014_v22  ;;  %v3538_v33 = vpack.c.bf16 %v1053_v28, %v1041_v27  ;;  %v1972_v22 = vld [vmem:[#allocation10 + $0xa0] sm:$0xff]  ;;  %v1977_v26 = vld [vmem:[#allocation10 + $0xc8] sm:$0xff]  ;;  %v1990_v28 = vld [vmem:[#allocation10 + $0x130] sm:$0xff]  ;;  %s4077_s17 = scalar_lea.vmem %s4076_s30, 768  ;;  %p4078_p8 = scmp.lt.s32.totalorder %s4590_s14, %s4076_s30 }
 0x1a5   : > { %3447 = vmatprep.subr.bf16.mxu1 %v3446_v37  ;;  %v3466_v37 = vpack.c.bf16 %v1051_v30, %v1039_v29  ;;  %v1985_v27 = vld [vmem:[#allocation10 + $0x108] sm:$0xff]  ;;  %v1983_v29 = vld [vmem:[#allocation10 + $0xf8] sm:$0xff]  ;;  %v1988_v30 = vld [vmem:[#allocation10 + $0x120] sm:$0xff]  ;;  %p4079_p6 = scmp.lt.s32.totalorder %s4077_s17, %s4071_s3 }
 0x1a6   : > { %v2007_v62 = vld [vmem:[#allocation10 + $0x1b8] sm:$0xff] }
 0x1a7   : > { %3521 = vmatpush1.bf16.msra.mxu0 %v3520_v42  ;;  %v3540_v42 = vpack.c.bf16 %v1052_v36, %v1040_v35  ;;  %v1984_v35 = vld [vmem:[#allocation10 + $0x100] sm:$0xff]  ;;  %v1989_v36 = vld [vmem:[#allocation10 + $0x128] sm:$0xff]  ;;  %v2015_v63 = vld [vmem:[#allocation10 + $0x1f8] sm:$0xff]  ;;  %p4080_p10 = por %p4079_p6, %p4078_p8 }
 0x1a8   : > { %3449 = vmatpush1.bf16.msra.mxu1 %v3448_v43  ;;  %3523 = vmatprep.subr.bf16.mxu0 %v3522_v44  ;;  %v3468_v43 = vpack.c.bf16 %v1050_v38, %v1038_v34  ;;  %v3542_v44 = vpack.c.bf16 %v1077_v40, %v1065_v39  ;;  %v1982_v34 = vld [vmem:[#allocation10 + $0xf0] sm:$0xff]  ;;  %v1987_v38 = vld [vmem:[#allocation10 + $0x118] sm:$0xff]  ;;  %v2000_v40 = vld [vmem:[#allocation10 + $0x180] sm:$0xff] }
 0x1a9   : > { %3451 = vmatprep.subr.bf16.mxu1 %v3450_v49  ;;  %v3470_v49 = vpack.c.bf16 %v1075_v41, %v1063_v47  ;;  %v1995_v39 = vld [vmem:[#allocation10 + $0x158] sm:$0xff]  ;;  %v1993_v47 = vld [vmem:[#allocation10 + $0x148] sm:$0xff]  ;;  %v1998_v41 = vld [vmem:[#allocation10 + $0x170] sm:$0xff]  ;;  %p4081_p13 = pnand %p4080_p10, %p4074_p0 }
 0x1ab   : > { %3525 = vmatpush1.bf16.msra.mxu0 %v3524_v55  ;;  %v1958_v55 = vld [vmem:[#allocation10 + $0x30] sm:$0xff] }
 0x1ac   : > { %3453 = vmatpush1.bf16.msra.mxu1 %v3452_v56  ;;  %3527 = vmatprep.subr.bf16.mxu0 %v3526_v51  ;;  %v3544_v56 = vpack.c.bf16 %v1076_v48, %v1064_v46  ;;  %v3472_v51 = vpack.c.bf16 %v1074_v50, %v1062_v45  ;;  %v3546_v60 = vpack.c.bf16 %v1958_v55, %v1953_v54  ;;  %v1992_v45 = vld [vmem:[#allocation10 + $0x140] sm:$0xff]  ;;  %v1994_v46 = vld [vmem:[#allocation10 + $0x150] sm:$0xff]  ;;  %v1999_v48 = vld [vmem:[#allocation10 + $0x178] sm:$0xff] }
 0x1ad   : > { %3455 = vmatprep.subr.bf16.mxu1 %v3454_v13  ;;  %v2928_v12 = vpop.f32.mrb[0].mxu1  ;;  %v1959_v13 = vld [vmem:[#allocation10 + $0x38] sm:$0xff]  ;;  %v3562_v50 = vpack.c.bf16 %v1998_v41, %v1993_v47  ;;  %v2048_v41 = vld [vmem:[#allocation10 + $0x300] sm:$0xff] }
 0x1ae   : > { %v2929_v16 = vpop.f32.mrb[1].mxu1  ;;  %v2003_v55 = vld [vmem:[#allocation10 + $0x198] sm:$0xff] }
 0x1af   : > { %3529 = vmatpush1.bf16.msra.mxu0 %v3528_v1  ;;  %v4529_v19 = vadd.f32 %v2929_v16, %v2928_v12  ;;  %v1968_v1 = vld [vmem:[#allocation10 + $0x80] sm:$0xff]  ;;  %v1978_v16 = vld [vmem:[#allocation10 + $0xd0] sm:$0xff]  ;;  %v2043_v47 = vld [vmem:[#allocation10 + $0x2d8] sm:$0xff] }
 0x1b0   : > { %3457 = vmatpush1.bf16.msra.mxu1 %v3456_v2  ;;  %3531 = vmatprep.subr.bf16.mxu0 %v3530_v3  ;;  %v3644_v2 = vpack.c.bf16 %v1959_v13, %v1954_v59  ;;  %v3548_v3 = vpack.c.bf16 %v1957_v61, %v1952_v58  ;;  %v3550_v9 = vpack.c.bf16 %v1968_v1, %v1963_v0  ;;  %v1980_v12 = vld [vmem:[#allocation10 + $0xe0] sm:$0xff]  ;;  %v2002_v59 = vld [vmem:[#allocation10 + $0x190] sm:$0xff]  ;;  %v2013_v1 = vld [vmem:[#allocation10 + $0x1e8] sm:$0xff] }
 0x1b1   : > { %3459 = vmatprep.subr.bf16.mxu1 %v3458_v8  ;;  %v1969_v8 = vld [vmem:[#allocation10 + $0x88] sm:$0xff]  ;;  %v2004_v13 = vld [vmem:[#allocation10 + $0x1a0] sm:$0xff] }
 0x1b2   : > { %v2020_v0 = vld [vmem:[#allocation10 + $0x220] sm:$0xff] }
 0x1b3   : > { %3533 = vmatpush1.bf16.msra.mxu0 %v3532_v17  ;;  %v3648_v17 = vpack.c.bf16 %v1969_v8, %v1964_v7  ;;  %v2012_v7 = vld [vmem:[#allocation10 + $0x1e0] sm:$0xff]  ;;  %v2014_v8 = vld [vmem:[#allocation10 + $0x1f0] sm:$0xff] }
 0x1b4   : > { %3461 = vmatpush1.bf16.msra.mxu1 %v3460_v20  ;;  %3535 = vmatprep.subr.bf16.mxu0 %v3534_v21  ;;  %v3552_v20 = vpack.c.bf16 %v1967_v10, %v1962_v5  ;;  %v3650_v21 = vpack.c.bf16 %v1980_v12, %v1975_v11  ;;  %v3666_v5 = vpack.c.bf16 %v2020_v0, %v2015_v63  ;;  %v2017_v11 = vld [vmem:[#allocation10 + $0x208] sm:$0xff]  ;;  %v2070_v0 = vld [vmem:[#allocation10 + $0x3b0] sm:$0xff] }
 0x1b5   : > { %3463 = vmatprep.subr.bf16.mxu1 %v3462_v25  ;;  %v3554_v25 = vpack.c.bf16 %v1978_v16, %v1973_v15  ;;  %v2025_v12 = vld [vmem:[#allocation10 + $0x248] sm:$0xff]  ;;  %v2023_v15 = vld [vmem:[#allocation10 + $0x238] sm:$0xff]  ;;  %v2028_v16 = vld [vmem:[#allocation10 + $0x260] sm:$0xff] }
 0x1b6   : > { %v2065_v63 = vld [vmem:[#allocation10 + $0x388] sm:$0xff] }
 0x1b7   : > { %3537 = vmatpush1.bf16.msra.mxu0 %v3536_v31  ;;  %v3652_v31 = vpack.c.bf16 %v1979_v24, %v1974_v23  ;;  %v2024_v23 = vld [vmem:[#allocation10 + $0x240] sm:$0xff]  ;;  %v2029_v24 = vld [vmem:[#allocation10 + $0x268] sm:$0xff] }
 0x1b8   : > { %3465 = vmatpush1.bf16.msra.mxu1 %v3464_v32  ;;  %3539 = vmatprep.subr.bf16.mxu0 %v3538_v33  ;;  %v3556_v32 = vpack.c.bf16 %v1977_v26, %v1972_v22  ;;  %v3654_v33 = vpack.c.bf16 %v1990_v28, %v1985_v27  ;;  %v2022_v22 = vld [vmem:[#allocation10 + $0x230] sm:$0xff]  ;;  %v2027_v26 = vld [vmem:[#allocation10 + $0x258] sm:$0xff]  ;;  %v2040_v28 = vld [vmem:[#allocation10 + $0x2c0] sm:$0xff] }
 0x1b9   : > { %3467 = vmatprep.subr.bf16.mxu1 %v3466_v37  ;;  %v3558_v37 = vpack.c.bf16 %v1988_v30, %v1983_v29  ;;  %v2035_v27 = vld [vmem:[#allocation10 + $0x298] sm:$0xff]  ;;  %v2033_v29 = vld [vmem:[#allocation10 + $0x288] sm:$0xff]  ;;  %v2038_v30 = vld [vmem:[#allocation10 + $0x2b0] sm:$0xff] }
 0x1ba   : > { %1857 = vmatmul.mubr.f32.vlgmr.msra.gmra.mrb[6].mxu0 %v3925_v18 }
 0x1bb   : > { %1715 = vmatmul.mubr.f32.vlgmr.msra.gmra.mrb[10].mxu1 %v3925_v18  ;;  %3541 = vmatpush1.bf16.msra.mxu0 %v3540_v42  ;;  %v3656_v42 = vpack.c.bf16 %v1989_v36, %v1984_v35  ;;  %v2010_v18 = vld [vmem:[#allocation10 + $0x1d0] sm:$0xff]  ;;  %v2039_v36 = vld [vmem:[#allocation10 + $0x2b8] sm:$0xff] }
 0x1bc   : > { %3469 = vmatpush1.bf16.msra.mxu1 %v3468_v43  ;;  %3543 = vmatprep.subr.bf16.mxu0 %v3542_v44  ;;  %v3560_v43 = vpack.c.bf16 %v1987_v38, %v1982_v34  ;;  %v3658_v44 = vpack.c.bf16 %v2000_v40, %v1995_v39  ;;  %v3662_v58 = vpack.c.bf16 %v2010_v18, %v2005_v53  ;;  %v2032_v34 = vld [vmem:[#allocation10 + $0x280] sm:$0xff]  ;;  %v2034_v35 = vld [vmem:[#allocation10 + $0x290] sm:$0xff]  ;;  %v2037_v38 = vld [vmem:[#allocation10 + $0x2a8] sm:$0xff] }
 0x1bd   : > { %3471 = vmatprep.subr.bf16.mxu1 %v3470_v49  ;;  %1785 = vmatprep.mubr.f32.mxu1 %v4194_v6  ;;  %v2045_v39 = vld [vmem:[#allocation10 + $0x2e8] sm:$0xff]  ;;  %v2050_v40 = vld [vmem:[#allocation10 + $0x310] sm:$0xff]  ;;  %v2055_v53 = vld [vmem:[#allocation10 + $0x338] sm:$0xff] }
 0x1be   : > { %1927 = vmatprep.mubr.f32.mxu0 %v4194_v6  ;;  %v2060_v18 = vld [vmem:[#allocation10 + $0x360] sm:$0xff] }
 0x1bf   : > { %3545 = vmatpush1.bf16.msra.mxu0 %v3544_v56  ;;  %v2008_v56 = vld [vmem:[#allocation10 + $0x1c0] sm:$0xff] }
 0x1c0   : > { %3473 = vmatpush1.bf16.msra.mxu1 %v3472_v51  ;;  %3643 = vmatprep.subr.bf16.mxu0 %v3642_v57  ;;  %v3660_v51 = vpack.c.bf16 %v1999_v48, %v1994_v46  ;;  %v3564_v57 = vpack.c.bf16 %v1997_v52, %v1992_v45  ;;  %v3566_v61 = vpack.c.bf16 %v2008_v56, %v2003_v55  ;;  %v2042_v45 = vld [vmem:[#allocation10 + $0x2d0] sm:$0xff]  ;;  %v2044_v46 = vld [vmem:[#allocation10 + $0x2e0] sm:$0xff]  ;;  %v2049_v48 = vld [vmem:[#allocation10 + $0x308] sm:$0xff] }
 0x1c1   : > { %3547 = vmatprep.subr.bf16.mxu1 %v3546_v60  ;;  %v2009_v60 = vld [vmem:[#allocation10 + $0x1c8] sm:$0xff]  ;;  %v2047_v52 = vld [vmem:[#allocation10 + $0x2f8] sm:$0xff]  ;;  %v2058_v56 = vld [vmem:[#allocation10 + $0x350] sm:$0xff] }
 0x1c2   : > { %2889 = vmatmul.mubr.msk.f32.vlgmr.msra.gmra.mrb[6].mxu0 %vm1078_vm0, %v3926_v14  ;;  %v2053_v55 = vld [vmem:[#allocation10 + $0x328] sm:$0xff] }
 0x1c3   : > { %2888 = vmatmul.mubr.msk.f32.vlgmr.msra.gmra.mrb[10].mxu1 %vm1078_vm0, %v3926_v14  ;;  %3645 = vmatpush1.bf16.msra.mxu0 %v3644_v2  ;;  %v2018_v2 = vld [vmem:[#allocation10 + $0x210] sm:$0xff] }
 0x1c4   : > { %3549 = vmatpush1.bf16.msra.mxu1 %v3548_v3  ;;  %3647 = vmatprep.subr.bf16.mxu0 %v3646_v4  ;;  %v3664_v3 = vpack.c.bf16 %v2009_v60, %v2004_v13  ;;  %v3568_v4 = vpack.c.bf16 %v2007_v62, %v2002_v59  ;;  %v3570_v10 = vpack.c.bf16 %v2018_v2, %v2013_v1  ;;  %v2030_v14 = vld [vmem:[#allocation10 + $0x270] sm:$0xff]  ;;  %v2052_v59 = vld [vmem:[#allocation10 + $0x320] sm:$0xff]  ;;  %v2059_v60 = vld [vmem:[#allocation10 + $0x358] sm:$0xff] }
 0x1c5   : > { %3551 = vmatprep.subr.bf16.mxu1 %v3550_v9  ;;  %v2019_v9 = vld [vmem:[#allocation10 + $0x218] sm:$0xff]  ;;  %v2054_v13 = vld [vmem:[#allocation10 + $0x330] sm:$0xff]  ;;  %v2057_v62 = vld [vmem:[#allocation10 + $0x348] sm:$0xff] }
 0x1c6   : > { %v2063_v1 = vld [vmem:[#allocation10 + $0x378] sm:$0xff]  ;;  %v2068_v2 = vld [vmem:[#allocation10 + $0x3a0] sm:$0xff] }
 0x1c7   : > { %3649 = vmatpush1.bf16.msra.mxu0 %v3648_v17  ;;  %v3668_v17 = vpack.c.bf16 %v2019_v9, %v2014_v8  ;;  %v2064_v8 = vld [vmem:[#allocation10 + $0x380] sm:$0xff]  ;;  %v2069_v9 = vld [vmem:[#allocation10 + $0x3a8] sm:$0xff] }
 0x1c8   : > { %3553 = vmatpush1.bf16.msra.mxu1 %v3552_v20  ;;  %3651 = vmatprep.subr.bf16.mxu0 %v3650_v21  ;;  %v3572_v20 = vpack.c.bf16 %v2017_v11, %v2012_v7  ;;  %v3670_v21 = vpack.c.bf16 %v2030_v14, %v2025_v12  ;;  %v2062_v7 = vld [vmem:[#allocation10 + $0x370] sm:$0xff]  ;;  %v2067_v11 = vld [vmem:[#allocation10 + $0x398] sm:$0xff]  ;;  %v2080_v14 = vld [vmem:[#allocation10 + $0x400] sm:$0xff] }
 0x1c9   : > { %3555 = vmatprep.subr.bf16.mxu1 %v3554_v25  ;;  %v3574_v25 = vpack.c.bf16 %v2028_v16, %v2023_v15  ;;  %v2075_v12 = vld [vmem:[#allocation10 + $0x3d8] sm:$0xff]  ;;  %v2073_v15 = vld [vmem:[#allocation10 + $0x3c8] sm:$0xff]  ;;  %v2078_v16 = vld [vmem:[#allocation10 + $0x3f0] sm:$0xff] }
 0x1cb   : > { %3653 = vmatpush1.bf16.msra.mxu0 %v3652_v31  ;;  %v3672_v31 = vpack.c.bf16 %v2029_v24, %v2024_v23  ;;  %v2074_v23 = vld [vmem:[#allocation10 + $0x3d0] sm:$0xff]  ;;  %v2079_v24 = vld [vmem:[#allocation10 + $0x3f8] sm:$0xff] }
 0x1cc   : > { %3557 = vmatpush1.bf16.msra.mxu1 %v3556_v32  ;;  %3655 = vmatprep.subr.bf16.mxu0 %v3654_v33  ;;  %v3576_v32 = vpack.c.bf16 %v2027_v26, %v2022_v22  ;;  %v3674_v33 = vpack.c.bf16 %v2040_v28, %v2035_v27  ;;  %v2072_v22 = vld [vmem:[#allocation10 + $0x3c0] sm:$0xff]  ;;  %v2077_v26 = vld [vmem:[#allocation10 + $0x3e8] sm:$0xff]  ;;  %v2090_v28 = vld [vmem:[#allocation10 + $0x450] sm:$0xff] }
 0x1cd   : > { %v4537_v49 = vpop.f32.mrb[0].mxu0  ;;  %3559 = vmatprep.subr.bf16.mxu1 %v3558_v37  ;;  %v3578_v37 = vpack.c.bf16 %v2038_v30, %v2033_v29  ;;  %v2085_v27 = vld [vmem:[#allocation10 + $0x428] sm:$0xff]  ;;  %v2083_v29 = vld [vmem:[#allocation10 + $0x418] sm:$0xff]  ;;  %v2088_v30 = vld [vmem:[#allocation10 + $0x440] sm:$0xff] }
 0x1ce   : > { %v4539_v54 = vpop.f32.mrb[1].mxu0 }
 0x1cf   : > { %3657 = vmatpush1.bf16.msra.mxu0 %v3656_v42  ;;  %v3676_v42 = vpack.c.bf16 %v2039_v36, %v2034_v35  ;;  %v2084_v35 = vld [vmem:[#allocation10 + $0x420] sm:$0xff]  ;;  %v2089_v36 = vld [vmem:[#allocation10 + $0x448] sm:$0xff] }
 0x1d0   : > { %3561 = vmatpush1.bf16.msra.mxu1 %v3560_v43  ;;  %3659 = vmatprep.subr.bf16.mxu0 %v3658_v44  ;;  %v3580_v43 = vpack.c.bf16 %v2037_v38, %v2032_v34  ;;  %v3678_v44 = vpack.c.bf16 %v2050_v40, %v2045_v39  ;;  %v2082_v34 = vld [vmem:[#allocation10 + $0x410] sm:$0xff]  ;;  %v2087_v38 = vld [vmem:[#allocation10 + $0x438] sm:$0xff]  ;;  %v2100_v40 = vld [vmem:[#allocation10 + $0x4a0] sm:$0xff] }
 0x1d1   : > { %3563 = vmatprep.subr.bf16.mxu1 %v3562_v50  ;;  %v3582_v50 = vpack.c.bf16 %v2048_v41, %v2043_v47  ;;  %v2095_v39 = vld [vmem:[#allocation10 + $0x478] sm:$0xff]  ;;  %v2093_v47 = vld [vmem:[#allocation10 + $0x468] sm:$0xff]  ;;  %v2098_v41 = vld [vmem:[#allocation10 + $0x490] sm:$0xff] }
 0x1d3   : > { %3661 = vmatpush1.bf16.msra.mxu0 %v3660_v51  ;;  %v3680_v51 = vpack.c.bf16 %v2049_v48, %v2044_v46  ;;  %v2094_v46 = vld [vmem:[#allocation10 + $0x470] sm:$0xff]  ;;  %v2099_v48 = vld [vmem:[#allocation10 + $0x498] sm:$0xff] }
 0x1d4   : > { %3565 = vmatpush1.bf16.msra.mxu1 %v3564_v57  ;;  %3663 = vmatprep.subr.bf16.mxu0 %v3662_v58  ;;  %v3584_v57 = vpack.c.bf16 %v2047_v52, %v2042_v45  ;;  %v3682_v58 = vpack.c.bf16 %v2060_v18, %v2055_v53  ;;  %v2092_v45 = vld [vmem:[#allocation10 + $0x460] sm:$0xff]  ;;  %v2097_v52 = vld [vmem:[#allocation10 + $0x488] sm:$0xff]  ;;  %v2110_v18 = vld [vmem:[#allocation10 + $0x4f0] sm:$0xff] }
 0x1d5   : > { %3567 = vmatprep.subr.bf16.mxu1 %v3566_v61  ;;  %v3586_v61 = vpack.c.bf16 %v2058_v56, %v2053_v55  ;;  %v2105_v53 = vld [vmem:[#allocation10 + $0x4c8] sm:$0xff]  ;;  %v2103_v56 = vld [vmem:[#allocation10 + $0x4b8] sm:$0xff] }
 0x1d7   : > { %3665 = vmatpush1.bf16.msra.mxu0 %v3664_v3  ;;  %v3684_v3 = vpack.c.bf16 %v2059_v60, %v2054_v13  ;;  %v3604_v60 = vpack.c.bf16 %v2097_v52, %v2092_v45  ;;  %v2123_v45 = vld [vmem:[#allocation10 + $0x558] sm:$0xff]  ;;  %v2130_v52 = vld [vmem:[#allocation10 + $0x590] sm:$0xff] }
 0x1d8   : > { %3569 = vmatpush1.bf16.msra.mxu1 %v3568_v4  ;;  %3667 = vmatprep.subr.bf16.mxu0 %v3666_v5  ;;  %v3588_v4 = vpack.c.bf16 %v2057_v62, %v2052_v59  ;;  %v3686_v5 = vpack.c.bf16 %v2070_v0, %v2065_v63  ;;  %v3700_v59 = vpack.c.bf16 %v2099_v48, %v2094_v46  ;;  %v2102_v62 = vld [vmem:[#allocation10 + $0x4b0] sm:$0xff]  ;;  %v2104_v63 = vld [vmem:[#allocation10 + $0x4c0] sm:$0xff]  ;;  %v2109_v0 = vld [vmem:[#allocation10 + $0x4e8] sm:$0xff] }
 0x1d9   : > { %3571 = vmatprep.subr.bf16.mxu1 %v3570_v10  ;;  %v3590_v10 = vpack.c.bf16 %v2068_v2, %v2063_v1  ;;  %v2107_v2 = vld [vmem:[#allocation10 + $0x4d8] sm:$0xff]  ;;  %v2128_v48 = vld [vmem:[#allocation10 + $0x580] sm:$0xff] }
 0x1db   : > { %3669 = vmatpush1.bf16.msra.mxu0 %v3668_v17  ;;  %v3688_v17 = vpack.c.bf16 %v2069_v9, %v2064_v8  ;;  %v2118_v8 = vld [vmem:[#allocation10 + $0x530] sm:$0xff]  ;;  %v3704_v9 = vpack.c.bf16 %v2109_v0, %v2104_v63  ;;  %v2135_v63 = vld [vmem:[#allocation10 + $0x5b8] sm:$0xff]  ;;  %v2140_v0 = vld [vmem:[#allocation10 + $0x5e0] sm:$0xff] }
 0x1dc   : > { %3573 = vmatpush1.bf16.msra.mxu1 %v3572_v20  ;;  %3671 = vmatprep.subr.bf16.mxu0 %v3670_v21  ;;  %v3592_v20 = vpack.c.bf16 %v2067_v11, %v2062_v7  ;;  %v3690_v21 = vpack.c.bf16 %v2080_v14, %v2075_v12  ;;  %v2113_v7 = vld [vmem:[#allocation10 + $0x508] sm:$0xff] }
 0x1dd   : > { %3575 = vmatprep.subr.bf16.mxu1 %v3574_v25  ;;  %v3594_v25 = vpack.c.bf16 %v2078_v16, %v2073_v15  ;;  %v3610_v12 = vpack.c.bf16 %v2118_v8, %v2113_v7  ;;  %v3714_v8 = vpack.c.bf16 %v2140_v0, %v2135_v63  ;;  %v2174_v0 = vld [vmem:[#allocation10 + $0x6f0] sm:$0xff] }
 0x1df   : > { %3673 = vmatpush1.bf16.msra.mxu0 %v3672_v31  ;;  %v3692_v31 = vpack.c.bf16 %v2079_v24, %v2074_v23 }
 0x1e0   : > { %3577 = vmatpush1.bf16.msra.mxu1 %v3576_v32  ;;  %3675 = vmatprep.subr.bf16.mxu0 %v3674_v33  ;;  %v3596_v32 = vpack.c.bf16 %v2077_v26, %v2072_v22  ;;  %v3694_v33 = vpack.c.bf16 %v2090_v28, %v2085_v27  ;;  %v4196_v26 = vmov 2   ;;  %v4552_v28 = vld [vmem:[%s403_s21] sm:$0xff] }
 0x1e1   : > { %3579 = vmatprep.subr.bf16.mxu1 %v3578_v37  ;;  %v3598_v37 = vpack.c.bf16 %v2088_v30, %v2083_v29  ;;  %3918 = vset.pattern.permute.xlu1 %v4196_v26 }
 0x1e2   : > { %2644 = vperm.xlu1 %3918, %v4552_v28  }
 0x1e3   : > { %3677 = vmatpush1.bf16.msra.mxu0 %v3676_v42  ;;  %v3696_v42 = vpack.c.bf16 %v2089_v36, %v2084_v35 }
 0x1e4   : > { %3581 = vmatpush1.bf16.msra.mxu1 %v3580_v43  ;;  %3679 = vmatprep.subr.bf16.mxu0 %v3678_v44  ;;  %v3600_v43 = vpack.c.bf16 %v2087_v38, %v2082_v34  ;;  %v3698_v44 = vpack.c.bf16 %v2100_v40, %v2095_v39 }
 0x1e5   : > { %3583 = vmatprep.subr.bf16.mxu1 %v3582_v50  ;;  %v3602_v50 = vpack.c.bf16 %v2098_v41, %v2093_v47  ;;  %v2112_v41 = vld [vmem:[#allocation10 + $0x500] sm:$0xff] }
 0x1e7   : > { %3681 = vmatpush1.bf16.msra.mxu0 %v3680_v51  ;;  %v2108_v51 = vld [vmem:[#allocation10 + $0x4e0] sm:$0xff] }
 0x1e8   : > { %3585 = vmatpush1.bf16.msra.mxu1 %v3584_v57  ;;  %3683 = vmatprep.subr.bf16.mxu0 %v3682_v58  ;;  %v3606_v1 = vpack.c.bf16 %v2108_v51, %v2103_v56  ;;  %v2122_v51 = vld [vmem:[#allocation10 + $0x550] sm:$0xff] }
 0x1e9   : > { %3587 = vmatprep.subr.bf16.mxu1 %v3586_v61  ;;  %v3702_v61 = vpack.c.bf16 %v2110_v18, %v2105_v53 }
 0x1eb   : > { %3685 = vmatpush1.bf16.msra.mxu0 %v3684_v3  ;;  %v2115_v3 = vld [vmem:[#allocation10 + $0x518] sm:$0xff] }
 0x1ec   : > { %3589 = vmatpush1.bf16.msra.mxu1 %v3588_v4  ;;  %3687 = vmatprep.subr.bf16.mxu0 %v3686_v5  ;;  %v2120_v4 = vld [vmem:[#allocation10 + $0x540] sm:$0xff] }
 0x1ed   : > { %3591 = vmatprep.subr.bf16.mxu1 %v3590_v10  ;;  %v3608_v10 = vpack.c.bf16 %v2107_v2, %v2102_v62  ;;  %v3706_v11 = vpack.c.bf16 %v2120_v4, %v2115_v3  ;;  %v2138_v62 = vld [vmem:[#allocation10 + $0x5d0] sm:$0xff]  ;;  %v2132_v4 = vld [vmem:[#allocation10 + $0x5a0] sm:$0xff] }
 0x1ef   : > { %3689 = vmatpush1.bf16.msra.mxu0 %v3688_v17 }
 0x1f0   : > { %3593 = vmatpush1.bf16.msra.mxu1 %v3592_v20  ;;  %3691 = vmatprep.subr.bf16.mxu0 %v3690_v21 }
 0x1f1   : > { %3595 = vmatprep.subr.bf16.mxu1 %v3594_v25  ;;  %v4195_v25 = vmov 0  }
 0x1f2   : > { %3916 = vset.pattern.permute.xlu0 %v4195_v25  ;;  %v2144_v25 = vld [vmem:[#allocation10 + $0x600] sm:$0xff] }
 0x1f3   : > { %3693 = vmatpush1.bf16.msra.mxu0 %v3692_v31  ;;  %v2620_v31 = vmul.f32 224.0, %v4552_v28 }
 0x1f4   : > { %3597 = vmatpush1.bf16.msra.mxu1 %v3596_v32  ;;  %3695 = vmatprep.subr.bf16.mxu0 %v3694_v33 }
 0x1f5   : > { %3599 = vmatprep.subr.bf16.mxu1 %v3598_v37  ;;  %v2621_v33 = vadd.f32 1e-09, %v2620_v31  ;;  %v2155_v31 = vld [vmem:[#allocation10 + $0x658] sm:$0xff] }
 0x1f6   : > { %v1219_v55 = vpop.f32.mrb[2].mxu1 }
 0x1f7   : > { %v1934_v57 = vmul.f32 %v1219_v55, %v4537_v49  ;;  %v1221_v58 = vpop.f32.mrb[3].mxu1  ;;  %3697 = vmatpush1.bf16.msra.mxu0 %v3696_v42  ;;  %3920 = vrcp.f32 %v2621_v33  ;;  %v2117_v42 = vld [vmem:[#allocation10 + $0x528] sm:$0xff]  ;;  %v4197_v33 = vmov 1  }
 0x1f8   : > { %v1935_v13 = vmul.f32 %v1221_v58, %v4539_v54  ;;  %3601 = vmatpush1.bf16.msra.mxu1 %v3600_v43  ;;  %3699 = vmatprep.subr.bf16.mxu0 %v3698_v44  ;;  %v2114_v43 = vld [vmem:[#allocation10 + $0x510] sm:$0xff]  ;;  %v2119_v44 = vld [vmem:[#allocation10 + $0x538] sm:$0xff]  ;;  %v3612_v55 = vpack.c.bf16 %v2117_v42, %v2112_v41  ;;  %v3614_v58 = vpack.c.bf16 %v2128_v48, %v2123_v45  ;;  %v2168_v42 = vld [vmem:[#allocation10 + $0x6c0] sm:$0xff] }
 0x1f9   : > { %3603 = vmatprep.subr.bf16.mxu1 %v3602_v50  ;;  %v2125_v50 = vld [vmem:[#allocation10 + $0x568] sm:$0xff]  ;;  %v3708_v56 = vpack.c.bf16 %v2119_v44, %v2114_v43  ;;  %v2163_v41 = vld [vmem:[#allocation10 + $0x698] sm:$0xff]  ;;  %v2170_v44 = vld [vmem:[#allocation10 + $0x6d0] sm:$0xff] }
 0x1fa   : > { %v1936_v5 = vadd.f32 %v1935_v13, %v1934_v57  ;;  %v2127_v57 = vld [vmem:[#allocation10 + $0x578] sm:$0xff]  ;;  %v2124_v13 = vld [vmem:[#allocation10 + $0x560] sm:$0xff]  ;;  %v2165_v43 = vld [vmem:[#allocation10 + $0x6a8] sm:$0xff] }
 0x1fb   : > { %3701 = vmatpush1.bf16.msra.mxu0 %v3700_v59  ;;  %v3710_v59 = vpack.c.bf16 %v2130_v52, %v2125_v50  ;;  %v3616_v2 = vpack.c.bf16 %v2127_v57, %v2122_v51  ;;  %v2162_v48 = vld [vmem:[#allocation10 + $0x690] sm:$0xff]  ;;  %v2167_v50 = vld [vmem:[#allocation10 + $0x6b8] sm:$0xff]  ;;  %v3630_v52 = vpack.c.bf16 %v2168_v42, %v2163_v41  ;;  %v2173_v51 = vld [vmem:[#allocation10 + $0x6e8] sm:$0xff] }
 0x1fc   : > { %3605 = vmatpush1.bf16.msra.mxu1 %v3604_v60  ;;  %3703 = vmatprep.subr.bf16.mxu0 %v3702_v61  ;;  %v2129_v60 = vld [vmem:[#allocation10 + $0x588] sm:$0xff]  ;;  %v2178_v57 = vld [vmem:[#allocation10 + $0x710] sm:$0xff] }
 0x1fd   : > { %3607 = vmatprep.subr.bf16.mxu1 %v3606_v1  ;;  %v2133_v61 = vld [vmem:[#allocation10 + $0x5a8] sm:$0xff]  ;;  %v3712_v3 = vpack.c.bf16 %v2129_v60, %v2124_v13  ;;  %v2172_v60 = vld [vmem:[#allocation10 + $0x6e0] sm:$0xff]  ;;  %v1966_v42 = vld [vmem:[#allocation10 + $0x70] sm:$0xff] }
 0x1fe   : > { %v1361_v14 = vpop.f32.mrb[4].mxu1  ;;  %v3618_v7 = vpack.c.bf16 %v2138_v62, %v2133_v61  ;;  %v2177_v61 = vld [vmem:[#allocation10 + $0x708] sm:$0xff]  ;;  %v3634_v62 = vpack.c.bf16 %v2178_v57, %v2173_v51  ;;  %v2066_v57 = vld [vmem:[#allocation10 + $0x390] sm:$0xff] }
 0x1ff   : > { %v1363_v15 = vpop.f32.mrb[5].mxu1  ;;  %3705 = vmatpush1.bf16.msra.mxu0 %v3704_v9  ;;  %v2134_v9 = vld [vmem:[#allocation10 + $0x5b0] sm:$0xff]  ;;  %v2141_v51 = vld [vmem:[#allocation10 + $0x5e8] sm:$0xff] }
 0x200   : > { %3609 = vmatpush1.bf16.msra.mxu1 %v3608_v10  ;;  %3707 = vmatprep.subr.bf16.mxu0 %v3706_v11  ;;  %v2139_v10 = vld [vmem:[#allocation10 + $0x5d8] sm:$0xff] }
 0x201   : > { %3611 = vmatprep.subr.bf16.mxu1 %v3610_v12  ;;  %v3921_v53 = vpop.eup %3920  ;;  %v2143_v11 = vld [vmem:[#allocation10 + $0x5f8] sm:$0xff]  ;;  %v2148_v12 = vld [vmem:[#allocation10 + $0x620] sm:$0xff] }
 0x202   : > { %v2623_v1 = vmul.f32 10000.0, %v3921_v53  ;;  %v3726_v53 = vpack.c.bf16 %v2170_v44, %v2165_v43 }
 0x204   : > { %2626 = vperm.xlu0 %3916, %v2623_v1   ;;  %v2179_v1 = vld [vmem:[#allocation10 + $0x718] sm:$0xff] }
 0x208   : > { %3917 = vset.pattern.permute.xlu0 %v4197_v33 }
 0x209   : > { %2633 = vperm.xlu0 %3917, %v4552_v28   ;;  %v3632_v28 = vpack.c.bf16 %v2167_v50, %v2162_v48  ;;  %v2061_v48 = vld [vmem:[#allocation10 + $0x368] sm:$0xff] }
 0x20d   : > { %v1290_v16 = vpop.f32.mrb[2].mxu0  ;;  %3919 = vset.pattern.permute.xlu0 %v4196_v26  ;;  %v3732_v26 = vpack.c.bf16 %v2179_v1, %v2174_v0  ;;  %v2081_v0 = vld [vmem:[#allocation10 + $0x408] sm:$0xff] }
 0x20e   : > { %v1362_v17 = vadd.f32 %v1361_v14, %v1290_v16  ;;  %v1292_v20 = vpop.f32.mrb[3].mxu0  ;;  %v2145_v14 = vld [vmem:[#allocation10 + $0x608] sm:$0xff] }
 0x20f   : > { %v1364_v21 = vadd.f32 %v1363_v15, %v1292_v20  ;;  %v2150_v15 = vld [vmem:[#allocation10 + $0x630] sm:$0xff] }
 0x210   : > { %v1937_v22 = vmul.f32 %v4529_v19, %v1362_v17  ;;  %v3716_v17 = vpack.c.bf16 %v2139_v10, %v2134_v9  ;;  %v2142_v20 = vld [vmem:[#allocation10 + $0x5f0] sm:$0xff] }
 0x212   : > { %v1938_v23 = vadd.f32 %v1937_v22, %v1936_v5  ;;  %v2137_v5 = vld [vmem:[#allocation10 + $0x5c8] sm:$0xff]  ;;  %v3622_v22 = vpack.c.bf16 %v2148_v12, %v2143_v11  ;;  %v2187_v11 = vld [vmem:[#allocation10 + $0x758] sm:$0xff]  ;;  %v2184_v12 = vld [vmem:[#allocation10 + $0x740] sm:$0xff] }
 0x213   : > { %v3620_v16 = vpack.c.bf16 %v2137_v5, %v2132_v4  ;;  %v2185_v4 = vld [vmem:[#allocation10 + $0x748] sm:$0xff]  ;;  %v2190_v5 = vld [vmem:[#allocation10 + $0x770] sm:$0xff] }
 0x214   : > { %v4544_v24 = vadd.f32 %v1938_v23, %v1364_v21  ;;  %v2147_v21 = vld [vmem:[#allocation10 + $0x618] sm:$0xff]  ;;  %v3718_v23 = vpack.c.bf16 %v2150_v15, %v2145_v14  ;;  %v3734_v10 = vpack.c.bf16 %v2190_v5, %v2185_v4  ;;  %v2189_v14 = vld [vmem:[#allocation10 + $0x768] sm:$0xff]  ;;  %v2036_v15 = vld [vmem:[#allocation10 + $0x2a0] sm:$0xff] }
 0x215   : > { %v2001_v4 = vld [vmem:[#allocation10 + $0x188] sm:$0xff]  ;;  %v2156_v5 = vld [vmem:[#allocation10 + $0x660] sm:$0xff] }
 0x246   : > { %v1503_v27 = vpop.f32.mrb[6].mxu1 }
 0x247   : > { %v1940_v29 = vmul.f32 %v1503_v27, %v4537_v49  ;;  %v1505_v30 = vpop.f32.mrb[7].mxu1  ;;  %v2149_v27 = vld [vmem:[#allocation10 + $0x628] sm:$0xff] }
 0x248   : > { %v1941_v32 = vmul.f32 %v1505_v30, %v4539_v54  ;;  %v2158_v30 = vld [vmem:[#allocation10 + $0x670] sm:$0xff] }
 0x24a   : > { %v1942_v34 = vadd.f32 %v1941_v32, %v1940_v29  ;;  %v2153_v29 = vld [vmem:[#allocation10 + $0x648] sm:$0xff]  ;;  %v2160_v32 = vld [vmem:[#allocation10 + $0x680] sm:$0xff] }
 0x24d   : > { %v1574_v35 = vpop.f32.mrb[4].mxu0 }
 0x24e   : > { %v1645_v36 = vpop.f32.mrb[8].mxu1  ;;  %v1576_v37 = vpop.f32.mrb[5].mxu0 }
 0x24f   : > { %v1646_v38 = vadd.f32 %v1645_v36, %v1574_v35  ;;  %v1647_v39 = vpop.f32.mrb[9].mxu1  ;;  %v3720_v35 = vpack.c.bf16 %v2149_v27, %v2144_v25  ;;  %v2152_v36 = vld [vmem:[#allocation10 + $0x640] sm:$0xff] }
 0x250   : > { %v1648_v40 = vadd.f32 %v1647_v39, %v1576_v37  ;;  %v2157_v37 = vld [vmem:[#allocation10 + $0x668] sm:$0xff]  ;;  %v3722_v39 = vpack.c.bf16 %v2160_v32, %v2155_v31  ;;  %v1956_v32 = vld [vmem:[#allocation10 + $0x20] sm:$0xff] }
 0x251   : > { %v1943_v47 = vmul.f32 %v4529_v19, %v1646_v38  ;;  %v3626_v38 = vpack.c.bf16 %v2158_v30, %v2153_v29  ;;  %v3628_v45 = vpack.c.bf16 %v2157_v37, %v2152_v36  ;;  %v2116_v36 = vld [vmem:[#allocation10 + $0x520] sm:$0xff]  ;;  %v2121_v37 = vld [vmem:[#allocation10 + $0x548] sm:$0xff] }
 0x252   : > { %v3771_v41 = vpack.c.bf16 %v2121_v37, %v2116_v36  ;;  %v2026_v36 = vld [vmem:[#allocation10 + $0x250] sm:$0xff] }
 0x253   : > { %v1944_v46 = vadd.f32 %v1943_v47, %v1942_v34  ;;  %v3624_v34 = vpack.c.bf16 %v2147_v21, %v2142_v20  ;;  %v2159_v47 = vld [vmem:[#allocation10 + $0x678] sm:$0xff]  ;;  %v3736_v20 = vpack.c.bf16 %v2189_v14, %v2184_v12 }
 0x254   : > { %v2011_v14 = vld [vmem:[#allocation10 + $0x1d8] sm:$0xff] }
 0x255   : > { %v4559_v18 = vadd.f32 %v1944_v46, %v1648_v40  ;;  %v2154_v40 = vld [vmem:[#allocation10 + $0x650] sm:$0xff] }
 0x256   : > { %v3724_v46 = vpack.c.bf16 %v2159_v47, %v2154_v40 }
 0x257   : > { %2256 = vmatprep.mubr.f32.mxu1 %v4559_v18  ;;  %2398 = vmatprep.mubr.f32.mxu0 %v4559_v18 }
 0x258   : > { %2257 = vmatmul.mubr.f32.vlgmr.msra.gmra.mrb[12].mxu1 %v4544_v24  ;;  %2399 = vmatmul.mubr.f32.vlgmr.msra.gmra.mrb[8].mxu0 %v4544_v24 }
 0x259   : > { %3613 = vmatpush1.bf16.msra.mxu1 %v3612_v55  ;;  %3709 = vmatpush1.bf16.msra.mxu0 %v3708_v56  ;;  %v2164_v55 = vld [vmem:[#allocation10 + $0x6a0] sm:$0xff]  ;;  %v2169_v56 = vld [vmem:[#allocation10 + $0x6c8] sm:$0xff] }
 0x25a   : > { %3615 = vmatprep.subr.bf16.mxu1 %v3614_v58  ;;  %3711 = vmatprep.subr.bf16.mxu0 %v3710_v59  ;;  %v2175_v58 = vld [vmem:[#allocation10 + $0x6f8] sm:$0xff]  ;;  %v2180_v59 = vld [vmem:[#allocation10 + $0x720] sm:$0xff]  ;;  %v3728_v13 = vpack.c.bf16 %v2169_v56, %v2164_v55  ;;  %v1981_v55 = vld [vmem:[#allocation10 + $0xe8] sm:$0xff] }
 0x25b   : > { %2327 = vmatprep.mubr.f32.mxu1 %v4194_v6  ;;  %2469 = vmatprep.mubr.f32.mxu0 %v4194_v6  ;;  %v3730_v63 = vpack.c.bf16 %v2180_v59, %v2175_v58  ;;  %v2136_v56 = vld [vmem:[#allocation10 + $0x5c0] sm:$0xff]  ;;  %v2071_v58 = vld [vmem:[#allocation10 + $0x3b8] sm:$0xff] }
 0x25d   : > { %3617 = vmatpush1.bf16.msra.mxu1 %v3616_v2  ;;  %3713 = vmatpush1.bf16.msra.mxu0 %v3712_v3  ;;  %v2183_v2 = vld [vmem:[#allocation10 + $0x738] sm:$0xff]  ;;  %v2188_v3 = vld [vmem:[#allocation10 + $0x760] sm:$0xff] }
 0x25e   : > { %3619 = vmatprep.subr.bf16.mxu1 %v3618_v7  ;;  %3715 = vmatprep.subr.bf16.mxu0 %v3714_v8  ;;  %v3636_v7 = vpack.c.bf16 %v2177_v61, %v2172_v60  ;;  %v2182_v8 = vld [vmem:[#allocation10 + $0x730] sm:$0xff]  ;;  %v3638_v9 = vpack.c.bf16 %v2188_v3, %v2183_v2  ;;  %v1991_v60 = vld [vmem:[#allocation10 + $0x138] sm:$0xff]  ;;  %v1996_v3 = vld [vmem:[#allocation10 + $0x160] sm:$0xff] }
 0x25f   : > { %v2146_v61 = vld [vmem:[#allocation10 + $0x610] sm:$0xff] }
 0x261   : > { %3621 = vmatpush1.bf16.msra.mxu1 %v3620_v16  ;;  %3717 = vmatpush1.bf16.msra.mxu0 %v3716_v17  ;;  %v2041_v16 = vld [vmem:[#allocation10 + $0x2c8] sm:$0xff]  ;;  %v3640_v17 = vpack.c.bf16 %v2187_v11, %v2182_v8  ;;  %v2091_v8 = vld [vmem:[#allocation10 + $0x458] sm:$0xff]  ;;  %v2006_v11 = vld [vmem:[#allocation10 + $0x1b0] sm:$0xff] }
 0x262   : > { %3623 = vmatprep.subr.bf16.mxu1 %v3622_v22  ;;  %3719 = vmatprep.subr.bf16.mxu0 %v3718_v23  ;;  %v3738_v21 = vpack.c.bf16 %v2041_v16, %v2036_v15  ;;  %v4198_v22 = vmov 0.0|0.0   ;;  %v2166_v15 = vld [vmem:[#allocation10 + $0x6b0] sm:$0xff]  ;;  %v2171_v16 = vld [vmem:[#allocation10 + $0x6d8] sm:$0xff] }
 0x265   : > { %3625 = vmatpush1.bf16.msra.mxu1 %v3624_v34  ;;  %3721 = vmatpush1.bf16.msra.mxu0 %v3720_v35  ;;  %v1961_v35 = vld [vmem:[#allocation10 + $0x48] sm:$0xff] }
 0x266   : > { %3627 = vmatprep.subr.bf16.mxu1 %v3626_v38  ;;  %3723 = vmatprep.subr.bf16.mxu0 %v3722_v39  ;;  %v2046_v38 = vld [vmem:[#allocation10 + $0x2f0] sm:$0xff]  ;;  %v2051_v39 = vld [vmem:[#allocation10 + $0x318] sm:$0xff]  ;;  %v3740_v47 = vpack.c.bf16 %v1961_v35, %v1956_v32 }
 0x267   : > { %v3742_v44 = vpack.c.bf16 %v2051_v39, %v2046_v38  ;;  %v2106_v32 = vld [vmem:[#allocation10 + $0x4d0] sm:$0xff]  ;;  %v2031_v38 = vld [vmem:[#allocation10 + $0x278] sm:$0xff] }
 0x268   : > { %v2186_v39 = vld [vmem:[#allocation10 + $0x750] sm:$0xff] }
 0x269   : > { %3629 = vmatpush1.bf16.msra.mxu1 %v3628_v45  ;;  %3725 = vmatpush1.bf16.msra.mxu0 %v3724_v46  ;;  %v2126_v45 = vld [vmem:[#allocation10 + $0x570] sm:$0xff]  ;;  %v2131_v46 = vld [vmem:[#allocation10 + $0x598] sm:$0xff] }
 0x26a   : > { %3631 = vmatprep.subr.bf16.mxu1 %v3630_v52  ;;  %3727 = vmatprep.subr.bf16.mxu0 %v3726_v53  ;;  %v3774_v50 = vpack.c.bf16 %v2131_v46, %v2126_v45  ;;  %v1976_v52 = vld [vmem:[#allocation10 + $0xc0] sm:$0xff] }
 0x26b   : > { %v3748_v59 = vpack.c.bf16 %v1981_v55, %v1976_v52 }
 0x26d   : > { %3633 = vmatpush1.bf16.msra.mxu1 %v3632_v28  ;;  %3729 = vmatpush1.bf16.msra.mxu0 %v3728_v13  ;;  %v3777_v28 = vpack.c.bf16 %v2141_v51, %v2136_v56  ;;  %v1986_v13 = vld [vmem:[#allocation10 + $0x110] sm:$0xff]  ;;  %v2645_v56 = vpop.permute.xlu1 %2644 }
 0x26e   : > { %3635 = vmatprep.subr.bf16.mxu1 %v3634_v62  ;;  %3731 = vmatprep.subr.bf16.mxu0 %v3730_v63  ;;  %v2151_v62 = vld [vmem:[#allocation10 + $0x638] sm:$0xff]  ;;  %v2076_v63 = vld [vmem:[#allocation10 + $0x3e0] sm:$0xff]  ;;  %v3752_v1 = vpack.c.bf16 %v1991_v60, %v1986_v13 }
 0x26f   : > { %v3780_v2 = vpack.c.bf16 %v2151_v62, %v2146_v61 }
 0x271   : > { %3637 = vmatpush1.bf16.msra.mxu1 %v3636_v7  ;;  %3733 = vmatpush1.bf16.msra.mxu0 %v3732_v26  ;;  %v2161_v7 = vld [vmem:[#allocation10 + $0x688] sm:$0xff]  ;;  %v2086_v26 = vld [vmem:[#allocation10 + $0x430] sm:$0xff] }
 0x272   : > { %3639 = vmatprep.subr.bf16.mxu1 %v3638_v9  ;;  %3735 = vmatprep.subr.bf16.mxu0 %v3734_v10  ;;  %v3756_v9 = vpack.c.bf16 %v2001_v4, %v1996_v3  ;;  %v3783_v10 = vpack.c.bf16 %v2161_v7, %v2156_v5  ;;  %v3758_v12 = vpack.c.bf16 %v2091_v8, %v2086_v26 }
 0x275   : > { %3641 = vmatpush1.bf16.msra.mxu1 %v3640_v17  ;;  %3737 = vmatpush1.bf16.msra.mxu0 %v3736_v20  ;;  %v2096_v17 = vld [vmem:[#allocation10 + $0x480] sm:$0xff]  ;;  %v2101_v20 = vld [vmem:[#allocation10 + $0x4a8] sm:$0xff] }
 0x276   : > { %3739 = vmatprep.subr.bf16.mxu1 %v3738_v21  ;;  %3770 = vmatprep.subr.bf16.mxu0 %v4198_v22  ;;  %v3760_v21 = vpack.c.bf16 %v2011_v14, %v2006_v11 }
 0x295   : > { %v1929_v23 = vpop.f32.mrb[6].mxu0 }
 0x296   : > { %v1787_v25 = vpop.f32.mrb[10].mxu1  ;;  %v1931_v27 = vpop.f32.mrb[7].mxu0  ;;  %v1949_v33 = vmul.f32 %v4529_v19, %v1929_v23  ;;  %v3786_v23 = vpack.c.bf16 %v2171_v16, %v2166_v15 }
 0x297   : > { %v1946_v29 = vmul.f32 %v1787_v25, %v4537_v49  ;;  %v1789_v30 = vpop.f32.mrb[11].mxu1  ;;  %v1971_v49 = vld [vmem:[#allocation10 + $0x98] sm:$0xff]  ;;  %v2016_v25 = vld [vmem:[#allocation10 + $0x200] sm:$0xff] }
 0x298   : > { %v1947_v31 = vmul.f32 %v1789_v30, %v4539_v54  ;;  %v2056_v54 = vld [vmem:[#allocation10 + $0x340] sm:$0xff]  ;;  %v3744_v19 = vpack.c.bf16 %v1971_v49, %v1966_v42  ;;  %v2627_v42 = vpop.permute.xlu0 %2626 }
 0x299   : > { %v3746_v53 = vpack.c.bf16 %v2061_v48, %v2056_v54  ;;  %v2176_v30 = vld [vmem:[#allocation10 + $0x700] sm:$0xff] }
 0x29a   : > { %v1948_v34 = vadd.f32 %v1947_v31, %v1946_v29  ;;  %v2021_v29 = vld [vmem:[#allocation10 + $0x228] sm:$0xff] }
 0x29b   : > { %v2181_v31 = vld [vmem:[#allocation10 + $0x728] sm:$0xff] }
 0x29c   : > { %v1950_v40 = vadd.f32 %v1949_v33, %v1948_v34  ;;  %v2111_v33 = vld [vmem:[#allocation10 + $0x4f8] sm:$0xff]  ;;  %v3764_v34 = vpack.c.bf16 %v2021_v29, %v2016_v25  ;;  %v3789_v35 = vpack.c.bf16 %v2181_v31, %v2176_v30 }
 0x29d   : > { %v3766_v37 = vpack.c.bf16 %v2111_v33, %v2106_v32 }
 0x29e   : > { %v4573_v43 = vadd.f32 %v1950_v40, %v1931_v27  ;;  %v3762_v27 = vpack.c.bf16 %v2101_v20, %v2096_v17  ;;  %v2191_v40 = vld [vmem:[#allocation10 + $0x778] sm:$0xff] }
 0x2a0   : > { %2328 = vmatmul.mubr.f32.vlgmr.msra.gmra.mrb[12].mxu1 %v4573_v43  ;;  %2470 = vmatmul.mubr.f32.vlgmr.msra.gmra.mrb[8].mxu0 %v4573_v43 }
 0x2a1   : > { %3741 = vmatpush3.bf16.msra.mxu1 %v3740_v47  ;;  %3772 = vmatpush3.bf16.msra.mxu0 %v3771_v41  ;;  %v3768_v47 = vpack.c.bf16 %v2031_v38, %v2026_v36  ;;  %v3792_v41 = vpack.c.bf16 %v2191_v40, %v2186_v39 }
 0x2a2   : > { %2540 = vmatprep.mubr.f32.mxu1 %v4559_v18  ;;  %3743 = vmatprep.subr.bf16.mxu1 %v3742_v44  ;;  %v3750_v18 = vpack.c.bf16 %v2071_v58, %v2066_v57 }
 0x2a3   : > { %3773 = vmatprep.subr.bf16.mxu0 %v4198_v22  ;;  %3015 = vmatprep.mubr.msk.f32.mxu0 %vm4199_vm1, %v4194_v6  ;;  %v3754_v6 = vpack.c.bf16 %v2081_v0, %v2076_v63 }
 0x2a5   : > { %3745 = vmatpush3.bf16.msra.mxu1 %v3744_v19  ;;  %3775 = vmatpush3.bf16.msra.mxu0 %v3774_v50 }
 0x2a6   : > { %3747 = vmatprep.subr.bf16.mxu1 %v3746_v53  ;;  %3776 = vmatprep.subr.bf16.mxu0 %v4198_v22  ;;  %v2634_v53 = vpop.permute.xlu0 %2633 }
 0x2a9   : > { %3749 = vmatpush3.bf16.msra.mxu1 %v3748_v59  ;;  %3778 = vmatpush3.bf16.msra.mxu0 %v3777_v28 }
 0x2aa   : > { %3751 = vmatprep.subr.bf16.mxu1 %v3750_v18  ;;  %3779 = vmatprep.subr.bf16.mxu0 %v4198_v22 }
 0x2ad   : > { %3753 = vmatpush3.bf16.msra.mxu1 %v3752_v1  ;;  %3781 = vmatpush3.bf16.msra.mxu0 %v3780_v2 }
 0x2ae   : > { %3755 = vmatprep.subr.bf16.mxu1 %v3754_v6  ;;  %3782 = vmatprep.subr.bf16.mxu0 %v4198_v22 }
 0x2b1   : > { %3757 = vmatpush3.bf16.msra.mxu1 %v3756_v9  ;;  %3784 = vmatpush3.bf16.msra.mxu0 %v3783_v10 }
 0x2b2   : > { %3759 = vmatprep.subr.bf16.mxu1 %v3758_v12  ;;  %3785 = vmatprep.subr.bf16.mxu0 %v4198_v22 }
 0x2b5   : > { %3761 = vmatpush3.bf16.msra.mxu1 %v3760_v21  ;;  %3787 = vmatpush3.bf16.msra.mxu0 %v3786_v23 }
 0x2b6   : > { %3763 = vmatprep.subr.bf16.mxu1 %v3762_v27  ;;  %3788 = vmatprep.subr.bf16.mxu0 %v4198_v22 }
 0x2b9   : > { %3765 = vmatpush3.bf16.msra.mxu1 %v3764_v34  ;;  %3790 = vmatpush3.bf16.msra.mxu0 %v3789_v35 }
 0x2ba   : > { %3767 = vmatprep.subr.bf16.mxu1 %v3766_v37  ;;  %3791 = vmatprep.subr.bf16.mxu0 %v4198_v22 }
 0x2bd   : > { %3769 = vmatpush3.bf16.msra.mxu1 %v3768_v47  ;;  %3793 = vmatpush3.bf16.msra.mxu0 %v3792_v41 }
 0x2c0   : > { %2541 = vmatmul.mubr.f32.vlgmr.msra.gmra.mrb[14].mxu1 %v4544_v24  ;;  %3016 = vmatmul.mubr.f32.vlgmr.msra.gmra.mrb[10].mxu0 %v4573_v43 }
 0x373   : > { %v2329_v44 = vpop.f32.mrb[12].mxu1  ;;  %v2471_v49 = vpop.f32.mrb[8].mxu0 }
 0x374   : > { %2616 = vst [vmem:[%s392_s15] sm:$0xff] %v2329_v44  ;;  %2618 = vst [vmem:[%s392_s15 + $0x10] sm:$0xff] %v2471_v49  ;;  %v2331_v45 = vpop.f32.mrb[13].mxu1  ;;  %v2473_v46 = vpop.f32.mrb[9].mxu0 }
 0x375   : > { %2617 = vst [vmem:[%s392_s15 + $0x8] sm:$0xff] %v2331_v45  ;;  %v2629_v54 = vadd.f32 %v2627_v42, %v2473_v46  ;;  %v2636_v55 = vadd.f32 %v2634_v53, %v2473_v46  ;;  %v2647_v57 = vadd.f32 %v2645_v56, %v2473_v46 }
 0x377   : > { %3922 = vrcp.f32 %v2629_v54  ;;  %v2637_v51 = vmul.f32 44.642857, %v2636_v55 }
 0x381   : > { %v3923_v48 = vpop.eup %3922 }
 0x382   : > { %2639 = vrot.lane.b32.xlu1 %v3923_v48, %s4200_s23 }
 0x386   : > { %2649 = vrot.lane.b32.xlu1 %v3923_v48, %s4201_s16 }
 0x393   : > { %v2963_v24 = vpop.f32.mrb[14].mxu1  ;;  %v2612_v22 = vpop.f32.mrb[10].mxu0 }
 0x394   : > { %v2964_v43 = vpop.f32.mrb[15].mxu1  ;;  %v3017_v19 = vpop.f32.mrb[11].mxu0 }
 0x395   : > { %v2965_v50 = vadd.f32 %v2964_v43, %v2963_v24 }
 0x397   : > { %v2613_v52 = vadd.f32 %v2965_v50, %v2612_v22 }
 0x398   : > { %4084 = shalt.err (!%p4081_p13)
}
 0x399   : > { %s4085_s29 = scalar_lea.hbm %s4596_s0, 384  ;;  %s4089_s15 = scalar_lea.hbm %s4675_s6, 768 }
 0x39a   : > { %p4086_p5 = scmp.ne.s32.totalorder %s4596_s0, %s4085_s29  ;;  %p4090_p3 = scmp.lt.u32.totalorder %s4596_s0, %s4675_s6 }
 0x39b   : > { %p4091_p7 = scmp.lt.u32.totalorder %s4089_s15, %s4085_s29  ;;  %p4093_p2 = scmp.lt.u32.totalorder %s4085_s29, %s4596_s0 }
 0x39c   : > { %p4087_p11 = pnand %p4086_p5, %p4702_p1 }
 0x39d   : > { %p4092_p12 = por %p4091_p7, %p4090_p3 }
 0x39e   : > { %p4088_p9 = pneg %p4087_p11 }
 0x39f   : > { %p4094_p4 = por %p4093_p2, %p4092_p12 }
 0x3a1   : > { %p4095_p0 = pnand %p4094_p4, %p4088_p9 }
 0x3a3   : > { %4098 = shalt.err (!%p4095_p0)
}
 0x3a4   : > { %3830 = dma.vmem_to_hbm [thread:$0]  (%p4702_p1), %s4590_s14, 384, %s4596_s0, %s2670_s9   ;;  %v2648_v28 = vmul.f32 44.642857, %v2647_v57  ;;  %vm2661_vm2 = vcmask 588800   ;;  %vm2663_vm3 = vcmask 785408   ;;  %vm2665_vm4 = vcmask 982016  }
 0x3a5   : > { %s4203_s22 = smov 72   ;;  %s2882_s19 = sshll.u32 %s4465_s4, 3 }
 0x3a6   : > { %s2892_s11 = sshll.u32 %s4266_s28, 7  ;;  %s399_s14 = scalar_lea.vmem [#allocation12], %s2882_s19 }
 0x3a7   : > { %s2702_s0 = sshll.u32 %s399_s14, 4  ;;  %s4625_s20 = scalar_lea.hbm %s4676_s7, %s2892_s11  ;;  %s4627_s0 = int_to_ptr.vmem [resolvable:$true] %s2702_s0 }
 0x3a8   : > { %s2675_s30 = scalar_lea.sflag [#allocation13], %s4465_s4  ;;  %s4099_s17 = scalar_lea.vmem %s4627_s0, 128 }
 0x3a9   : > { %p4100_p8 = scmp.ne.s32.totalorder %s4627_s0, %s4099_s17  ;;  %s4204_s28 = smov [#allocation12]  }
 0x3aa   : > { %s4103_s29 = sshll.u32 %s4204_s28, 4  ;;  %s4104_s29 = int_to_ptr.vmem [resolvable:$false] %s4103_s29 }
 0x3ab   : > { %p4101_p6 = pnand %p4100_p8, %p4702_p1  ;;  %s4105_s10 = scalar_lea.vmem %s4104_s29, 256 }
 0x3ac   : > { %p4106_p13 = scmp.lt.s32.totalorder %s4627_s0, %s4104_s29  ;;  %p4107_p5 = scmp.lt.s32.totalorder %s4105_s10, %s4099_s17 }
 0x3ad   : > { %p4102_p10 = pneg %p4101_p6 }
 0x3ae   : > { %p4108_p11 = por %p4107_p5, %p4106_p13 }
 0x3b0   : > { %p4109_p9 = pnand %p4108_p11, %p4102_p10 }
 0x3f4   : > { %v2640_v58 = vpop.permute.xlu1 %2639 }
 0x3f5   : > { %v2642_v59 = vmul.f32 %v2640_v58, %v2637_v51 }
 0x3f7   : > { %2654 = vrot.lane.b32.xlu0 %v2642_v59, %s4203_s22 }
 0x3f8   : > { %v2650_v13 = vpop.permute.xlu1 %2649 }
 0x3f9   : > { %v2652_v18 = vmul.f32 %v2650_v13, %v2648_v28 }
 0x3fb   : > { %2658 = vrot.lane.b32.xlu1 %v2652_v18, %s4203_s22 }
 0x469   : > { %v2655_v60 = vpop.permute.xlu0 %2654 }
 0x46a   : > { %v2662_v61 = vsel %vm2661_vm2, 0.0, %v2655_v60 }
 0x46d   : > { %v2659_v62 = vpop.permute.xlu1 %2658 }
 0x46e   : > { %v2664_v63 = vsel %vm2663_vm3, %v2662_v61, %v2659_v62 }
 0x46f   : > { %v2666_v0 = vsel %vm2665_vm4, %v2664_v63, 0.0 }
 0x470   : > { %v2667_v1 = vadd.f32 %v2666_v0, %v2613_v52 }
 0x472   : > { %2668 = vst [vmem:[%s399_s14] sm:$0xff] %v2667_v1 }
 0x473   : > { %4112 = shalt.err (!%p4109_p9)
}
 0x474   : > { %s4113_s4 = scalar_lea.hbm %s4625_s20, 128  ;;  %s4117_s23 = scalar_lea.hbm %s4676_s7, 256 }
 0x475   : > { %p4114_p3 = scmp.ne.s32.totalorder %s4625_s20, %s4113_s4  ;;  %p4118_p2 = scmp.lt.u32.totalorder %s4625_s20, %s4676_s7 }
 0x476   : > { %p4119_p4 = scmp.lt.u32.totalorder %s4117_s23, %s4113_s4  ;;  %p4121_p8 = scmp.lt.u32.totalorder %s4113_s4, %s4625_s20 }
 0x477   : > { %p4115_p7 = pnand %p4114_p3, %p4702_p1 }
 0x478   : > { %p4120_p0 = por %p4119_p4, %p4118_p2 }
 0x479   : > { %p4116_p12 = pneg %p4115_p7 }
 0x47a   : > { %p4122_p6 = por %p4121_p8, %p4120_p0 }
 0x47c   : > { %p4123_p10 = pnand %p4122_p6, %p4116_p12 }
 0x47e   : > { %4126 = shalt.err (!%p4123_p10)
}
 0x47f   : > { %3831 = dma.vmem_to_hbm [thread:$0]  (%p4702_p1), %s4627_s0, 128, %s4625_s20, %s2675_s30  }
 0x480 PF: > { %s2714_s19 = sand.u32 1, %s4169_s24   ;;  %p4703_p13 = scmp.ne.s32.totalorder %s4685_s8, 0 }
 0x481   : > { %p4704_p5 = scmp.ge.s32.totalorder %s4181_s27, 2  ;;  %s2715_s11 = scalar_lea.sflag [#allocation4], %s2714_s19 }
 0x483   : > { %p3852_p11 = pnand %p4704_p5, %p4703_p13 }
 0x485   : > { %4160 = dma.done.wait (!%p3852_p11), %s2715_s11, 384  }
 0x486   : > { %4162 = vsyncadd (!%p3852_p11), %s2715_s11, 4294966912  ;;  %s2724_s14 = scalar_lea.sflag [#allocation13], %s2714_s19 }
 0x487   : > { %4164 = dma.done.wait (!%p3852_p11), %s2724_s14, 128  }
 0x488   : > { %4166 = vsyncadd (!%p3852_p11), %s2724_s14, 4294967168  ;;  %p28_p1 = scmp.ge.s32.totalorder %s4373_s13, 4   ;;  %s4705_s24 = smov %s4173_s25 }
 0x489   : > { %s4706_s25 = smov %s4177_s26  ;;  %s4707_s26 = smov %s4383_s18 }
 0x48a   : > { %s4708_s27 = smov %s4373_s13  ;;  %30 = sbr.rel (!%p28_p1) target bundleno = 14 (0xe), region = 134 }
 0x491   :  { %2729 = vsyncpa [#allocation3], 1 }
 0x492   :  { %2731 = vsyncpa [#allocation3 + $0x1], 1 }
 0x493   :  { %2732 = vsyncpa [#allocation6], 1 }
 0x494   :  { %2734 = vsyncpa [#allocation6 + $0x1], 1 }
 0x495   :  { %2735 = vsyncpa [#allocation9], 1 }
 0x496   :  { %2736 = vsyncpa [#allocation4], 1 }
 0x497   :  { %2738 = vsyncpa [#allocation4 + $0x1], 1 }
 0x498   :  { %2739 = vsyncpa [#allocation13], 1 }
 0x499   :  { %2741 = vsyncpa [#allocation13 + $0x1], 1 }

</bundles_post_ra>
